<compile_context>
chip_gen: v7x
topology: tpu7x:2x2x1
jax: 0.10.0
libtpu: 0.0.40
codegen_flags: <defaults>
</compile_context>

<pallas_src>
import functools
import numpy as np
import jax
import jax.numpy as jnp
from jax import lax
from jax.experimental import pallas as pl
from jax.experimental.pallas import tpu as pltpu

# ----- loss_params (LossModule.__init__ holds only these scalars; no weights) -----
ALPHA = 1.0          # varLoss weight
BETA = 1.0           # distLoss weight
GAMMA = 0.001        # edgeLoss weight
DELTA = 0.001        # regLoss weight
DV = 0.5             # intra-cluster margin
DD = 1.5             # inter-cluster margin
NORM = 2             # L2 norm (only p=2 implemented)
INCLUDE_EDGES = True
IGNORE_VAL = 255     # config.PIXEL_IGNORE_VAL
EDGE_TILE = 256      # pixel tile for the pairwise edge term (256x256 f32 = 256 KiB)

# TODO(synk): edges_max_pixels random subsampling and include_weighted_mean
#             (corner/center pixel detection) are host-side numpy logic with no
#             clean in-kernel equivalent; kernel uses all edge pixels / plain means.


def _loss_kernel(cnt_ref, f_ref, lab_ref, edg_ref, out_ref, s_ref, *, K, P, T, NT):
    b = pl.program_id(0)

    feats = f_ref[0]                      # (C, P) f32, P on the lane axis
    labels = lab_ref[0]                   # (1, P) int32
    edges = edg_ref[0]                    # (1, P) int32

    # TODO(synk): for very large P the (C,P) block / (K,P) masks should be
    #             chunked over P with a two-pass (sums, then hinge) pipeline.
    kidx = lax.broadcasted_iota(jnp.int32, (K, P), 0)
    mask = (jnp.broadcast_to(labels, (K, P)) == kidx).astype(jnp.float32)    # (K, P)
    emask = (jnp.broadcast_to(edges, (K, P)) == kidx).astype(jnp.float32)    # (K, P)

    counts = jnp.sum(mask, axis=1, keepdims=True)                            # (K, 1)
    present = (counts > 0.0).astype(jnp.float32)
    safe_counts = jnp.maximum(counts, 1.0)

    sums = lax.dot_general(mask, feats, (((1,), (1,)), ((), ())),
                           preferred_element_type=jnp.float32)               # (K, C)
    means = sums / safe_counts                                               # (K, C)

    x2 = jnp.sum(feats * feats, axis=0, keepdims=True)                       # (1, P)
    m2 = jnp.sum(means * means, axis=1, keepdims=True)                       # (K, 1)

    # ---- variance (pull) loss, (K, P) lane-dense ----
    xm = jnp.dot(means, feats, preferred_element_type=jnp.float32)           # (K, P)
    d_pm = jnp.sqrt(jnp.maximum(m2 + x2 - 2.0 * xm, 0.0))                    # (K, P)
    hinge_v = jnp.maximum(d_pm - DV, 0.0) ** 2 * mask
    per_cluster = jnp.sum(hinge_v, axis=1, keepdims=True)                    # (K, 1)
    var_loss = jnp.sum(present * per_cluster / safe_counts) / K

    # ---- distance (push) loss between cluster means ----
    rows = lax.broadcasted_iota(jnp.int32, (K, K), 0)
    cols = lax.broadcasted_iota(jnp.int32, (K, K), 1)
    upper = (rows < cols).astype(jnp.float32)
    if K >= 2:
        mm = lax.dot_general(means, means, (((1,), (1,)), ((), ())),
                             preferred_element_type=jnp.float32)             # (K, K)
        d_mm = jnp.sqrt(jnp.maximum(m2 + m2.T - 2.0 * mm, 0.0))
        hinge_d = jnp.maximum(2.0 * DD - d_mm, 0.0) ** 2
        dist_loss = jnp.sum(hinge_d * upper * (present * present.T)) / (K * (K - 1))
    else:
        dist_loss = 0.0

    # ---- edge loss, tiled over (T x T) pixel pairs, empty tile pairs skipped ----
    if K >= 2 and INCLUDE_EDGES:
        ecounts = jnp.sum(emask, axis=1, keepdims=True)                      # (K, 1)
        kidx_t = lax.broadcasted_iota(jnp.int32, (K, T), 0)
        s_ref[...] = jnp.zeros_like(s_ref)

        @pl.loop(0, NT)
        def _row(i):
            cnt_i = cnt_ref[b, i]
            ti = pl.multiple_of(i * T, T)
            fiT = jnp.transpose(f_ref[0, :, pl.ds(ti, T)])                   # (T, C)
            ei = edg_ref[0, :, pl.ds(ti, T)]                                 # (1, T)
            emask_i = (jnp.broadcast_to(ei, (K, T)) == kidx_t).astype(jnp.float32)
            xi2 = jnp.sum(fiT * fiT, axis=1, keepdims=True)                  # (T, 1)

            @pl.loop(0, NT)
            def _col(j):
                cnt_j = cnt_ref[b, j]

                @pl.when(jnp.logical_and(cnt_i > 0, cnt_j > 0))
                def _tile():
                    tj = pl.multiple_of(j * T, T)
                    fj = f_ref[0, :, pl.ds(tj, T)]                           # (C, T)
                    ej = edg_ref[0, :, pl.ds(tj, T)]                         # (1, T)
                    emask_j = (jnp.broadcast_to(ej, (K, T)) == kidx_t).astype(jnp.float32)
                    xj2 = jnp.sum(fj * fj, axis=0, keepdims=True)            # (1, T)
                    ff = jnp.dot(fiT, fj, preferred_element_type=jnp.float32)  # (T, T)
                    d_pp = jnp.sqrt(jnp.maximum(xi2 + xj2 - 2.0 * ff, 0.0))
                    r = jnp.maximum(2.0 * (DD - DV) - d_pp, 0.0) ** 2        # (T, T)
                    er = lax.dot_general(emask_i, r, (((1,), (0,)), ((), ())),
                                         preferred_element_type=jnp.float32)  # (K, T)
                    s_ref[...] += lax.dot_general(er, emask_j,
                                                  (((1,), (1,)), ((), ())),
                                                  preferred_element_type=jnp.float32)

        denom = ecounts * ecounts.T                                          # (K, K)
        safe_denom = jnp.maximum(denom, 1.0)
        s_norm = jnp.where(denom > 0.0, s_ref[...] / safe_denom, 0.0)
        edge_loss = jnp.sum(upper * s_norm) / (K * (K - 1))
    else:
        edge_loss = 0.0

    # ---- regularization on cluster means ----
    reg_loss = jnp.sum(present * jnp.sqrt(jnp.maximum(m2, 0.0))) / K

    # single lane-dense output slab: components in lanes 0..3
    lane = lax.broadcasted_iota(jnp.int32, (1, 1, 128), 2)
    out_ref[...] = (jnp.where(lane == 0, ALPHA * var_loss, 0.0)
                    + jnp.where(lane == 1, BETA * dist_loss, 0.0)
                    + jnp.where(lane == 2, GAMMA * edge_loss, 0.0)
                    + jnp.where(lane == 3, DELTA * reg_loss, 0.0)).astype(jnp.float32)


def loss_module_forward(features_nchw, labels_hw, edges_hw, num_instances,
                        tile=EDGE_TILE):
    B, C, H, W = features_nchw.shape
    P = H * W
    K = int(num_instances)
    T = tile if (P % tile == 0) else P   # TODO(synk): pad ragged P to a tile multiple
    NT = P // T

    # No transpose: NCHW already has the pixel axis last.
    feats = features_nchw.reshape(B, C, P).astype(jnp.float32)
    lab = labels_hw.reshape(B, 1, P).astype(jnp.int32)
    edg = edges_hw.reshape(B, 1, P).astype(jnp.int32)

    # per-tile edge-pixel counts, scalar-prefetched to SMEM to skip empty tile pairs
    e_tiles = edg.reshape(B, NT, T)
    tile_counts = jnp.sum(((e_tiles >= 0) & (e_tiles < K)).astype(jnp.int32),
                          axis=-1)                                           # (B, NT)

    kernel = functools.partial(_loss_kernel, K=K, P=P, T=T, NT=NT)
    grid_spec = pltpu.PrefetchScalarGridSpec(
        num_scalar_prefetch=1,
        grid=(B,),
        in_specs=[
            pl.BlockSpec((1, C, P), lambda b, cnt: (b, 0, 0)),
            pl.BlockSpec((1, 1, P), lambda b, cnt: (b, 0, 0)),
            pl.BlockSpec((1, 1, P), lambda b, cnt: (b, 0, 0)),
        ],
        out_specs=pl.BlockSpec((1, 1, 128), lambda b, cnt: (b, 0, 0)),
        scratch_shapes=[pltpu.VMEM((K, K), jnp.float32)],
    )
    parts = pl.pallas_call(
        kernel,
        out_shape=jax.ShapeDtypeStruct((B, 1, 128), jnp.float32),
        grid_spec=grid_spec,
        compiler_params=pltpu.CompilerParams(
            dimension_semantics=("parallel",),       # per-batch partials; no accumulator
            vmem_limit_bytes=32 * 1024 * 1024,
        ),
    )(tile_counts, feats, lab, edg)

    comp = jnp.sum(parts, axis=(0, 1))               # (128,): sum of per-batch partials
    var, dist, edge, reg = comp[0], comp[1], comp[2], comp[3]
    total = var + dist + edge + reg
    return total, var, dist, edge, reg


def _reference_loss(feats_nchw, labels, edges, K):
    """Float64 numpy reference mirroring the PyTorch loops."""
    B, C, H, W = feats_nchw.shape
    var_l = dist_l = edge_l = reg_l = 0.0
    for b in range(B):
        f = np.transpose(feats_nchw[b], (1, 2, 0)).reshape(-1, C).astype(np.float64)
        lab = labels[b].reshape(-1)
        edg = edges[b].reshape(-1)
        clusters, means = [], []
        for k in range(K):
            clusters.append((f[lab == k], f[edg == k]))
            means.append(f[lab == k].mean(axis=0))
        means = np.stack(means)
        vl = 0.0
        for k in range(K):
            d = np.linalg.norm(clusters[k][0] - means[k], axis=1)
            vl += np.sum(np.maximum(d - DV, 0.0) ** 2) / clusters[k][0].shape[0]
        vl /= K
        dl = 0.0
        el = 0.0
        for a in range(K):
            for c in range(a + 1, K):
                dl += np.maximum(2.0 * DD - np.linalg.norm(means[a] - means[c]), 0.0) ** 2
                ea, eb = clusters[a][1], clusters[c][1]
                d = np.linalg.norm(ea[:, None, :] - eb[None, :, :], axis=-1)
                el += np.sum(np.maximum(2.0 * (DD - DV) - d, 0.0) ** 2) / (ea.shape[0] * eb.shape[0])
        dl /= K * (K - 1)
        el /= K * (K - 1)
        rl = np.mean(np.linalg.norm(means, axis=1))
        var_l += ALPHA * vl
        dist_l += BETA * dl
        edge_l += GAMMA * el
        reg_l += DELTA * rl
    total = var_l + dist_l + edge_l + reg_l
    return total, var_l, dist_l, edge_l, reg_l


if __name__ == "__main__":
    B, C, H, W, K = 2, 8, 32, 32, 3      # P = 1024 -> 4 edge tiles of 256 pixels
    key = jax.random.PRNGKey(0)
    kf, kl, ke = jax.random.split(key, 3)
    features = jax.random.normal(kf, (B, C, H, W), dtype=jnp.float32)
    labels = jax.random.randint(kl, (B, H, W), 0, K, dtype=jnp.int32)
    edge_sel = jax.random.bernoulli(ke, 0.15, (B, H, W))
    label_edges = jnp.where(edge_sel, labels, IGNORE_VAL).astype(jnp.int32)
    # guarantee every instance has at least one body pixel and one boundary pixel
    labels = labels.at[:, 0, :K].set(jnp.arange(K, dtype=jnp.int32))
    label_edges = label_edges.at[:, 0, :K].set(jnp.arange(K, dtype=jnp.int32))

    outs = loss_module_forward(features, labels, label_edges, K)
    outs = jax.block_until_ready(outs)

    ref = _reference_loss(np.asarray(features, np.float64),
                          np.asarray(labels), np.asarray(label_edges), K)
    ok = all(np.allclose(float(o), r, rtol=2e-3, atol=2e-3) for o, r in zip(outs, ref))
    if not ok:
        raise AssertionError(f"mismatch: kernel={[float(o) for o in outs]} ref={list(ref)}")
    print("KERNEL_OK")
</pallas_src>

<mosaic_0001>
module attributes {stable_mosaic.version = 11 : i64} {
  func.func @_loss_kernel(%arg0: i32, %arg1: memref<2x4xi32, #tpu.memory_space<smem>>, %arg2: memref<1x8x1024xf32, #tpu.memory_space<vmem>>, %arg3: memref<1x1x1024xi32, #tpu.memory_space<vmem>>, %arg4: memref<1x1x1024xi32, #tpu.memory_space<vmem>>, %arg5: memref<1x1x128xf32, #tpu.memory_space<vmem>>, %arg6: memref<3x3xf32, #tpu.memory_space<vmem>>) attributes {dimension_semantics = [#tpu.dimension_semantics<parallel>], iteration_bounds = array<i64: 2>, scalar_prefetch = 1 : i64, scratch_operands = 1 : i64, tpu.core_type = #tpu.core_type<tc>, window_params = [{transform_indices = @transform_0, window_bounds = array<i64: 1, 8, 1024>}, {transform_indices = @transform_1, window_bounds = array<i64: 1, 1, 1024>}, {transform_indices = @transform_2, window_bounds = array<i64: 1, 1, 1024>}, {transform_indices = @transform_3, window_bounds = array<i64: 1, 1, 128>}]} {
    %c0 = arith.constant 0 : index
    %c0_0 = arith.constant 0 : index
    %c0_1 = arith.constant 0 : index
    %0 = vector.load %arg2[%c0, %c0_0, %c0_1] : memref<1x8x1024xf32, #tpu.memory_space<vmem>>, vector<1x8x1024xf32>
    %1 = vector.shape_cast %0 : vector<1x8x1024xf32> to vector<8x1024xf32>
    %c0_2 = arith.constant 0 : index
    %c0_3 = arith.constant 0 : index
    %c0_4 = arith.constant 0 : index
    %2 = vector.load %arg3[%c0_2, %c0_3, %c0_4] : memref<1x1x1024xi32, #tpu.memory_space<vmem>>, vector<1x1x1024xi32>
    %3 = vector.shape_cast %2 : vector<1x1x1024xi32> to vector<1x1024xi32>
    %c0_5 = arith.constant 0 : index
    %c0_6 = arith.constant 0 : index
    %c0_7 = arith.constant 0 : index
    %4 = vector.load %arg4[%c0_5, %c0_6, %c0_7] : memref<1x1x1024xi32, #tpu.memory_space<vmem>>, vector<1x1x1024xi32>
    %5 = vector.shape_cast %4 : vector<1x1x1024xi32> to vector<1x1024xi32>
    %6 = tpu.iota {dimensions = array<i32: 0>} : vector<3x1024xi32>
    %7 = vector.shape_cast %3 : vector<1x1024xi32> to vector<1x1024xi32>
    %8 = vector.broadcast %7 : vector<1x1024xi32> to vector<3x1024xi32>
    %9 = arith.cmpi eq, %8, %6 : vector<3x1024xi32>
    %10 = arith.extui %9 : vector<3x1024xi1> to vector<3x1024xi32>
    %11 = arith.sitofp %10 : vector<3x1024xi32> to vector<3x1024xf32>
    %12 = vector.shape_cast %5 : vector<1x1024xi32> to vector<1x1024xi32>
    %13 = vector.broadcast %12 : vector<1x1024xi32> to vector<3x1024xi32>
    %14 = arith.cmpi eq, %13, %6 : vector<3x1024xi32>
    %15 = arith.extui %14 : vector<3x1024xi1> to vector<3x1024xi32>
    %16 = arith.sitofp %15 : vector<3x1024xi32> to vector<3x1024xf32>
    %cst = arith.constant dense<0.000000e+00> : vector<3xf32>
    %17 = vector.multi_reduction <add>, %11, %cst [1] : vector<3x1024xf32> to vector<3xf32>
    %18 = vector.shape_cast %17 : vector<3xf32> to vector<3x1xf32>
    %cst_8 = arith.constant 0.000000e+00 : f32
    %19 = vector.broadcast %cst_8 : f32 to vector<3x1xf32>
    %20 = arith.cmpf ogt, %18, %19 : vector<3x1xf32>
    %21 = arith.extui %20 : vector<3x1xi1> to vector<3x1xi32>
    %22 = arith.sitofp %21 : vector<3x1xi32> to vector<3x1xf32>
    %cst_9 = arith.constant 1.000000e+00 : f32
    %23 = vector.broadcast %cst_9 : f32 to vector<3x1xf32>
    %24 = arith.maximumf %18, %23 : vector<3x1xf32>
    %cst_10 = arith.constant dense<0.000000e+00> : vector<3x8xf32>
    %25 = tpu.matmul %11, %1, %cst_10 {dimension_numbers = #tpu.dot_dimension_numbers<[1], [1], [0], [0], [0, 0, 1, 0], [], []>} : vector<3x1024xf32>, vector<8x1024xf32>, vector<3x8xf32> -> vector<3x8xf32>
    %26 = vector.broadcast %24 : vector<3x1xf32> to vector<3x8xf32>
    %27 = arith.divf %25, %26 : vector<3x8xf32>
    %28 = arith.mulf %1, %1 : vector<8x1024xf32>
    %cst_11 = arith.constant dense<0.000000e+00> : vector<1024xf32>
    %29 = vector.multi_reduction <add>, %28, %cst_11 [0] : vector<8x1024xf32> to vector<1024xf32>
    %30 = vector.shape_cast %29 : vector<1024xf32> to vector<1x1024xf32>
    %31 = arith.mulf %27, %27 : vector<3x8xf32>
    %cst_12 = arith.constant dense<0.000000e+00> : vector<3xf32>
    %32 = vector.multi_reduction <add>, %31, %cst_12 [1] : vector<3x8xf32> to vector<3xf32>
    %33 = vector.shape_cast %32 : vector<3xf32> to vector<3x1xf32>
    %cst_13 = arith.constant dense<0.000000e+00> : vector<3x1024xf32>
    %34 = tpu.matmul %27, %1, %cst_13 {dimension_numbers = #tpu.dot_dimension_numbers<[1], [0], [0], [1], [0, 0, 1, 1], [], []>} : vector<3x8xf32>, vector<8x1024xf32>, vector<3x1024xf32> -> vector<3x1024xf32>
    %35 = vector.broadcast %33 : vector<3x1xf32> to vector<3x1024xf32>
    %36 = vector.broadcast %30 : vector<1x1024xf32> to vector<3x1024xf32>
    %37 = arith.addf %35, %36 : vector<3x1024xf32>
    %cst_14 = arith.constant 2.000000e+00 : f32
    %38 = vector.broadcast %cst_14 : f32 to vector<3x1024xf32>
    %39 = arith.mulf %38, %34 : vector<3x1024xf32>
    %40 = arith.subf %37, %39 : vector<3x1024xf32>
    %cst_15 = arith.constant 0.000000e+00 : f32
    %41 = vector.broadcast %cst_15 : f32 to vector<3x1024xf32>
    %42 = arith.maximumf %40, %41 : vector<3x1024xf32>
    %43 = math.sqrt %42 : vector<3x1024xf32>
    %cst_16 = arith.constant 5.000000e-01 : f32
    %44 = vector.broadcast %cst_16 : f32 to vector<3x1024xf32>
    %45 = arith.subf %43, %44 : vector<3x1024xf32>
    %cst_17 = arith.constant 0.000000e+00 : f32
    %46 = vector.broadcast %cst_17 : f32 to vector<3x1024xf32>
    %47 = arith.maximumf %45, %46 : vector<3x1024xf32>
    %48 = arith.mulf %47, %47 : vector<3x1024xf32>
    %49 = arith.mulf %48, %11 : vector<3x1024xf32>
    %cst_18 = arith.constant dense<0.000000e+00> : vector<3xf32>
    %50 = vector.multi_reduction <add>, %49, %cst_18 [1] : vector<3x1024xf32> to vector<3xf32>
    %51 = vector.shape_cast %50 : vector<3xf32> to vector<3x1xf32>
    %52 = arith.mulf %22, %51 : vector<3x1xf32>
    %53 = arith.divf %52, %24 : vector<3x1xf32>
    %54 = vector.shape_cast %53 : vector<3x1xf32> to vector<1x3x1xf32>
    %cst_19 = arith.constant dense<0.000000e+00> : vector<1xf32>
    %55 = vector.multi_reduction <add>, %54, %cst_19 [1, 2] : vector<1x3x1xf32> to vector<1xf32>
    %56 = vector.shape_cast %55 : vector<1xf32> to vector<1x1x1xf32>
    %57 = vector.extract %56[0, 0, 0] : f32 from vector<1x1x1xf32>
    %cst_20 = arith.constant 3.000000e+00 : f32
    %58 = arith.divf %57, %cst_20 : f32
    %59 = tpu.iota {dimensions = array<i32: 0>} : vector<3x3xi32>
    %60 = tpu.iota {dimensions = array<i32: 1>} : vector<3x3xi32>
    %61 = arith.cmpi slt, %59, %60 : vector<3x3xi32>
    %62 = arith.extui %61 : vector<3x3xi1> to vector<3x3xi32>
    %63 = arith.sitofp %62 : vector<3x3xi32> to vector<3x3xf32>
    %cst_21 = arith.constant dense<0.000000e+00> : vector<3x3xf32>
    %64 = tpu.matmul %27, %27, %cst_21 {dimension_numbers = #tpu.dot_dimension_numbers<[1], [1], [0], [0], [0, 0, 1, 0], [], []>} : vector<3x8xf32>, vector<3x8xf32>, vector<3x3xf32> -> vector<3x3xf32>
    %65 = tpu.transpose %33, [1, 0] : vector<3x1xf32> -> vector<1x3xf32>
    %66 = vector.broadcast %33 : vector<3x1xf32> to vector<3x3xf32>
    %67 = vector.broadcast %65 : vector<1x3xf32> to vector<3x3xf32>
    %68 = arith.addf %66, %67 : vector<3x3xf32>
    %cst_22 = arith.constant 2.000000e+00 : f32
    %69 = vector.broadcast %cst_22 : f32 to vector<3x3xf32>
    %70 = arith.mulf %69, %64 : vector<3x3xf32>
    %71 = arith.subf %68, %70 : vector<3x3xf32>
    %cst_23 = arith.constant 0.000000e+00 : f32
    %72 = vector.broadcast %cst_23 : f32 to vector<3x3xf32>
    %73 = arith.maximumf %71, %72 : vector<3x3xf32>
    %74 = math.sqrt %73 : vector<3x3xf32>
    %cst_24 = arith.constant 3.000000e+00 : f32
    %75 = vector.broadcast %cst_24 : f32 to vector<3x3xf32>
    %76 = arith.subf %75, %74 : vector<3x3xf32>
    %cst_25 = arith.constant 0.000000e+00 : f32
    %77 = vector.broadcast %cst_25 : f32 to vector<3x3xf32>
    %78 = arith.maximumf %76, %77 : vector<3x3xf32>
    %79 = arith.mulf %78, %78 : vector<3x3xf32>
    %80 = arith.mulf %79, %63 : vector<3x3xf32>
    %81 = tpu.transpose %22, [1, 0] : vector<3x1xf32> -> vector<1x3xf32>
    %82 = vector.broadcast %22 : vector<3x1xf32> to vector<3x3xf32>
    %83 = vector.broadcast %81 : vector<1x3xf32> to vector<3x3xf32>
    %84 = arith.mulf %82, %83 : vector<3x3xf32>
    %85 = arith.mulf %80, %84 : vector<3x3xf32>
    %86 = vector.shape_cast %85 : vector<3x3xf32> to vector<1x3x3xf32>
    %cst_26 = arith.constant dense<0.000000e+00> : vector<1xf32>
    %87 = vector.multi_reduction <add>, %86, %cst_26 [1, 2] : vector<1x3x3xf32> to vector<1xf32>
    %88 = vector.shape_cast %87 : vector<1xf32> to vector<1x1x1xf32>
    %89 = vector.extract %88[0, 0, 0] : f32 from vector<1x1x1xf32>
    %cst_27 = arith.constant 6.000000e+00 : f32
    %90 = arith.divf %89, %cst_27 : f32
    %cst_28 = arith.constant dense<0.000000e+00> : vector<3xf32>
    %91 = vector.multi_reduction <add>, %16, %cst_28 [1] : vector<3x1024xf32> to vector<3xf32>
    %92 = vector.shape_cast %91 : vector<3xf32> to vector<3x1xf32>
    %93 = tpu.iota {dimensions = array<i32: 0>} : vector<3x256xi32>
    %cst_29 = arith.constant 0.000000e+00 : f32
    %94 = vector.broadcast %cst_29 : f32 to vector<3x3xf32>
    %c0_30 = arith.constant 0 : index
    %c0_31 = arith.constant 0 : index
    %95 = vector.load %arg6[%c0_30, %c0_31] : memref<3x3xf32, #tpu.memory_space<vmem>>, vector<3x3xf32>
    tpu.vector_store %arg6[%c0_30, %c0_31], %94 {strides = array<i32>} : memref<3x3xf32, #tpu.memory_space<vmem>>, vector<3x3xf32>,
    %c0_i32 = arith.constant 0 : i32
    %c4_i32 = arith.constant 4 : i32
    %96 = arith.addi %c0_i32, %c4_i32 : i32
    %c1_i32 = arith.constant 1 : i32
    scf.for %arg7 = %c0_i32 to %96 step %c1_i32  : i32 {
      %c1_i32_56 = arith.constant 1 : i32
      %153 = arith.muli %arg7, %c1_i32_56 : i32
      %c0_i32_57 = arith.constant 0 : i32
      %154 = arith.addi %c0_i32_57, %153 : i32
      %155 = arith.index_cast %arg0 : i32 to index
      %156 = arith.index_cast %154 : i32 to index
      %157 = memref.load %arg1[%155, %156] : memref<2x4xi32, #tpu.memory_space<smem>>
      %c256_i32 = arith.constant 256 : i32
      %158 = arith.muli %154, %c256_i32 : i32
      %159 = tpu.assume_multiple %158, 256 : i32
      %c0_58 = arith.constant 0 : index
      %c0_59 = arith.constant 0 : index
      %160 = arith.index_cast %159 : i32 to index
      %161 = vector.load %arg2[%c0_58, %c0_59, %160] : memref<1x8x1024xf32, #tpu.memory_space<vmem>>, vector<1x8x256xf32>
      %162 = vector.shape_cast %161 : vector<1x8x256xf32> to vector<8x256xf32>
      %163 = tpu.transpose %162, [1, 0] : vector<8x256xf32> -> vector<256x8xf32>
      %c0_60 = arith.constant 0 : index
      %c0_61 = arith.constant 0 : index
      %164 = arith.index_cast %159 : i32 to index
      %165 = vector.load %arg4[%c0_60, %c0_61, %164] : memref<1x1x1024xi32, #tpu.memory_space<vmem>>, vector<1x1x256xi32>
      %166 = vector.shape_cast %165 : vector<1x1x256xi32> to vector<1x256xi32>
      %167 = vector.shape_cast %166 : vector<1x256xi32> to vector<1x256xi32>
      %168 = vector.broadcast %167 : vector<1x256xi32> to vector<3x256xi32>
      %169 = arith.cmpi eq, %168, %93 : vector<3x256xi32>
      %170 = arith.extui %169 : vector<3x256xi1> to vector<3x256xi32>
      %171 = arith.sitofp %170 : vector<3x256xi32> to vector<3x256xf32>
      %172 = arith.mulf %163, %163 : vector<256x8xf32>
      %cst_62 = arith.constant dense<0.000000e+00> : vector<256xf32>
      %173 = vector.multi_reduction <add>, %172, %cst_62 [1] : vector<256x8xf32> to vector<256xf32>
      %174 = vector.shape_cast %173 : vector<256xf32> to vector<256x1xf32>
      %c0_i32_63 = arith.constant 0 : i32
      %c4_i32_64 = arith.constant 4 : i32
      %175 = arith.addi %c0_i32_63, %c4_i32_64 : i32
      %c1_i32_65 = arith.constant 1 : i32
      scf.for %arg8 = %c0_i32_63 to %175 step %c1_i32_65  : i32 {
        %c1_i32_67 = arith.constant 1 : i32
        %176 = arith.muli %arg8, %c1_i32_67 : i32
        %c0_i32_68 = arith.constant 0 : i32
        %177 = arith.addi %c0_i32_68, %176 : i32
        %178 = arith.index_cast %arg0 : i32 to index
        %179 = arith.index_cast %177 : i32 to index
        %180 = memref.load %arg1[%178, %179] : memref<2x4xi32, #tpu.memory_space<smem>>
        %c0_i32_69 = arith.constant 0 : i32
        %181 = arith.cmpi sgt, %157, %c0_i32_69 : i32
        %c0_i32_70 = arith.constant 0 : i32
        %182 = arith.cmpi sgt, %180, %c0_i32_70 : i32
        %183 = arith.andi %181, %182 : i1
        %184 = arith.extui %183 : i1 to i32
        %c0_i32_71 = arith.constant 0 : i32
        %185 = arith.cmpi ne, %184, %c0_i32_71 : i32
        scf.if %185 {
          %c256_i32_72 = arith.constant 256 : i32
          %186 = arith.muli %177, %c256_i32_72 : i32
          %187 = tpu.assume_multiple %186, 256 : i32
          %c0_73 = arith.constant 0 : index
          %c0_74 = arith.constant 0 : index
          %188 = arith.index_cast %187 : i32 to index
          %189 = vector.load %arg2[%c0_73, %c0_74, %188] : memref<1x8x1024xf32, #tpu.memory_space<vmem>>, vector<1x8x256xf32>
          %190 = vector.shape_cast %189 : vector<1x8x256xf32> to vector<8x256xf32>
          %c0_75 = arith.constant 0 : index
          %c0_76 = arith.constant 0 : index
          %191 = arith.index_cast %187 : i32 to index
          %192 = vector.load %arg4[%c0_75, %c0_76, %191] : memref<1x1x1024xi32, #tpu.memory_space<vmem>>, vector<1x1x256xi32>
          %193 = vector.shape_cast %192 : vector<1x1x256xi32> to vector<1x256xi32>
          %194 = vector.shape_cast %193 : vector<1x256xi32> to vector<1x256xi32>
          %195 = vector.broadcast %194 : vector<1x256xi32> to vector<3x256xi32>
          %196 = arith.cmpi eq, %195, %93 : vector<3x256xi32>
          %197 = arith.extui %196 : vector<3x256xi1> to vector<3x256xi32>
          %198 = arith.sitofp %197 : vector<3x256xi32> to vector<3x256xf32>
          %199 = arith.mulf %190, %190 : vector<8x256xf32>
          %cst_77 = arith.constant dense<0.000000e+00> : vector<256xf32>
          %200 = vector.multi_reduction <add>, %199, %cst_77 [0] : vector<8x256xf32> to vector<256xf32>
          %201 = vector.shape_cast %200 : vector<256xf32> to vector<1x256xf32>
          %cst_78 = arith.constant dense<0.000000e+00> : vector<256x256xf32>
          %202 = tpu.matmul %163, %190, %cst_78 {dimension_numbers = #tpu.dot_dimension_numbers<[1], [0], [0], [1], [0, 0, 1, 1], [], []>} : vector<256x8xf32>, vector<8x256xf32>, vector<256x256xf32> -> vector<256x256xf32>
          %203 = vector.broadcast %174 : vector<256x1xf32> to vector<256x256xf32>
          %204 = vector.broadcast %201 : vector<1x256xf32> to vector<256x256xf32>
          %205 = arith.addf %203, %204 : vector<256x256xf32>
          %cst_79 = arith.constant 2.000000e+00 : f32
          %206 = vector.broadcast %cst_79 : f32 to vector<256x256xf32>
          %207 = arith.mulf %206, %202 : vector<256x256xf32>
          %208 = arith.subf %205, %207 : vector<256x256xf32>
          %cst_80 = arith.constant 0.000000e+00 : f32
          %209 = vector.broadcast %cst_80 : f32 to vector<256x256xf32>
          %210 = arith.maximumf %208, %209 : vector<256x256xf32>
          %211 = math.sqrt %210 : vector<256x256xf32>
          %cst_81 = arith.constant 2.000000e+00 : f32
          %212 = vector.broadcast %cst_81 : f32 to vector<256x256xf32>
          %213 = arith.subf %212, %211 : vector<256x256xf32>
          %cst_82 = arith.constant 0.000000e+00 : f32
          %214 = vector.broadcast %cst_82 : f32 to vector<256x256xf32>
          %215 = arith.maximumf %213, %214 : vector<256x256xf32>
          %216 = arith.mulf %215, %215 : vector<256x256xf32>
          %cst_83 = arith.constant dense<0.000000e+00> : vector<3x256xf32>
          %217 = tpu.matmul %171, %216, %cst_83 {dimension_numbers = #tpu.dot_dimension_numbers<[1], [0], [0], [1], [0, 0, 1, 1], [], []>} : vector<3x256xf32>, vector<256x256xf32>, vector<3x256xf32> -> vector<3x256xf32>
          %c0_84 = arith.constant 0 : index
          %c0_85 = arith.constant 0 : index
          %218 = vector.load %arg6[%c0_84, %c0_85] : memref<3x3xf32, #tpu.memory_space<vmem>>, vector<3x3xf32>
          %cst_86 = arith.constant dense<0.000000e+00> : vector<3x3xf32>
          %219 = tpu.matmul %217, %198, %cst_86 {dimension_numbers = #tpu.dot_dimension_numbers<[1], [1], [0], [0], [0, 0, 1, 0], [], []>} : vector<3x256xf32>, vector<3x256xf32>, vector<3x3xf32> -> vector<3x3xf32>
          %220 = arith.addf %218, %219 : vector<3x3xf32>
          %c0_87 = arith.constant 0 : index
          %c0_88 = arith.constant 0 : index
          %221 = vector.load %arg6[%c0_87, %c0_88] : memref<3x3xf32, #tpu.memory_space<vmem>>, vector<3x3xf32>
          tpu.vector_store %arg6[%c0_87, %c0_88], %220 {strides = array<i32>} : memref<3x3xf32, #tpu.memory_space<vmem>>, vector<3x3xf32>,
        } else {
        }
      }
      %c4_i32_66 = arith.constant 4 : i32
    }
    %c4_i32_32 = arith.constant 4 : i32
    %97 = tpu.transpose %92, [1, 0] : vector<3x1xf32> -> vector<1x3xf32>
    %98 = vector.broadcast %92 : vector<3x1xf32> to vector<3x3xf32>
    %99 = vector.broadcast %97 : vector<1x3xf32> to vector<3x3xf32>
    %100 = arith.mulf %98, %99 : vector<3x3xf32>
    %cst_33 = arith.constant 1.000000e+00 : f32
    %101 = vector.broadcast %cst_33 : f32 to vector<3x3xf32>
    %102 = arith.maximumf %100, %101 : vector<3x3xf32>
    %cst_34 = arith.constant 0.000000e+00 : f32
    %103 = vector.broadcast %cst_34 : f32 to vector<3x3xf32>
    %104 = arith.cmpf ogt, %100, %103 : vector<3x3xf32>
    %c0_35 = arith.constant 0 : index
    %c0_36 = arith.constant 0 : index
    %105 = vector.load %arg6[%c0_35, %c0_36] : memref<3x3xf32, #tpu.memory_space<vmem>>, vector<3x3xf32>
    %106 = arith.divf %105, %102 : vector<3x3xf32>
    %cst_37 = arith.constant 0.000000e+00 : f32
    %107 = vector.broadcast %cst_37 : f32 to vector<3x3xf32>
    %108 = arith.select %104, %106, %107 : vector<3x3xi1>, vector<3x3xf32>
    %109 = arith.mulf %63, %108 : vector<3x3xf32>
    %110 = vector.shape_cast %109 : vector<3x3xf32> to vector<1x3x3xf32>
    %cst_38 = arith.constant dense<0.000000e+00> : vector<1xf32>
    %111 = vector.multi_reduction <add>, %110, %cst_38 [1, 2] : vector<1x3x3xf32> to vector<1xf32>
    %112 = vector.shape_cast %111 : vector<1xf32> to vector<1x1x1xf32>
    %113 = vector.extract %112[0, 0, 0] : f32 from vector<1x1x1xf32>
    %cst_39 = arith.constant 6.000000e+00 : f32
    %114 = arith.divf %113, %cst_39 : f32
    %cst_40 = arith.constant 0.000000e+00 : f32
    %115 = vector.broadcast %cst_40 : f32 to vector<3x1xf32>
    %116 = arith.maximumf %33, %115 : vector<3x1xf32>
    %117 = math.sqrt %116 : vector<3x1xf32>
    %118 = arith.mulf %22, %117 : vector<3x1xf32>
    %119 = vector.shape_cast %118 : vector<3x1xf32> to vector<1x3x1xf32>
    %cst_41 = arith.constant dense<0.000000e+00> : vector<1xf32>
    %120 = vector.multi_reduction <add>, %119, %cst_41 [1, 2] : vector<1x3x1xf32> to vector<1xf32>
    %121 = vector.shape_cast %120 : vector<1xf32> to vector<1x1x1xf32>
    %122 = vector.extract %121[0, 0, 0] : f32 from vector<1x1x1xf32>
    %cst_42 = arith.constant 3.000000e+00 : f32
    %123 = arith.divf %122, %cst_42 : f32
    %124 = tpu.iota {dimensions = array<i32: 2>} : vector<1x1x128xi32>
    %c0_i32_43 = arith.constant 0 : i32
    %125 = vector.broadcast %c0_i32_43 : i32 to vector<1x1x128xi32>
    %126 = arith.cmpi eq, %124, %125 : vector<1x1x128xi32>
    %cst_44 = arith.constant 1.000000e+00 : f32
    %127 = arith.mulf %cst_44, %58 : f32
    %cst_45 = arith.constant 0.000000e+00 : f32
    %128 = vector.broadcast %127 : f32 to vector<1x1x128xf32>
    %129 = vector.broadcast %cst_45 : f32 to vector<1x1x128xf32>
    %130 = arith.select %126, %128, %129 : vector<1x1x128xi1>, vector<1x1x128xf32>
    %c1_i32_46 = arith.constant 1 : i32
    %131 = vector.broadcast %c1_i32_46 : i32 to vector<1x1x128xi32>
    %132 = arith.cmpi eq, %124, %131 : vector<1x1x128xi32>
    %cst_47 = arith.constant 1.000000e+00 : f32
    %133 = arith.mulf %cst_47, %90 : f32
    %cst_48 = arith.constant 0.000000e+00 : f32
    %134 = vector.broadcast %133 : f32 to vector<1x1x128xf32>
    %135 = vector.broadcast %cst_48 : f32 to vector<1x1x128xf32>
    %136 = arith.select %132, %134, %135 : vector<1x1x128xi1>, vector<1x1x128xf32>
    %137 = arith.addf %130, %136 : vector<1x1x128xf32>
    %c2_i32 = arith.constant 2 : i32
    %138 = vector.broadcast %c2_i32 : i32 to vector<1x1x128xi32>
    %139 = arith.cmpi eq, %124, %138 : vector<1x1x128xi32>
    %cst_49 = arith.constant 1.000000e-03 : f32
    %140 = arith.mulf %cst_49, %114 : f32
    %cst_50 = arith.constant 0.000000e+00 : f32
    %141 = vector.broadcast %140 : f32 to vector<1x1x128xf32>
    %142 = vector.broadcast %cst_50 : f32 to vector<1x1x128xf32>
    %143 = arith.select %139, %141, %142 : vector<1x1x128xi1>, vector<1x1x128xf32>
    %144 = arith.addf %137, %143 : vector<1x1x128xf32>
    %c3_i32 = arith.constant 3 : i32
    %145 = vector.broadcast %c3_i32 : i32 to vector<1x1x128xi32>
    %146 = arith.cmpi eq, %124, %145 : vector<1x1x128xi32>
    %cst_51 = arith.constant 1.000000e-03 : f32
    %147 = arith.mulf %cst_51, %123 : f32
    %cst_52 = arith.constant 0.000000e+00 : f32
    %148 = vector.broadcast %147 : f32 to vector<1x1x128xf32>
    %149 = vector.broadcast %cst_52 : f32 to vector<1x1x128xf32>
    %150 = arith.select %146, %148, %149 : vector<1x1x128xi1>, vector<1x1x128xf32>
    %151 = arith.addf %144, %150 : vector<1x1x128xf32>
    %c0_53 = arith.constant 0 : index
    %c0_54 = arith.constant 0 : index
    %c0_55 = arith.constant 0 : index
    %152 = vector.load %arg5[%c0_53, %c0_54, %c0_55] : memref<1x1x128xf32, #tpu.memory_space<vmem>>, vector<1x1x128xf32>
    tpu.vector_store %arg5[%c0_53, %c0_54, %c0_55], %151 {strides = array<i32>} : memref<1x1x128xf32, #tpu.memory_space<vmem>>, vector<1x1x128xf32>,
    return
  }
  func.func @transform_0(%arg0: i32, %arg1: memref<2x4xi32, #tpu.memory_space<smem>>) -> (i32, i32, i32) {
    %c0_i32 = arith.constant 0 : i32
    %c0_i32_0 = arith.constant 0 : i32
    %c0_i32_1 = arith.constant 0 : i32
    return %arg0, %c0_i32, %c0_i32_0 : i32, i32, i32
  }
  func.func @transform_1(%arg0: i32, %arg1: memref<2x4xi32, #tpu.memory_space<smem>>) -> (i32, i32, i32) {
    %c0_i32 = arith.constant 0 : i32
    %c0_i32_0 = arith.constant 0 : i32
    %c0_i32_1 = arith.constant 0 : i32
    return %arg0, %c0_i32, %c0_i32_0 : i32, i32, i32
  }
  func.func @transform_2(%arg0: i32, %arg1: memref<2x4xi32, #tpu.memory_space<smem>>) -> (i32, i32, i32) {
    %c0_i32 = arith.constant 0 : i32
    %c0_i32_0 = arith.constant 0 : i32
    %c0_i32_1 = arith.constant 0 : i32
    return %arg0, %c0_i32, %c0_i32_0 : i32, i32, i32
  }
  func.func @transform_3(%arg0: i32, %arg1: memref<2x4xi32, #tpu.memory_space<smem>>) -> (i32, i32, i32) {
    %c0_i32 = arith.constant 0 : i32
    %c0_i32_0 = arith.constant 0 : i32
    %c0_i32_1 = arith.constant 0 : i32
    return %arg0, %c0_i32, %c0_i32_0 : i32, i32, i32
  }
}

</mosaic_0001>

<bundles_post_ra>
// kernel: tpu_custom_call.1
= control target key start
LH: loop header
LB: loop body
LE: loop exit
PB: predicated region body
PF: predicated region fallthrough
CT: control target
= control target key end

     0   :  { %s6057_s0 = inlined_call_operand.hbm [shape: s32[2,4], index: 0, kind: input, shape index: {}]   ;;  %s6058_s1 = inlined_call_operand.hbm [shape: f32[2,8,1024], index: 1, kind: input, shape index: {}]   ;;  %s6059_s2 = inlined_call_operand.hbm [shape: s32[2,1,1024], index: 2, kind: input, shape index: {}]   ;;  %s6060_s3 = inlined_call_operand.hbm [shape: s32[2,1,1024], index: 3, kind: input, shape index: {}]   ;;  %s6061_s4 = inlined_call_operand.hbm [shape: f32[2,1,128], index: 4, kind: output, shape index: {}]  }
   0x1   :  { %6145 = sst [smem:[#allocation100_spill]] %s6059_s2  ;;  %s3728_s17 = scalar_lea.hbm %s6057_s0, 32 }
   0x2   :  { %p3729_p0 = scmp.ne.s32.totalorder %s6057_s0, %s3728_s17  ;;  %p3732_p1 = scmp.lt.u32.totalorder %s3728_s17, %s6057_s0 }
   0x4   :  { %p3734_p2 = pnand %p3732_p1, %p3729_p0 }
   0x6   :  { %3737 = shalt.err (!%p3734_p2)  }
   0x7   :  { %s3918_s22 = smov [#allocation4]  }
   0x8   :  { %10 = dma.hbm_to_smem %s6057_s0, 32, %s3918_s22, [#allocation3] }
   0x9   :  { %3880 = dma.done.wait [#allocation3], 32 }
   0xa   :  { %3881 = vsyncadd [#allocation3], 4294967264 }
   0xb   :  { %12 = sfence }
   0xc   :  { %13 = vsyncpa [#allocation6], 0 }
   0xd   :  { %15 = vsyncpa [#allocation6 + $0x1], 0 }
   0xe   :  { %16 = vsyncpa [#allocation9], 0 }
   0xf   :  { %18 = vsyncpa [#allocation9 + $0x1], 0 }
  0x10   :  { %19 = vsyncpa [#allocation7], 0 }
  0x11   :  { %21 = vsyncpa [#allocation7 + $0x1], 0  ;;  %s3965_s25 = smov 0   ;;  %s3967_s26 = smov 0  }
  0x12   :  { %s3969_s27 = smov 0   ;;  %s3971_s28 = smov 0  }
  0x13 LB: > { %s3986_s0 = sadd.s32 4294967295, %s3908_s28   ;;  %s3304_s29 = sadd.s32 4294967294, %s3908_s28   ;;  %s3908_s28 = sphi %s3971_s28, %s6343_s28   ;;  %s3904_s27 = sphi %s3969_s27, %s6342_s27   ;;  %s3900_s26 = sphi %s3967_s26, %s6341_s26   ;;  %s3896_s25 = sphi %s3965_s25, %s6340_s25  }
  0x14   : > { %s3990_s30 = sadd.s32 1, %s3908_s28   ;;  %s34_s5 = sadd.s32 1, %s3904_s27 }
  0x15   : > { %s31_s6 = ssub.s32 %s3908_s28, %s3990_s30  ;;  %p41_p3 = scmp.ne.s32.totalorder %s3904_s27, %s3900_s26 }
  0x16   : > { %p32_p4 = scmp.eq.s32.totalorder %s31_s6, 0  ;;  %p42_p5 = scmp.eq.s32.totalorder %s3908_s28, 0 }
  0x17   : > { %p47_p6 = scmp.ne.s32.totalorder %s3900_s26, %s3896_s25  ;;  %p48_p7 = scmp.eq.s32.totalorder %s3986_s0, 0 }
  0x18   : > { %s4002_s7 = scalar_select %p32_p4, %s3904_s27, %s34_s5  }
  0x19   : > { %p43_p8 = por %p42_p5, %p41_p3  ;;  %p4004_p9 = por %p48_p7, %p47_p6 }
  0x1a   : > { %6146 = sst [smem:[#allocation16_spill]] %s4002_s7  ;;  %p123_p10 = scmp.eq.s32.totalorder %s3986_s0, 1 }
  0x1b   : > { %s6147_s8 = scalar_select %p4004_p9, 1, 0 }
  0x1c   : > { %p129_p11 = scmp.eq.s32.totalorder %s3304_s29, 1  ;;  %p3519_p13 = scmp.lt.s32.totalorder %s3908_s28, 2 }
  0x1d   : > { %p4011_p0 = por %p123_p10, %p41_p3  ;;  %s4020_s11 = sand.u32 1, %s3904_s27  }
  0x1e   : > { %p4015_p1 = por %p129_p11, %p47_p6  ;;  %p4022_p2 = pnand %p3519_p13, %p43_p8 }
  0x1f   : > { %s6148_s9 = scalar_select %p4011_p0, 1, 0 }
  0x20   : > { %s6149_s10 = scalar_select %p4015_p1, 1, 0 }
  0x21   : > { %s6150_s12 = scalar_select %p4022_p2, 1, 0 }
  0x22   : > { %s168_s13 = sand.u32 1, %s3908_s28   ;;  %s3310_s14 = sshll.u32 %s4020_s11, 3 }
  0x23   : > { %s3410_s15 = sshll.u32 %s3908_s28, 7  ;;  %s6151_s2 = sld [smem:[#allocation100_spill]] }
  0x24   : > { %s172_s19 = scalar_lea.vmem [#allocation8], %s3310_s14  ;;  %s4040_s21 = scalar_lea.sflag [#allocation9], %s168_s13 }
  0x25   : > { %s180_s20 = sshll.u32 %s172_s19, 4  ;;  %p4046_p4 = pneg %p4022_p2  ;;  %s4038_s20 = int_to_ptr.vmem [resolvable:$true] %s180_s20 }
  0x29   : > { %s4034_s18 = scalar_lea.hbm %s6151_s2, %s3410_s15  ;;  %s3743_s5 = scalar_lea.hbm %s6151_s2, 256 }
  0x2a   : > { %s3738_s22 = scalar_lea.hbm %s4034_s18, 128  ;;  %p3744_p7 = scmp.lt.u32.totalorder %s4034_s18, %s6151_s2 }
  0x2b   : > { %p3739_p3 = scmp.ne.s32.totalorder %s4034_s18, %s3738_s22  ;;  %p3745_p8 = scmp.lt.u32.totalorder %s3743_s5, %s3738_s22 }
  0x2c   : > { %p3747_p11 = scmp.lt.u32.totalorder %s3738_s22, %s4034_s18 }
  0x2d   : > { %p3741_p5 = pnand %p4046_p4, %p3739_p3  ;;  %p3746_p10 = por %p3745_p8, %p3744_p7 }
  0x2f   : > { %p3742_p6 = pneg %p3741_p5  ;;  %p3748_p13 = por %p3747_p11, %p3746_p10 }
  0x31   : > { %p3749_p12 = pnand %p3748_p13, %p3742_p6 }
  0x33   : > { %3752 = shalt.err (!%p3749_p12)
}
  0x34   : > { %s3753_s13 = scalar_lea.vmem %s4038_s20, 128  ;;  %s3919_s17 = smov [#allocation8]  }
  0x35   : > { %p3754_p3 = scmp.ne.s32.totalorder %s4038_s20, %s3753_s13  ;;  %s3758_s19 = sshll.u32 %s3919_s17, 4  ;;  %s3759_s19 = int_to_ptr.vmem [resolvable:$false] %s3758_s19 }
  0x36   : > { %s3760_s24 = scalar_lea.vmem %s3759_s19, 256  ;;  %p3761_p0 = scmp.lt.s32.totalorder %s4038_s20, %s3759_s19 }
  0x37   : > { %p3756_p5 = pnand %p3754_p3, %p4046_p4  ;;  %p3762_p9 = scmp.lt.s32.totalorder %s3760_s24, %s3753_s13 }
  0x39   : > { %p3757_p1 = pneg %p3756_p5  ;;  %p3763_p7 = por %p3762_p9, %p3761_p0 }
  0x3b   : > { %p3764_p8 = pnand %p3763_p7, %p3757_p1 }
  0x3d   : > { %3767 = shalt.err (!%p3764_p8)
}
  0x3e   : > { %3511 = dma.hbm_to_vmem [thread:$0]  (!%p4022_p2), %s4034_s18, 128, %s4038_s20, %s4040_s21  }
  0x3f   : > { %s4075_s5 = scalar_lea.hbm %s6060_s3, %s3410_s15  ;;  %p3316_p9 = scmp.ge.s32.totalorder %s3908_s28, 1 }
  0x40   : > { %p204_p12 = scmp.lt.s32.totalorder %s3908_s28, 3  ;;  %s3307_s6 = sshll.u32 %s4020_s11, 6 }
  0x41   : > { %s3409_s16 = sshll.u32 %s3908_s28, 10  ;;  %s153_s18 = scalar_lea.vmem [#allocation5], %s3307_s6 }
  0x42   : > { %p4081_p0 = pnand %p3316_p9, %p204_p12  ;;  %s4088_s24 = scalar_lea.hbm %s6058_s1, %s3409_s16 }
  0x43   : > { %s161_s15 = sshll.u32 %s153_s18, 4  ;;  %s4094_s20 = scalar_lea.vmem [#allocation10], %s3310_s14  ;;  %s4090_s15 = int_to_ptr.vmem [resolvable:$true] %s161_s15 }
  0x44   : > { %s6153_s13 = scalar_select %p4081_p0, 1, 0 }
  0x45   : > { %s199_s22 = sshll.u32 %s4094_s20, 4  ;;  %s150_s29 = scalar_lea.sflag [#allocation6], %s4020_s11  ;;  %s200_s22 = int_to_ptr.vmem [resolvable:$true] %s199_s22 }
  0x46   : > { %s3768_s2 = scalar_lea.hbm %s4088_s24, 1024  ;;  %s3773_s19 = scalar_lea.hbm %s6058_s1, 2048 }
  0x47   : > { %p3769_p1 = scmp.ne.s32.totalorder %s4088_s24, %s3768_s2  ;;  %p3774_p11 = scmp.lt.u32.totalorder %s4088_s24, %s6058_s1 }
  0x48   : > { %p3775_p13 = scmp.lt.u32.totalorder %s3773_s19, %s3768_s2  ;;  %p3777_p5 = scmp.lt.u32.totalorder %s3768_s2, %s4088_s24 }
  0x49   : > { %p3771_p6 = pnand %p3769_p1, %p4046_p4 }
  0x4a   : > { %p3776_p3 = por %p3775_p13, %p3774_p11 }
  0x4b   : > { %p3772_p10 = pneg %p3771_p6 }
  0x4c   : > { %p3778_p7 = por %p3777_p5, %p3776_p3 }
  0x4e   : > { %p3779_p8 = pnand %p3778_p7, %p3772_p10 }
  0x50   : > { %3782 = shalt.err (!%p3779_p8)
}
  0x51   : > { %s3783_s11 = scalar_lea.vmem %s4090_s15, 1024  ;;  %s3920_s14 = smov [#allocation5]  }
  0x52   : > { %p3784_p9 = scmp.ne.s32.totalorder %s4090_s15, %s3783_s11  ;;  %s3788_s18 = sshll.u32 %s3920_s14, 4  ;;  %s3789_s18 = int_to_ptr.vmem [resolvable:$false] %s3788_s18 }
  0x53   : > { %s3790_s7 = scalar_lea.vmem %s3789_s18, 2048  ;;  %p3791_p6 = scmp.lt.s32.totalorder %s4090_s15, %s3789_s18 }
  0x54   : > { %p3786_p12 = pnand %p3784_p9, %p4046_p4  ;;  %p3792_p0 = scmp.lt.s32.totalorder %s3790_s7, %s3783_s11 }
  0x56   : > { %p3787_p1 = pneg %p3786_p12  ;;  %p3793_p11 = por %p3792_p0, %p3791_p6 }
  0x58   : > { %p3794_p13 = pnand %p3793_p11, %p3787_p1 }
  0x5a   : > { %3797 = shalt.err (!%p3794_p13)
}
  0x5b   : > { %3508 = dma.hbm_to_vmem [thread:$0]  (!%p4022_p2), %s4088_s24, 1024, %s4090_s15, %s150_s29  }
  0x5c   : > { %s3798_s2 = scalar_lea.hbm %s4075_s5, 128  ;;  %s3803_s19 = scalar_lea.hbm %s6060_s3, 256 }
  0x5d   : > { %p3799_p10 = scmp.ne.s32.totalorder %s4075_s5, %s3798_s2  ;;  %p3804_p5 = scmp.lt.u32.totalorder %s4075_s5, %s6060_s3 }
  0x5e   : > { %p3805_p7 = scmp.lt.u32.totalorder %s3803_s19, %s3798_s2  ;;  %p3807_p9 = scmp.lt.u32.totalorder %s3798_s2, %s4075_s5 }
  0x5f   : > { %p3801_p3 = pnand %p3799_p10, %p4046_p4 }
  0x60   : > { %p3806_p8 = por %p3805_p7, %p3804_p5 }
  0x61   : > { %p3802_p0 = pneg %p3801_p3 }
  0x62   : > { %p3808_p12 = por %p3807_p9, %p3806_p8 }
  0x64   : > { %p3809_p1 = pnand %p3808_p12, %p3802_p0 }
  0x66   : > { %3812 = shalt.err (!%p3809_p1)
}
  0x67   : > { %s3813_s24 = scalar_lea.vmem %s200_s22, 128  ;;  %s3921_s15 = smov [#allocation10]  }
  0x68   : > { %p3814_p6 = scmp.ne.s32.totalorder %s200_s22, %s3813_s24  ;;  %s3818_s20 = sshll.u32 %s3921_s15, 4  ;;  %s3819_s20 = int_to_ptr.vmem [resolvable:$false] %s3818_s20 }
  0x69   : > { %s3820_s29 = scalar_lea.vmem %s3819_s20, 256  ;;  %p3821_p10 = scmp.lt.s32.totalorder %s200_s22, %s3819_s20 }
  0x6a   : > { %p3816_p11 = pnand %p3814_p6, %p4046_p4  ;;  %p3822_p3 = scmp.lt.s32.totalorder %s3820_s29, %s3813_s24 }
  0x6c   : > { %p3817_p13 = pneg %p3816_p11  ;;  %p3823_p2 = por %p3822_p3, %p3821_p10 }
  0x6e   : > { %p3824_p5 = pnand %p3823_p2, %p3817_p13 }
  0x70   : > { %3827 = shalt.err (!%p3824_p5)
}
  0x71   : > { %p6154_p7 = scmp.ne.s32.totalorder %s6150_s12, 0  ;;  %p6155_p0 = scmp.ne.s32.totalorder %s6153_s13, 0 }
  0x73   : > { %3514 = dma.hbm_to_vmem [thread:$0]  (!%p6154_p7), %s4075_s5, 128, %s200_s22, %s4040_s21  }
  0x74   : > { %208 = sbr.rel (%p6155_p0) target bundleno = 2811 (0xafb), region = 32 }
  0x7b   : > { %s4142_s23 = sand.u32 1, %s3900_s26   ;;  %p6156_p2 = scmp.ne.s32.totalorder %s6147_s8, 0 }
  0x7c   : > { %s3317_s14 = sshll.u32 %s4142_s23, 6  ;;  %s211_s18 = scalar_lea.sflag [#allocation6], %s4142_s23 }
  0x7d   : > { %s4146_s7 = scalar_lea.vmem [#allocation5], %s3317_s14 }
  0x7e   : > { %3883 = dma.done.wait (%p6156_p2), %s211_s18, 1024  }
  0x7f   : > { %3885 = vsyncadd (%p6156_p2), %s211_s18, 4294966272  ;;  %s219_s12 = sand.u32 1, %s3986_s0   ;;  %s3318_s21 = sshll.u32 %s4142_s23, 3 }
  0x80   : > { %s220_s5 = scalar_lea.sflag [#allocation9], %s219_s12  ;;  %s223_s13 = scalar_lea.vmem [#allocation8], %s3318_s21 }
  0x81   : > { %3887 = dma.done.wait (%p6156_p2), %s220_s5, 256  }
  0x82   : > { %3889 = vsyncadd (%p6156_p2), %s220_s5, 4294967040  ;;  %v274_v0 = vlaneseq  ;;  %v3922_v1 = vmov 0.0   ;;  %v4172_v6 = vld [vmem:[%s4146_s7 + $0x8] sm:$0xff]  ;;  %v4175_v7 = vld [vmem:[%s4146_s7] sm:$0xff]  ;;  %vm388_vm2 = vcmask 1042432   ;;  %v3923_v16 = vmov 1.0  }
  0x83   : > { %821 = vmatprep.mubr.f32.mxu1 %v3922_v1  ;;  %v272_v8 = vld [vmem:[%s223_s13] sm:$0xff]  ;;  %410 = vmatprep.subr.mxu0 %v4172_v6  ;;  %v4181_v11 = vld [vmem:[%s4146_s7 + $0x18] sm:$0xff]  ;;  %v4190_v13 = vld [vmem:[%s4146_s7 + $0x10] sm:$0xff]  ;;  %vm753_vm9 = vcmask 64512   ;;  %vm749_vm10 = vcmask 59392   ;;  %vm3924_vm11 = vmmov 0   ;;  %v692_v61 = vmul.f32 %v4175_v7, %v4175_v7 }
  0x84   : > { %v4162_v2 = vshrl.u32 %v274_v0, 7  ;;  %411 = vmatpush1.xpose.msra.mxu0 %v4175_v7  ;;  %757 = vmatprep.subr.mxu1 %v4172_v6  ;;  %v4200_v17 = vld [vmem:[%s4146_s7 + $0x28] sm:$0xff]  ;;  %v4226_v27 = vld [vmem:[%s4146_s7 + $0x20] sm:$0xff]  ;;  %v4234_v31 = vld [vmem:[%s4146_s7 + $0x38] sm:$0xff]  ;;  %v693_v62 = vmul.f32 %v4172_v6, %v4172_v6  ;;  %s4443_s8 = scalar_lea.vmem [#allocation10], %s3318_s21  ;;  %s4513_s6 = smov 0  }
  0x85   : > { %480 = vmatprep.subr.mxu0 %v4181_v11  ;;  %758 = vmatpush1.msra.mxu1 %v4175_v7  ;;  %v4258_v41 = vld [vmem:[%s4146_s7 + $0x30] sm:$0xff]  ;;  %v700_v63 = vrot.slane %v692_v61, 4  ;;  %v697_v7 = vmul.f32 %v4200_v17, %v4200_v17  ;;  %v699_v6 = vmul.f32 %v4234_v31, %v4234_v31 }
  0x86   : > { %6157 = vst [vmem:[#allocation17_spill] sm:$0xff] %v4162_v2  ;;  %v4165_v3 = vsub.s32 0, %v4162_v2  ;;  %v4168_v4 = vsub.s32 1, %v4162_v2  ;;  %v286_v5 = vsub.s32 2, %v4162_v2  ;;  %828 = vmatprep.subr.mxu1 %v4181_v11  ;;  %v290_v20 = vsub.s32 3, %v4162_v2 }
  0x87   : > { %v298_v22 = vsub.s32 5, %v4162_v2  ;;  %v294_v28 = vsub.s32 4, %v4162_v2  ;;  %v306_v32 = vsub.s32 7, %v4162_v2  ;;  %v302_v34 = vsub.s32 6, %v4162_v2 }
  0x88   : > { %6158 = vst [vmem:[#allocation18_spill] sm:$0xff] %v4165_v3  ;;  %6159 = vst [vmem:[#allocation19_spill] sm:$0xff] %v4168_v4  ;;  %v279_v9 = vrot.slane %v272_v8, %v4165_v3  ;;  %v283_v10 = vrot.slane %v272_v8, %v4168_v4  ;;  %v287_v12 = vrot.slane %v272_v8, %v286_v5 }
  0x89   : > { %v291_v25 = vrot.slane %v272_v8, %v290_v20  ;;  %v299_v26 = vrot.slane %v272_v8, %v298_v22  ;;  %v295_v35 = vrot.slane %v272_v8, %v294_v28  ;;  %v307_v38 = vrot.slane %v272_v8, %v306_v32 }
  0x8a   : > { %vm308_vm0 = vcmp.eq.s32.totalorder %v279_v9, %v4162_v2  ;;  %vm309_vm1 = vcmp.eq.s32.totalorder %v283_v10, %v4162_v2  ;;  %vm310_vm3 = vcmp.eq.s32.totalorder %v287_v12, %v4162_v2  ;;  %v303_v39 = vrot.slane %v272_v8, %v302_v34 }
  0x8b   : > { %v4194_v14 = vsel %vm308_vm0, 1.0, %v3922_v1  ;;  %v4197_v15 = vsel %vm309_vm1, 1.0, %v3922_v1  ;;  %3337 = vmatprep.mubr.msk.f32.mxu0 %vm309_vm1, %v3923_v16  ;;  %v4214_v21 = vsel %vm310_vm3, 1.0, %v3922_v1  ;;  %vm311_vm4 = vcmp.eq.s32.totalorder %v291_v25, %v4162_v2 }
  0x8c   : > { %3338 = vmatmul.mubr.msk.f32.vlgmr.msra.gmra.mrb[0].mxu0 %vm308_vm0, %v3923_v16  ;;  %v389_v18 = vsel %vm388_vm2, %v4194_v14, 0.0  ;;  %v390_v19 = vsel %vm388_vm2, %v4197_v15, 0.0  ;;  %v392_v24 = vsel %vm388_vm2, %v4214_v21, 0.0  ;;  %v4230_v30 = vsel %vm311_vm4, 1.0, %v3922_v1 }
  0x8d   : > { %481 = vmatpush1.xpose.msra.mxu0 %v4190_v13  ;;  %v391_v23 = vadd.f32 %v390_v19, %v389_v18  ;;  %3339 = vmatprep.mubr.msk.f32.mxu0 %vm311_vm4, %v3923_v16  ;;  %vm313_vm5 = vcmp.eq.s32.totalorder %v299_v26, %v4162_v2  ;;  %v394_v33 = vsel %vm388_vm2, %v4230_v30, 0.0  ;;  %vm312_vm6 = vcmp.eq.s32.totalorder %v295_v35, %v4162_v2 }
  0x8e   : > { %550 = vmatprep.subr.mxu0 %v4200_v17  ;;  %v4247_v37 = vsel %vm313_vm5, 1.0, %v3922_v1  ;;  %v4255_v40 = vsel %vm312_vm6, 1.0, %v3922_v1  ;;  %vm315_vm7 = vcmp.eq.s32.totalorder %v307_v38, %v4162_v2  ;;  %vm314_vm8 = vcmp.eq.s32.totalorder %v303_v39, %v4162_v2 }
  0x8f   : > { %v393_v29 = vadd.f32 %v392_v24, %v391_v23  ;;  %v396_v42 = vsel %vm388_vm2, %v4255_v40, 0.0  ;;  %v398_v43 = vsel %vm388_vm2, %v4247_v37, 0.0  ;;  %v4267_v44 = vsel %vm314_vm8, 1.0, %v3922_v1 }
  0x90   : > { %v4270_v45 = vsel %vm315_vm7, 1.0, %v3922_v1  ;;  %v400_v47 = vsel %vm388_vm2, %v4267_v44, 0.0  ;;  %v694_v8 = vmul.f32 %v4190_v13, %v4190_v13  ;;  %v706_v9 = vrot.slane %v693_v62, 4 }
  0x91   : > { %v395_v36 = vadd.f32 %v394_v33, %v393_v29  ;;  %v402_v49 = vsel %vm388_vm2, %v4270_v45, 0.0  ;;  %v695_v10 = vmul.f32 %v4181_v11, %v4181_v11  ;;  %v701_v12 = vadd.f32 %v700_v63, %v692_v61 }
  0x92   : > { %v696_v18 = vmul.f32 %v4226_v27, %v4226_v27  ;;  %v707_v19 = vadd.f32 %v706_v9, %v693_v62  ;;  %v730_v33 = vrot.slane %v697_v7, 4  ;;  %v742_v35 = vrot.slane %v699_v6, 4 }
  0x93   : > { %v397_v46 = vadd.f32 %v396_v42, %v395_v36  ;;  %v718_v23 = vrot.slane %v695_v10, 4  ;;  %v702_v24 = vrot.slane %v701_v12, 2 }
  0x94   : > { %3340 = vmatmul.mubr.msk.f32.vlgmr.msra.gmra.mrb[0].mxu0 %vm310_vm3, %v3923_v16  ;;  %v724_v26 = vrot.slane %v696_v18, 4  ;;  %v708_v11 = vrot.slane %v707_v19, 2 }
  0x95   : > { %551 = vmatpush1.xpose.msra.mxu0 %v4226_v27  ;;  %3341 = vmatprep.mubr.msk.f32.mxu0 %vm313_vm5, %v3923_v16  ;;  %v399_v48 = vadd.f32 %v398_v43, %v397_v46  ;;  %v719_v29 = vadd.f32 %v718_v23, %v695_v10  ;;  %v743_v46 = vadd.f32 %v742_v35, %v699_v6 }
  0x96   : > { %620 = vmatprep.subr.mxu0 %v4234_v31  ;;  %v725_v39 = vadd.f32 %v724_v26, %v696_v18  ;;  %v709_v42 = vadd.f32 %v708_v11, %v707_v19 }
  0x97   : > { %v401_v50 = vadd.f32 %v400_v47, %v399_v48  ;;  %v720_v43 = vrot.slane %v719_v29, 2 }
  0x99   : > { %v403_v51 = vadd.f32 %v402_v49, %v401_v50 }
  0x9b   : > { %404 = vadd.xlane.f32.xlu0 %v403_v51  ;;  %v710_v51 = vrot.slane %v709_v42, 1 }
  0x9c   : > { %3342 = vmatmul.mubr.msk.f32.vlgmr.msra.gmra.mrb[0].mxu0 %vm312_vm6, %v3923_v16 }
  0x9d   : > { %621 = vmatpush1.xpose.msra.mxu0 %v4258_v41  ;;  %3343 = vmatprep.mubr.msk.f32.mxu0 %vm315_vm7, %v3923_v16  ;;  %v711_v61 = vadd.f32 %v710_v51, %v709_v42 }
  0xa4   : > { %3344 = vmatmul.mubr.msk.f32.vlgmr.msra.gmra.mrb[0].mxu0 %vm314_vm8, %v3923_v16  ;;  %v712_v16 = vrot.slane %v694_v8, 4 }
  0xa6   : > { %v713_v25 = vadd.f32 %v712_v16, %v694_v8 }
  0xa8   : > { %v714_v38 = vrot.slane %v713_v25, 2 }
  0xaa   : > { %v715_v49 = vadd.f32 %v714_v38, %v713_v25 }
 0x128   : > { %v405_v52 = vpop.xlane.xlu0 %404 }
 0x129   : > { %v409_v53 = vmax.f32 %v405_v52, 1.0  ;;  %vm406_vm12 = vcmp.gt.f32.partialorder %v405_v52, 0.0  ;;  %v744_v52 = vrot.slane %v743_v46, 2 }
 0x12a   : > { %v4297_v60 = vsel %vm406_vm12, 1.0, %v3922_v1 }
 0x12b   : > { %3576 = vrcp.f32 %v409_v53  ;;  %6160 = vst [vmem:[#allocation20_spill] sm:$0xff] %v4297_v60  ;;  %v745_v63 = vadd.f32 %v744_v52, %v743_v46 }
 0x135   : > { %v4277_v54 = vpop.eup %3576 }
 0x177   : > { %v686_v55 = vpop.f32.mrb[0].mxu0 }
 0x178   : > { %v691_v56 = vmul.f32 %v4277_v54, %v686_v55  ;;  %v688_v57 = vpop.f32.mrb[1].mxu0 }
 0x17a   : > { %3345 = vmatmul.mubr.msk.f32.vlgmr.msra.gmra.mrb[0].mxu1 %vm753_vm9, %v691_v56  ;;  %v748_v58 = vmul.f32 %v691_v56, %v691_v56 }
 0x17b   : > { %829 = vmatpush1.msra.mxu1 %v4190_v13  ;;  %892 = vmatprep.mubr.f32.mxu1 %v3922_v1  ;;  %v698_v13 = vmul.f32 %v4258_v41, %v4258_v41 }
 0x17c   : > { %v750_v59 = vsel %vm749_vm10, %v748_v58, 0.0  ;;  %899 = vmatprep.subr.mxu1 %v4200_v17  ;;  %v731_v17 = vadd.f32 %v730_v33, %v697_v7 }
 0x17d   : > { %751 = vadd.xlane.f32.xlu0 %v750_v59  ;;  %v736_v36 = vrot.slane %v698_v13, 4 }
 0x17e   : > { %3346 = vmatmul.mubr.msk.f32.vlgmr.msra.gmra.mrb[2].mxu1 %vm753_vm9, %v691_v56  ;;  %v732_v50 = vrot.slane %v731_v17, 2 }
 0x17f   : > { %900 = vmatpush1.msra.mxu1 %v4226_v27  ;;  %963 = vmatprep.mubr.f32.mxu1 %v3922_v1  ;;  %v703_v27 = vadd.f32 %v702_v24, %v701_v12  ;;  %v737_v47 = vadd.f32 %v736_v36, %v698_v13 }
 0x180   : > { %970 = vmatprep.subr.mxu1 %v4234_v31  ;;  %v726_v31 = vrot.slane %v725_v39, 2  ;;  %v733_v58 = vadd.f32 %v732_v50, %v731_v17 }
 0x181   : > { %v704_v48 = vrot.slane %v703_v27, 1  ;;  %v738_v53 = vrot.slane %v737_v47, 2 }
 0x182   : > { %3347 = vmatmul.mubr.msk.f32.vlgmr.msra.gmra.mrb[4].mxu1 %vm753_vm9, %v691_v56  ;;  %v727_v57 = vadd.f32 %v726_v31, %v725_v39  ;;  %v734_v13 = vrot.slane %v733_v58, 1 }
 0x183   : > { %971 = vmatpush1.msra.mxu1 %v4258_v41  ;;  %1034 = vmatprep.mubr.f32.mxu1 %v3922_v1  ;;  %v721_v41 = vadd.f32 %v720_v43, %v719_v29  ;;  %v705_v55 = vadd.f32 %v704_v48, %v703_v27  ;;  %v739_v9 = vadd.f32 %v738_v53, %v737_v47  ;;  %v746_v29 = vrot.slane %v745_v63, 1 }
 0x184   : > { %3414 = vmatprep.subr.mxu1 %v3922_v1  ;;  %v728_v19 = vrot.slane %v727_v57, 1  ;;  %v735_v17 = vadd.f32 %v734_v13, %v733_v58 }
 0x185   : > { %v722_v62 = vrot.slane %v721_v41, 1  ;;  %v740_v11 = vrot.slane %v739_v9, 1 }
 0x186   : > { %3348 = vmatmul.mubr.msk.f32.vlgmr.msra.gmra.mrb[6].mxu1 %vm753_vm9, %v691_v56  ;;  %v729_v38 = vadd.f32 %v728_v19, %v727_v57 }
 0x187   : > { %3416 = vmatprep.mubr.msk.f32.mxu1 %vm3924_vm11, %v3922_v1  ;;  %v723_v6 = vadd.f32 %v722_v62, %v721_v41  ;;  %v741_v51 = vadd.f32 %v740_v11, %v739_v9 }
 0x18a   : > { %3415 = vmatpush3.xpose.msk.msra.mxu1 %vm753_vm9, %v691_v56 }
 0x18d   : > { %3417 = vmatmul.mubr.msk.f32.vlgmr.msra.gmra.mrb[8].mxu1 %vm753_vm9, %v691_v56  ;;  %v716_v56 = vrot.slane %v715_v49, 1 }
 0x18f   : > { %v717_v18 = vadd.f32 %v716_v56, %v715_v49  ;;  %v747_v56 = vadd.f32 %v746_v29, %v745_v63 }
 0x1aa   : > { %1320 = vxpose.xlu0.b32.start.end [1/1] (short) (narrow) %v4297_v60, 8 }
 0x20a   : > { %v4316_v59 = vpop.xlane.xlu0 %751 }
 0x20b   : > { %6161 = vst [vmem:[#allocation21_spill] sm:$0xff] %v4316_v59  ;;  %v1041_v10 = vadd.f32 %v4316_v59, %v705_v55  ;;  %v1042_v23 = vadd.f32 %v4316_v59, %v711_v61  ;;  %v1043_v35 = vadd.f32 %v4316_v59, %v717_v18  ;;  %v1044_v42 = vadd.f32 %v4316_v59, %v723_v6 }
 0x20c   : > { %v1045_v49 = vadd.f32 %v4316_v59, %v729_v38  ;;  %v1046_v53 = vadd.f32 %v4316_v59, %v735_v17 }
 0x24d   : > { %v823_v8 = vpop.f32.mrb[0].mxu1 }
 0x24e   : > { %v1049_v12 = vmul.f32 2.0, %v823_v8  ;;  %v825_v16 = vpop.f32.mrb[1].mxu1  ;;  %v1047_v8 = vadd.f32 %v4316_v59, %v741_v51 }
 0x24f   : > { %v1050_v7 = vmul.f32 2.0, %v825_v16  ;;  %v1048_v16 = vadd.f32 %v4316_v59, %v747_v56 }
 0x250   : > { %v1057_v24 = vsub.f32 %v1041_v10, %v1049_v12 }
 0x251   : > { %v1058_v25 = vsub.f32 %v1042_v23, %v1050_v7  ;;  %v894_v26 = vpop.f32.mrb[2].mxu1 }
 0x252   : > { %v4320_v33 = vmax.f32 %v1057_v24, 0.0  ;;  %v1051_v36 = vmul.f32 2.0, %v894_v26  ;;  %v896_v27 = vpop.f32.mrb[3].mxu1 }
 0x253   : > { %v4323_v39 = vmax.f32 %v1058_v25, 0.0  ;;  %v1052_v43 = vmul.f32 2.0, %v896_v27 }
 0x254   : > { %3578 = vrsqrt.f32 %v4320_v33  ;;  %v1059_v46 = vsub.f32 %v1043_v35, %v1051_v36  ;;  %vm1075_vm13 = vcmp.eq.f32.partialorder %v4320_v33, inf  ;;  %v1078_v18 = vand.u32 2147483648, %v4320_v33 }
 0x255   : > { %3580 = vrsqrt.f32 %v4323_v39  ;;  %v1060_v47 = vsub.f32 %v1044_v42, %v1052_v43  ;;  %v965_v31 = vpop.f32.mrb[4].mxu1  ;;  %vm1082_vm14 = vcmp.eq.f32.partialorder %v4323_v39, inf  ;;  %v1085_v23 = vand.u32 2147483648, %v4323_v39 }
 0x256   : > { %v4328_v48 = vmax.f32 %v1059_v46, 0.0  ;;  %v1053_v41 = vmul.f32 2.0, %v965_v31  ;;  %v967_v50 = vpop.f32.mrb[5].mxu1  ;;  %vm1077_vm15 = vcmp.eq.f32.partialorder %v4320_v33, 0.0  ;;  %vm1084_vm0 = vcmp.eq.f32.partialorder %v4323_v39, 0.0 }
 0x257   : > { %v4331_v52 = vmax.f32 %v1060_v47, 0.0  ;;  %v1054_v55 = vmul.f32 2.0, %v967_v50 }
 0x258   : > { %3582 = vrsqrt.f32 %v4328_v48  ;;  %v1061_v57 = vsub.f32 %v1045_v49, %v1053_v41  ;;  %vm1089_vm1 = vcmp.eq.f32.partialorder %v4328_v48, inf  ;;  %vm1091_vm3 = vcmp.eq.f32.partialorder %v4328_v48, 0.0 }
 0x259   : > { %3584 = vrsqrt.f32 %v4331_v52  ;;  %v1062_v58 = vsub.f32 %v1046_v53, %v1054_v55  ;;  %v1036_v61 = vpop.f32.mrb[6].mxu1  ;;  %v1092_v11 = vand.u32 2147483648, %v4328_v48  ;;  %vm1096_vm4 = vcmp.eq.f32.partialorder %v4331_v52, inf }
 0x25a   : > { %v4336_v62 = vmax.f32 %v1061_v57, 0.0  ;;  %v1055_v10 = vmul.f32 2.0, %v1036_v61  ;;  %v1038_v12 = vpop.f32.mrb[7].mxu1  ;;  %vm1098_vm5 = vcmp.eq.f32.partialorder %v4331_v52, 0.0  ;;  %v1099_v36 = vand.u32 2147483648, %v4331_v52 }
 0x25b   : > { %v4340_v9 = vmax.f32 %v1062_v58, 0.0  ;;  %v1056_v63 = vmul.f32 2.0, %v1038_v12 }
 0x25c   : > { %3586 = vrsqrt.f32 %v4336_v62  ;;  %v1063_v19 = vsub.f32 %v1047_v8, %v1055_v10  ;;  %vm1103_vm6 = vcmp.eq.f32.partialorder %v4336_v62, inf  ;;  %vm1105_vm7 = vcmp.eq.f32.partialorder %v4336_v62, 0.0 }
 0x25d   : > { %3588 = vrsqrt.f32 %v4340_v9  ;;  %v1064_v7 = vsub.f32 %v1048_v16, %v1056_v63  ;;  %v1106_v46 = vand.u32 2147483648, %v4336_v62  ;;  %vm1110_vm8 = vcmp.eq.f32.partialorder %v4340_v9, inf }
 0x25e   : > { %v3579_v6 = vpop.eup %3578  ;;  %v4349_v13 = vmax.f32 %v1063_v19, 0.0  ;;  %vm1112_vm10 = vcmp.eq.f32.partialorder %v4340_v9, 0.0  ;;  %v1113_v50 = vand.u32 2147483648, %v4340_v9 }
 0x25f   : > { %v3581_v24 = vpop.eup %3580  ;;  %v1074_v25 = vmul.f32 %v3579_v6, %v4320_v33  ;;  %v4355_v26 = vmax.f32 %v1064_v7, 0.0 }
 0x260   : > { %v1081_v29 = vmul.f32 %v3581_v24, %v4323_v39  ;;  %3590 = vrsqrt.f32 %v4349_v13  ;;  %v4361_v35 = vpop.f32.mrb[8].mxu1  ;;  %vm1117_vm11 = vcmp.eq.f32.partialorder %v4349_v13, inf  ;;  %vm1119_vm12 = vcmp.eq.f32.partialorder %v4349_v13, 0.0 }
 0x261   : > { %3592 = vrsqrt.f32 %v4355_v26  ;;  %v3418_v27 = vpop.f32.mrb[9].mxu1  ;;  %v1076_v38 = vsel %vm1075_vm13, %v4320_v33, %v1074_v25  ;;  %v1120_v55 = vand.u32 2147483648, %v4349_v13  ;;  %vm1124_vm13 = vcmp.eq.f32.partialorder %v4355_v26, inf }
 0x262   : > { %v3583_v42 = vpop.eup %3582  ;;  %v1079_v43 = vsel %vm1077_vm15, %v1078_v18, %v1076_v38  ;;  %v1083_v17 = vsel %vm1082_vm14, %v4323_v39, %v1081_v29  ;;  %vm1126_vm14 = vcmp.eq.f32.partialorder %v4355_v26, 0.0  ;;  %v1127_v7 = vand.u32 2147483648, %v4355_v26 }
 0x263   : > { %v3585_v47 = vpop.eup %3584  ;;  %v1088_v31 = vmul.f32 %v3583_v42, %v4328_v48  ;;  %v1086_v49 = vsel %vm1084_vm0, %v1085_v23, %v1083_v17  ;;  %v3349_v41 = vadd.f32 -0.5, %v1079_v43 }
 0x264   : > { %v1095_v33 = vmul.f32 %v3585_v47, %v4331_v52  ;;  %v3350_v51 = vadd.f32 -0.5, %v1086_v49 }
 0x265   : > { %v1090_v53 = vsel %vm1089_vm1, %v4328_v48, %v1088_v31  ;;  %v1137_v39 = vmax.f32 %v3349_v41, 0.0  ;;  %vm1358_vm1 = vcmask 18432  }
 0x266   : > { %v3587_v56 = vpop.eup %3586  ;;  %v1093_v57 = vsel %vm1091_vm3, %v1092_v11, %v1090_v53  ;;  %v1097_v58 = vsel %vm1096_vm4, %v4331_v52, %v1095_v33  ;;  %v1138_v61 = vmax.f32 %v3350_v51, 0.0  ;;  %1389 = vst.msk [vmem:[#allocation2] sm:$0x7] %vm1358_vm1, %v3922_v1 }
 0x267   : > { %v3589_v8 = vpop.eup %3588  ;;  %v1100_v10 = vsel %vm1098_vm5, %v1099_v36, %v1097_v58  ;;  %v1102_v12 = vmul.f32 %v3587_v56, %v4336_v62  ;;  %v3351_v16 = vadd.f32 -0.5, %v1093_v57  ;;  %v1145_v63 = vmul.f32 %v1137_v39, %v1137_v39 }
 0x268   : > { %v1109_v18 = vmul.f32 %v3589_v8, %v4340_v9  ;;  %v3352_v48 = vadd.f32 -0.5, %v1100_v10  ;;  %v1146_v19 = vmul.f32 %v1138_v61, %v1138_v61 }
 0x269   : > { %v1104_v23 = vsel %vm1103_vm6, %v4336_v62, %v1102_v12  ;;  %v1139_v6 = vmax.f32 %v3351_v16, 0.0  ;;  %v1153_v52 = vmul.f32 %v4194_v14, %v1145_v63 }
 0x26a   : > { %v3591_v24 = vpop.eup %3590  ;;  %v1107_v25 = vsel %vm1105_vm7, %v1106_v46, %v1104_v23  ;;  %v1111_v11 = vsel %vm1110_vm8, %v4340_v9, %v1109_v18  ;;  %v1140_v29 = vmax.f32 %v3352_v48, 0.0  ;;  %v1154_v36 = vmul.f32 %v4197_v15, %v1146_v19 }
 0x26b   : > { %v3593_v27 = vpop.eup %3592  ;;  %v1114_v38 = vsel %vm1112_vm10, %v1113_v50, %v1111_v11  ;;  %v1116_v42 = vmul.f32 %v3591_v24, %v4349_v13  ;;  %v3353_v43 = vadd.f32 -0.5, %v1107_v25  ;;  %v1147_v17 = vmul.f32 %v1139_v6, %v1139_v6  ;;  %v273_v25 = vld [vmem:[%s4443_s8] sm:$0xff] }
 0x26c   : > { %v1123_v14 = vmul.f32 %v3593_v27, %v4355_v26  ;;  %v3354_v47 = vadd.f32 -0.5, %v1114_v38  ;;  %v1148_v62 = vmul.f32 %v1140_v29, %v1140_v29  ;;  %v1161_v46 = vsel %vm388_vm2, %v1153_v52, 0.0 }
 0x26d   : > { %v1118_v31 = vsel %vm1117_vm11, %v4349_v13, %v1116_v42  ;;  %v1141_v49 = vmax.f32 %v3353_v43, 0.0  ;;  %v1155_v15 = vmul.f32 %v4214_v21, %v1147_v17  ;;  %v1162_v9 = vsel %vm388_vm2, %v1154_v36, 0.0 }
 0x26e   : > { %v1121_v41 = vsel %vm1119_vm12, %v1120_v55, %v1118_v31  ;;  %v1125_v33 = vsel %vm1124_vm13, %v4355_v26, %v1123_v14  ;;  %v1142_v50 = vmax.f32 %v3354_v47, 0.0  ;;  %v1156_v51 = vmul.f32 %v4230_v30, %v1148_v62 }
 0x26f   : > { %v1128_v53 = vsel %vm1126_vm14, %v1127_v7, %v1125_v33  ;;  %v3355_v39 = vadd.f32 -0.5, %v1121_v41  ;;  %v1149_v56 = vmul.f32 %v1141_v49, %v1141_v49  ;;  %v1163_v57 = vadd.f32 %v1162_v9, %v1161_v46 }
 0x270   : > { %v3356_v58 = vadd.f32 -0.5, %v1128_v53  ;;  %v1150_v21 = vmul.f32 %v1142_v50, %v1142_v50  ;;  %v1164_v61 = vsel %vm388_vm2, %v1155_v15, 0.0  ;;  %v1166_v13 = vsel %vm388_vm2, %v1156_v51, 0.0 }
 0x271   : > { %v1143_v55 = vmax.f32 %v3355_v39, 0.0  ;;  %v1157_v8 = vmul.f32 %v4255_v40, %v1149_v56  ;;  %v1165_v10 = vadd.f32 %v1164_v61, %v1163_v57  ;;  %v339_v11 = vrot.slane %v273_v25, %v4168_v4 }
 0x272   : > { %v1144_v12 = vmax.f32 %v3356_v58, 0.0  ;;  %v1158_v16 = vmul.f32 %v4247_v37, %v1150_v21  ;;  %v347_v36 = vrot.slane %v273_v25, %v290_v20  ;;  %v343_v27 = vrot.slane %v273_v25, %v286_v5 }
 0x273   : > { %v1151_v30 = vmul.f32 %v1143_v55, %v1143_v55  ;;  %v1167_v26 = vadd.f32 %v1166_v13, %v1165_v10  ;;  %v1168_v63 = vsel %vm388_vm2, %v1157_v8, 0.0  ;;  %vm365_vm0 = vcmp.eq.s32.totalorder %v339_v11, %v4162_v2 }
 0x274   : > { %v1152_v18 = vmul.f32 %v1144_v12, %v1144_v12  ;;  %v1170_v48 = vsel %vm388_vm2, %v1158_v16, 0.0  ;;  %v3329_v29 = vsel %vm365_vm0, 1.0, %v3922_v1  ;;  %v351_v43 = vrot.slane %v273_v25, %v294_v28  ;;  %v1336_v16 = vpop.trf.xlu0 }
 0x275   : > { %v1159_v19 = vmul.f32 %v4267_v44, %v1151_v30  ;;  %v1169_v23 = vadd.f32 %v1168_v63, %v1167_v26  ;;  %v335_v44 = vrot.slane %v273_v25, %v4165_v3  ;;  %v1373_v42 = vsel %vm388_vm2, %v3329_v29, 0.0 }
 0x276   : > { %v1160_v7 = vmul.f32 %v4270_v45, %v1152_v18  ;;  %v355_v17 = vrot.slane %v273_v25, %v298_v22  ;;  %vm367_vm3 = vcmp.eq.s32.totalorder %v347_v36, %v4162_v2  ;;  %vm366_vm4 = vcmp.eq.s32.totalorder %v343_v27, %v4162_v2 }
 0x277   : > { %v1171_v6 = vadd.f32 %v1170_v48, %v1169_v23  ;;  %v1172_v40 = vsel %vm388_vm2, %v1159_v19, 0.0  ;;  %vm364_vm15 = vcmp.eq.s32.totalorder %v335_v44, %v4162_v2  ;;  %vm368_vm5 = vcmp.eq.s32.totalorder %v351_v43, %v4162_v2 }
 0x278   : > { %v1174_v52 = vsel %vm388_vm2, %v1160_v7, 0.0  ;;  %v3328_v45 = vsel %vm364_vm15, 1.0, %v3922_v1  ;;  %vm369_vm6 = vcmp.eq.s32.totalorder %v355_v17, %v4162_v2  ;;  %v3330_v5 = vsel %vm366_vm4, 1.0, %v3922_v1 }
 0x279   : > { %v1173_v24 = vadd.f32 %v1172_v40, %v1171_v6  ;;  %v1372_v38 = vsel %vm388_vm2, %v3328_v45, 0.0  ;;  %v3331_v28 = vsel %vm367_vm3, 1.0, %v3922_v1  ;;  %v3332_v14 = vsel %vm368_vm5, 1.0, %v3922_v1 }
 0x27a   : > { %v1374_v20 = vadd.f32 %v1373_v42, %v1372_v38  ;;  %v1375_v22 = vsel %vm388_vm2, %v3330_v5, 0.0  ;;  %v3333_v47 = vsel %vm369_vm6, 1.0, %v3922_v1  ;;  %v1377_v46 = vsel %vm388_vm2, %v3331_v28, 0.0 }
 0x27b   : > { %v1175_v37 = vadd.f32 %v1174_v52, %v1173_v24  ;;  %v1379_v31 = vsel %vm388_vm2, %v3332_v14, 0.0  ;;  %v1381_v15 = vsel %vm388_vm2, %v3333_v47, 0.0  ;;  %vm1180_vm7 = vcmask 2048  }
 0x27c   : > { %v1376_v62 = vadd.f32 %v1375_v22, %v1374_v20  ;;  %v1306_v57 = vmul.f32 2.0, %v4361_v35  ;;  %v359_v13 = vrot.slane %v273_v25, %v302_v34  ;;  %v4485_v8 = vand.u32 127, %v274_v0 }
 0x27d   : > { %1176 = vadd.xlane.f32.xlu1 %v1175_v37  ;;  %v363_v35 = vrot.slane %v273_v25, %v306_v32  ;;  %v1355_v0 = vrot.slane %v1336_v16, %v4165_v3 }
 0x27e   : > { %v1378_v49 = vadd.f32 %v1377_v46, %v1376_v62  ;;  %6162 = vst [vmem:[#allocation22_spill] sm:$0xff] %v4485_v8  ;;  %vm370_vm11 = vcmp.eq.s32.totalorder %v359_v13, %v4162_v2  ;;  %vm1196_vm12 = vcmp.lt.s32.totalorder %v4162_v2, %v4485_v8 }
 0x27f   : > { %v3334_v26 = vsel %vm370_vm11, 1.0, %v3922_v1  ;;  %vm371_vm13 = vcmp.eq.s32.totalorder %v363_v35, %v4162_v2  ;;  %v4496_v18 = vsel %vm1196_vm12, 1.0, %v3922_v1  ;;  %v1356_v23 = vmul.f32 %v4297_v60, %v1355_v0 }
 0x280   : > { %v1380_v9 = vadd.f32 %v1379_v31, %v1378_v49  ;;  %6163 = vst [vmem:[#allocation23_spill] sm:$0xff] %v4496_v18  ;;  %v1383_v32 = vsel %vm388_vm2, %v3334_v26, 0.0  ;;  %v3335_v19 = vsel %vm371_vm13, 1.0, %v3922_v1 }
 0x281   : > { %v1385_v52 = vsel %vm388_vm2, %v3335_v19, 0.0 }
 0x282   : > { %v1382_v41 = vadd.f32 %v1381_v15, %v1380_v9 }
 0x284   : > { %v1384_v6 = vadd.f32 %v1383_v32, %v1382_v41 }
 0x286   : > { %v1386_v37 = vadd.f32 %v1385_v52, %v1384_v6 }
 0x2b0   : > { %1269 = vxpose.xlu1.b32.start.end [1/1] (short) (narrow) %v4316_v59, 8 }
 0x30a   : > { %v1177_v33 = vpop.xlane.xlu1 %1176 }
 0x30b   : > { %v1178_v50 = vmul.f32 %v4297_v60, %v1177_v33 }
 0x30d   : > { %v1179_v51 = vmul.f32 %v4277_v54, %v1178_v50 }
 0x30f   : > { %v1181_v53 = vsel %vm1180_vm7, %v1179_v51, 0.0 }
 0x310   : > { %1182 = vadd.xlane.f32.xlu0 %v1181_v53 }
 0x330   : > { %v1285_v39 = vpop.trf.xlu1 }
 0x331   : > { %v1304_v56 = vrot.slane %v1285_v39, %v4165_v3 }
 0x333   : > { %v1305_v58 = vadd.f32 %v1304_v56, %v4316_v59 }
 0x335   : > { %v1307_v21 = vsub.f32 %v1305_v58, %v1306_v57 }
 0x337   : > { %v1308_v61 = vmax.f32 %v1307_v21, 0.0 }
 0x339   : > { %3594 = vrsqrt.f32 %v1308_v61  ;;  %vm1311_vm8 = vcmp.eq.f32.partialorder %v1308_v61, inf  ;;  %v1314_v10 = vand.u32 2147483648, %v1308_v61  ;;  %vm1313_vm10 = vcmp.eq.f32.partialorder %v1308_v61, 0.0 }
 0x343   : > { %v3595_v55 = vpop.eup %3594 }
 0x344   : > { %v1310_v54 = vmul.f32 %v3595_v55, %v1308_v61 }
 0x346   : > { %v1312_v12 = vsel %vm1311_vm8, %v1308_v61, %v1310_v54 }
 0x347   : > { %v1315_v30 = vsel %vm1313_vm10, %v1314_v10, %v1312_v12 }
 0x348   : > { %v1316_v34 = vsub.f32 3.0, %v1315_v30 }
 0x34a   : > { %v1317_v63 = vmax.f32 %v1316_v34, 0.0 }
 0x34c   : > { %v1318_v48 = vmul.f32 %v1317_v63, %v1317_v63 }
 0x34e   : > { %v1319_v7 = vmul.f32 %v4496_v18, %v1318_v48 }
 0x350   : > { %v1357_v40 = vmul.f32 %v1356_v23, %v1319_v7 }
 0x352   : > { %v1359_v24 = vsel %vm1358_vm1, %v1357_v40, 0.0 }
 0x353   : > { %1360 = vadd.xlane.f32.xlu1 %v1359_v24 }
 0x357   : > { %1387 = vadd.xlane.f32.xlu1 %v1386_v37 }
 0x39d   : > { %v1183_v25 = vpop.xlane.xlu0 %1182 }
 0x39e   : > { %v1184_v44 = vrot.slane %v1183_v25, 4 }
 0x3a0   : > { %v1185_v11 = vadd.f32 %v1184_v44, %v1183_v25 }
 0x3a2   : > { %v1186_v45 = vrot.slane %v1185_v11, 2 }
 0x3a4   : > { %v1187_v29 = vadd.f32 %v1186_v45, %v1185_v11 }
 0x3a6   : > { %v1188_v36 = vrot.slane %v1187_v29, 1 }
 0x3a8   : > { %v1189_v1 = vadd.f32 %v1188_v36, %v1187_v29 }
 0x3aa   : > { %3489 = vpush %v1189_v1 }
 0x3db   : > { %s4504_s22 = spop %3489 }
 0x3dc   : > { %s1193_s2 = smul.f32 0.33333334, %s4504_s22 }
 0x3e0   : > { %v1361_v27 = vpop.xlane.xlu1 %1360 }
 0x3e1   : > { %v1362_v38 = vrot.slane %v1361_v27, 4 }
 0x3e3   : > { %v1363_v42 = vadd.f32 %v1362_v38, %v1361_v27 }
 0x3e4   : > { %v4507_v43 = vpop.xlane.xlu1 %1387 }
 0x3e5   : > { %6164 = vst [vmem:[#allocation24_spill] sm:$0xff] %v4507_v43  ;;  %v1364_v17 = vrot.slane %v1363_v42, 2 }
 0x3e7   : > { %v1365_v20 = vadd.f32 %v1364_v17, %v1363_v42 }
 0x3e9   : > { %v1366_v5 = vrot.slane %v1365_v20, 1 }
 0x3eb   : > { %v1367_v28 = vadd.f32 %v1366_v5, %v1365_v20 }
 0x3ed   : > { %3491 = vpush %v1367_v28 }
 0x41e   : > { %s4509_s16 = spop %3491 }
 0x41f   : > { %s1371_s17 = smul.f32 0.16666667, %s4509_s16 }
 0x420 LB: >> { %v6165_v2 = vld [vmem:[#allocation17_spill] sm:$0xff]  ;;  %s3361_s11 = sshll.u32 %s3912_s6, 8  ;;  %s1396_s24 = sshra.s32 %s3912_s6, 7  ;;  %v6166_v3 = vld [vmem:[#allocation18_spill] sm:$0xff]  ;;  %v6167_v4 = vld [vmem:[#allocation19_spill] sm:$0xff]  ;;  %v6168_v46 = vmov 0  ;;  %s3912_s6 = sphi %s4513_s6, %s1395_s6  }
 0x421   : >> { %s1405_s15 = sshra.s32 %s3361_s11, 7  ;;  %s1398_s20 = sadd.s32 %s3986_s0, %s1396_s24  ;;  %v6171_v31 = vmov 0 }
 0x422   : >> { %s3362_s29 = sshll.u32 %s1405_s15, 3  ;;  %s1475_s14 = scalar_lea.vmem %s4443_s8, %s1405_s15 [#allocation10] }
 0x423   : >> { %s1408_s18 = scalar_lea.vmem %s4146_s7, %s3362_s29 [#allocation5]  ;;  %v1476_v14 = vld [vmem:[%s1475_s14] sm:$0x3]  ;;  %s3360_s12 = sshll.u32 %s1398_s20, 7 }
 0x424   : >> { %v1409_v22 = vld [vmem:[%s1408_s18] sm:$0xff]  ;;  %v1480_v47 = vrot.slane %v1476_v14, %v6166_v3  ;;  %v1484_v62 = vrot.slane %v1476_v14, %v6167_v4  ;;  %s1401_s21 = sand.u32 127, %s3912_s6  ;;  %v1410_v49 = vld [vmem:[%s1408_s18 + $0x8] sm:$0xff]  ;;  %s4762_s11 = smov 0  }
 0x425   : >> { %1411 = vxpose.xlu0.b32.start.end [1/1] (short) %v1409_v22, 128  ;;  %s1402_s5 = sadd.s32 %s3360_s12, %s1401_s21 }
 0x426   : >> { %vm4527_vm2 = vcmp.eq.s32.totalorder %v1480_v47, %v6165_v2  ;;  %vm4532_vm14 = vcmp.eq.s32.totalorder %v1484_v62, %v6165_v2  ;;  %s4536_s13 = sld [smem:[#allocation4 + %s1402_s5]] }
 0x427   : >> { %v6169_v46 = vsel %vm4527_vm2, 4294967295, %v6168_v46  ;;  %v6172_v31 = vsel %vm4532_vm14, 4294967295, %v6171_v31 }
 0x428   : >> { %6170 = vst [vmem:[#allocation25_spill] sm:$0xff] %v6169_v46  ;;  %6173 = vst [vmem:[#allocation26_spill] sm:$0xff] %v6172_v31 }
 0x462   : >> { %1443 = vxpose.xlu0.b32.start.end [1/1] (short) %v1410_v49, 128 }
 0x4a5   : >> { %v4538_v15 = vpop.trf.xlu0 }
 0x4a6   : >> { %6174 = vst [vmem:[#allocation27_spill] sm:$0xff] %v4538_v15  ;;  %v1491_v9 = vmul.f32 %v4538_v15, %v4538_v15 }
 0x4a8   : >> { %v1523_v41 = vsel %vm753_vm9, %v1491_v9, 0.0 }
 0x4a9   : >> { %1524 = vadd.xlane.f32.xlu1 %v1523_v41  ;;  %v4543_v33 = vpop.trf.xlu0 }
 0x4aa   : >> { %6175 = vst [vmem:[#allocation28_spill] sm:$0xff] %v4543_v33  ;;  %v1492_v30 = vmul.f32 %v4543_v33, %v4543_v33 }
 0x4ac   : >> { %v1526_v48 = vsel %vm753_vm9, %v1492_v30, 0.0 }
 0x4ad   : >> { %v4545_v50 = vpop.trf.xlu0 }
 0x4ae   : >> { %6176 = vst [vmem:[#allocation29_spill] sm:$0xff] %v4545_v50  ;;  %v1493_v63 = vmul.f32 %v4545_v50, %v4545_v50 }
 0x4b0   : >> { %v1529_v7 = vsel %vm753_vm9, %v1493_v63, 0.0 }
 0x4b1   : >> { %v4547_v51 = vpop.trf.xlu0 }
 0x4b2   : >> { %6177 = vst [vmem:[#allocation30_spill] sm:$0xff] %v4547_v51  ;;  %v1494_v52 = vmul.f32 %v4547_v51, %v4547_v51 }
 0x4b4   : >> { %v1532_v37 = vsel %vm753_vm9, %v1494_v52, 0.0 }
 0x4b5   : >> { %v4549_v53 = vpop.trf.xlu0 }
 0x4b6   : >> { %6178 = vst [vmem:[#allocation31_spill] sm:$0xff] %v4549_v53  ;;  %v1495_v11 = vmul.f32 %v4549_v53, %v4549_v53 }
 0x4b8   : >> { %v1535_v29 = vsel %vm753_vm9, %v1495_v11, 0.0 }
 0x4b9   : >> { %v4551_v39 = vpop.trf.xlu0 }
 0x4ba   : >> { %6179 = vst [vmem:[#allocation32_spill] sm:$0xff] %v4551_v39  ;;  %v1496_v27 = vmul.f32 %v4551_v39, %v4551_v39 }
 0x4bc   : >> { %v1538_v42 = vsel %vm753_vm9, %v1496_v27, 0.0 }
 0x4bd   : >> { %v4553_v56 = vpop.trf.xlu0 }
 0x4be   : >> { %6180 = vst [vmem:[#allocation33_spill] sm:$0xff] %v4553_v56  ;;  %v1497_v5 = vmul.f32 %v4553_v56, %v4553_v56 }
 0x4c0   : >> { %v1541_v14 = vsel %vm753_vm9, %v1497_v5, 0.0 }
 0x4c1   : >> { %v4555_v57 = vpop.trf.xlu0 }
 0x4c2   : >> { %6181 = vst [vmem:[#allocation34_spill] sm:$0xff] %v4555_v57  ;;  %v1498_v62 = vmul.f32 %v4555_v57, %v4555_v57 }
 0x4c4   : >> { %v1544_v9 = vsel %vm753_vm9, %v1498_v62, 0.0 }
 0x4c5   : >> { %v4557_v58 = vpop.trf.xlu0 }
 0x4c6   : >> { %6182 = vst [vmem:[#allocation35_spill] sm:$0xff] %v4557_v58  ;;  %v1499_v30 = vmul.f32 %v4557_v58, %v4557_v58 }
 0x4c9   : >> { %v4559_v21 = vpop.trf.xlu0 }
 0x4ca   : >> { %6183 = vst [vmem:[#allocation36_spill] sm:$0xff] %v4559_v21 }
 0x4cd   : >> { %v4561_v61 = vpop.trf.xlu0 }
 0x4ce   : >> { %6184 = vst [vmem:[#allocation37_spill] sm:$0xff] %v4561_v61 }
 0x4d1   : >> { %v4563_v13 = vpop.trf.xlu0 }
 0x4d2   : >> { %6185 = vst [vmem:[#allocation38_spill] sm:$0xff] %v4563_v13 }
 0x4d5   : >> { %v4565_v55 = vpop.trf.xlu0 }
 0x4d6   : >> { %6186 = vst [vmem:[#allocation39_spill] sm:$0xff] %v4565_v55  ;;  %v1503_v5 = vmul.f32 %v4565_v55, %v4565_v55 }
 0x4d9   : >> { %v4567_v54 = vpop.trf.xlu0 }
 0x4da   : >> { %6187 = vst [vmem:[#allocation40_spill] sm:$0xff] %v4567_v54 }
 0x4dd   : >> { %v4569_v10 = vpop.trf.xlu0 }
 0x4de   : >> { %6188 = vst [vmem:[#allocation41_spill] sm:$0xff] %v4569_v10 }
 0x4e1   : >> { %v4571_v12 = vpop.trf.xlu0 }
 0x4e2   : >> { %6189 = vst [vmem:[#allocation42_spill] sm:$0xff] %v4571_v12 }
 0x4e5   : >> { %v4573_v35 = vpop.trf.xlu0 }
 0x4e6   : >> { %6190 = vst [vmem:[#allocation43_spill] sm:$0xff] %v4573_v35  ;;  %v1507_v16 = vmul.f32 %v4573_v35, %v4573_v35 }
 0x4e8   : >> { %v1571_v34 = vsel %vm753_vm9, %v1507_v16, 0.0 }
 0x4e9   : >> { %1572 = vadd.xlane.f32.xlu1 %v1571_v34  ;;  %v4580_v26 = vpop.trf.xlu0 }
 0x4ea   : >> { %6191 = vst [vmem:[#allocation44_spill] sm:$0xff] %v4580_v26  ;;  %v1508_v0 = vmul.f32 %v4580_v26, %v4580_v26 }
 0x4ec   : >> { %v1574_v32 = vsel %vm753_vm9, %v1508_v0, 0.0  ;;  %v1547_v0 = vsel %vm753_vm9, %v1499_v30, 0.0 }
 0x4ed   : >> { %1527 = vadd.xlane.f32.xlu1 %v1526_v48  ;;  %1575 = vadd.xlane.f32.xlu0 %v1574_v32  ;;  %v4588_v19 = vpop.trf.xlu0  ;;  %v1500_v32 = vmul.f32 %v4559_v21, %v4559_v21 }
 0x4ee   : >> { %6192 = vst [vmem:[#allocation45_spill] sm:$0xff] %v4588_v19  ;;  %v1509_v23 = vmul.f32 %v4588_v19, %v4588_v19 }
 0x4f0   : >> { %v1577_v6 = vsel %vm753_vm9, %v1509_v23, 0.0 }
 0x4f1   : >> { %1530 = vadd.xlane.f32.xlu1 %v1529_v7  ;;  %v4594_v40 = vpop.trf.xlu0  ;;  %v1550_v7 = vsel %vm753_vm9, %v1500_v32, 0.0 }
 0x4f2   : >> { %6193 = vst [vmem:[#allocation46_spill] sm:$0xff] %v4594_v40  ;;  %v1510_v24 = vmul.f32 %v4594_v40, %v4594_v40 }
 0x4f4   : >> { %v1580_v25 = vsel %vm753_vm9, %v1510_v24, 0.0  ;;  %v1501_v24 = vmul.f32 %v4561_v61, %v4561_v61 }
 0x4f5   : >> { %1578 = vadd.xlane.f32.xlu1 %v1577_v6  ;;  %v4602_v44 = vpop.trf.xlu0 }
 0x4f6   : >> { %6194 = vst [vmem:[#allocation47_spill] sm:$0xff] %v4602_v44  ;;  %v1511_v45 = vmul.f32 %v4602_v44, %v4602_v44 }
 0x4f8   : >> { %v1583_v36 = vsel %vm753_vm9, %v1511_v45, 0.0 }
 0x4f9   : >> { %1533 = vadd.xlane.f32.xlu1 %v1532_v37  ;;  %v4610_v1 = vpop.trf.xlu0 }
 0x4fa   : >> { %6195 = vst [vmem:[#allocation48_spill] sm:$0xff] %v4610_v1  ;;  %v1512_v38 = vmul.f32 %v4610_v1, %v4610_v1 }
 0x4fc   : >> { %v1586_v17 = vsel %vm753_vm9, %v1512_v38, 0.0 }
 0x4fd   : >> { %1581 = vadd.xlane.f32.xlu1 %v1580_v25  ;;  %v4618_v20 = vpop.trf.xlu0  ;;  %v1553_v25 = vsel %vm753_vm9, %v1501_v24, 0.0 }
 0x4fe   : >> { %6196 = vst [vmem:[#allocation49_spill] sm:$0xff] %v4618_v20  ;;  %v1513_v28 = vmul.f32 %v4618_v20, %v4618_v20 }
 0x500   : >> { %v1589_v22 = vsel %vm753_vm9, %v1513_v28, 0.0 }
 0x501   : >> { %1536 = vadd.xlane.f32.xlu1 %v1535_v29  ;;  %v4626_v47 = vpop.trf.xlu0  ;;  %v1502_v29 = vmul.f32 %v4563_v13, %v4563_v13 }
 0x502   : >> { %6197 = vst [vmem:[#allocation50_spill] sm:$0xff] %v4626_v47  ;;  %v1514_v49 = vmul.f32 %v4626_v47, %v4626_v47 }
 0x503   : >> { %v1556_v38 = vsel %vm753_vm9, %v1502_v29, 0.0 }
 0x504   : >> { %v1592_v41 = vsel %vm753_vm9, %v1514_v49, 0.0  ;;  %v1504_v49 = vmul.f32 %v4567_v54, %v4567_v54 }
 0x505   : >> { %1584 = vadd.xlane.f32.xlu1 %v1583_v36  ;;  %v4634_v16 = vpop.trf.xlu0 }
 0x506   : >> { %6198 = vst [vmem:[#allocation51_spill] sm:$0xff] %v4634_v16  ;;  %v1515_v34 = vmul.f32 %v4634_v16, %v4634_v16 }
 0x508   : >> { %v1595_v63 = vsel %vm753_vm9, %v1515_v34, 0.0 }
 0x509   : >> { %1539 = vadd.xlane.f32.xlu1 %v1538_v42  ;;  %v4642_v48 = vpop.trf.xlu0 }
 0x50a   : >> { %6199 = vst [vmem:[#allocation52_spill] sm:$0xff] %v4642_v48  ;;  %v1516_v23 = vmul.f32 %v4642_v48, %v4642_v48 }
 0x50c   : >> { %v1598_v6 = vsel %vm753_vm9, %v1516_v23, 0.0 }
 0x50d   : >> { %1587 = vadd.xlane.f32.xlu1 %v1586_v17  ;;  %v4650_v52 = vpop.trf.xlu0 }
 0x50e   : >> { %6200 = vst [vmem:[#allocation53_spill] sm:$0xff] %v4650_v52  ;;  %v1517_v37 = vmul.f32 %v4650_v52, %v4650_v52 }
 0x510   : >> { %v1601_v11 = vsel %vm753_vm9, %v1517_v37, 0.0 }
 0x511   : >> { %1542 = vadd.xlane.f32.xlu1 %v1541_v14  ;;  %v4658_v45 = vpop.trf.xlu0  ;;  %v1559_v14 = vsel %vm753_vm9, %v1503_v5, 0.0 }
 0x512   : >> { %6201 = vst [vmem:[#allocation54_spill] sm:$0xff] %v4658_v45  ;;  %v1518_v27 = vmul.f32 %v4658_v45, %v4658_v45 }
 0x514   : >> { %v1604_v42 = vsel %vm753_vm9, %v1518_v27, 0.0 }
 0x515   : >> { %1590 = vadd.xlane.f32.xlu1 %v1589_v22  ;;  %v4668_v17 = vpop.trf.xlu0 }
 0x516   : >> { %6203 = vst [vmem:[#allocation56_spill] sm:$0xff] %v4668_v17  ;;  %v1519_v28 = vmul.f32 %v4668_v17, %v4668_v17 }
 0x518   : >> { %v1607_v22 = vsel %vm753_vm9, %v1519_v28, 0.0 }
 0x519   : >> { %1545 = vadd.xlane.f32.xlu1 %v1544_v9  ;;  %v4676_v62 = vpop.trf.xlu0 }
 0x51a   : >> { %6204 = vst [vmem:[#allocation57_spill] sm:$0xff] %v4676_v62  ;;  %v1520_v9 = vmul.f32 %v4676_v62, %v4676_v62 }
 0x51c   : >> { %v1610_v30 = vsel %vm753_vm9, %v1520_v9, 0.0 }
 0x51d   : >> { %1593 = vadd.xlane.f32.xlu1 %v1592_v41  ;;  %v1562_v41 = vsel %vm753_vm9, %v1504_v49, 0.0  ;;  %v4684_v34 = vpop.trf.xlu0 }
 0x51e   : >> { %6205 = vst [vmem:[#allocation58_spill] sm:$0xff] %v4684_v34 }
 0x521   : >> { %1548 = vadd.xlane.f32.xlu1 %v1547_v0  ;;  %v1505_v0 = vmul.f32 %v4569_v10, %v4569_v10 }
 0x523   : >> { %v1565_v32 = vsel %vm753_vm9, %v1505_v0, 0.0 }
 0x525   : >> { %1596 = vadd.xlane.f32.xlu1 %v1595_v63  ;;  %v1521_v63 = vmul.f32 %v4684_v34, %v4684_v34 }
 0x527   : >> { %v1613_v23 = vsel %vm753_vm9, %v1521_v63, 0.0 }
 0x529   : >> { %1551 = vadd.xlane.f32.xlu1 %v1550_v7  ;;  %v4692_v7 = vpop.trf.xlu0 }
 0x52a   : >> { %6206 = vst [vmem:[#allocation59_spill] sm:$0xff] %v4692_v7  ;;  %v1522_v24 = vmul.f32 %v4692_v7, %v4692_v7 }
 0x52d   : >> { %1599 = vadd.xlane.f32.xlu1 %v1598_v6  ;;  %v1506_v6 = vmul.f32 %v4571_v12, %v4571_v12 }
 0x52f   : >> { %v1568_v37 = vsel %vm753_vm9, %v1506_v6, 0.0 }
 0x531   : >> { %1554 = vadd.xlane.f32.xlu1 %v1553_v25  ;;  %v1616_v25 = vsel %vm753_vm9, %v1522_v24, 0.0 }
 0x535   : >> { %1602 = vadd.xlane.f32.xlu1 %v1601_v11 }
 0x536   : >> { %v4662_v36 = vpop.xlane.xlu1 %1524 }
 0x537   : >> { %6202 = vst [vmem:[#allocation55_spill] sm:$0xff] %v4662_v36 }
 0x539   : >> { %1557 = vadd.xlane.f32.xlu1 %v1556_v38 }
 0x53d   : >> { %1605 = vadd.xlane.f32.xlu1 %v1604_v42 }
 0x541   : >> { %1560 = vadd.xlane.f32.xlu1 %v1559_v14 }
 0x545   : >> { %1608 = vadd.xlane.f32.xlu1 %v1607_v22 }
 0x549   : >> { %1563 = vadd.xlane.f32.xlu1 %v1562_v41 }
 0x54d   : >> { %1611 = vadd.xlane.f32.xlu1 %v1610_v30 }
 0x551   : >> { %1566 = vadd.xlane.f32.xlu1 %v1565_v32 }
 0x555   : >> { %1614 = vadd.xlane.f32.xlu1 %v1613_v23 }
 0x559   : >> { %1569 = vadd.xlane.f32.xlu1 %v1568_v37 }
 0x55d   : >> { %1617 = vadd.xlane.f32.xlu1 %v1616_v25 }
 0x576   : >> { %v4700_v11 = vpop.xlane.xlu1 %1572 }
 0x577   : >> { %6207 = vst [vmem:[#allocation60_spill] sm:$0xff] %v4700_v11 }
 0x57a   : >> { %v4702_v29 = vpop.xlane.xlu1 %1527  ;;  %v4704_v27 = vpop.xlane.xlu0 %1575 }
 0x57b   : >> { %6208 = vst [vmem:[#allocation61_spill] sm:$0xff] %v4702_v29  ;;  %6209 = vst [vmem:[#allocation62_spill] sm:$0xff] %v4704_v27 }
 0x57e   : >> { %v4706_v38 = vpop.xlane.xlu1 %1530 }
 0x57f   : >> { %6210 = vst [vmem:[#allocation63_spill] sm:$0xff] %v4706_v38 }
 0x582   : >> { %v4708_v42 = vpop.xlane.xlu1 %1578 }
 0x583   : >> { %6211 = vst [vmem:[#allocation64_spill] sm:$0xff] %v4708_v42 }
 0x586   : >> { %v4710_v5 = vpop.xlane.xlu1 %1533 }
 0x587   : >> { %6212 = vst [vmem:[#allocation65_spill] sm:$0xff] %v4710_v5 }
 0x58a   : >> { %v4712_v28 = vpop.xlane.xlu1 %1581 }
 0x58b   : >> { %6213 = vst [vmem:[#allocation66_spill] sm:$0xff] %v4712_v28 }
 0x58e   : >> { %v4714_v14 = vpop.xlane.xlu1 %1536 }
 0x58f   : >> { %6214 = vst [vmem:[#allocation67_spill] sm:$0xff] %v4714_v14 }
 0x592   : >> { %v4716_v22 = vpop.xlane.xlu1 %1584 }
 0x593   : >> { %6215 = vst [vmem:[#allocation68_spill] sm:$0xff] %v4716_v22 }
 0x596   : >> { %v4718_v49 = vpop.xlane.xlu1 %1539 }
 0x597   : >> { %6216 = vst [vmem:[#allocation69_spill] sm:$0xff] %v4718_v49 }
 0x59a   : >> { %v4720_v9 = vpop.xlane.xlu1 %1587 }
 0x59b   : >> { %6217 = vst [vmem:[#allocation70_spill] sm:$0xff] %v4720_v9 }
 0x59e   : >> { %v4722_v41 = vpop.xlane.xlu1 %1542 }
 0x59f   : >> { %6218 = vst [vmem:[#allocation71_spill] sm:$0xff] %v4722_v41 }
 0x5a2   : >> { %v4724_v30 = vpop.xlane.xlu1 %1590 }
 0x5a3   : >> { %6219 = vst [vmem:[#allocation72_spill] sm:$0xff] %v4724_v30 }
 0x5a6   : >> { %v4726_v0 = vpop.xlane.xlu1 %1545 }
 0x5a7   : >> { %6220 = vst [vmem:[#allocation73_spill] sm:$0xff] %v4726_v0 }
 0x5aa   : >> { %v4728_v63 = vpop.xlane.xlu1 %1593 }
 0x5ab   : >> { %6221 = vst [vmem:[#allocation74_spill] sm:$0xff] %v4728_v63 }
 0x5ae   : >> { %v4730_v32 = vpop.xlane.xlu1 %1548 }
 0x5af   : >> { %6222 = vst [vmem:[#allocation75_spill] sm:$0xff] %v4730_v32 }
 0x5b2   : >> { %v4732_v23 = vpop.xlane.xlu1 %1596 }
 0x5b3   : >> { %6223 = vst [vmem:[#allocation76_spill] sm:$0xff] %v4732_v23 }
 0x5b6   : >> { %v4734_v6 = vpop.xlane.xlu1 %1551 }
 0x5b7   : >> { %6224 = vst [vmem:[#allocation77_spill] sm:$0xff] %v4734_v6 }
 0x5ba   : >> { %v4736_v24 = vpop.xlane.xlu1 %1599 }
 0x5bb   : >> { %6225 = vst [vmem:[#allocation78_spill] sm:$0xff] %v4736_v24 }
 0x5be   : >> { %v4738_v37 = vpop.xlane.xlu1 %1554 }
 0x5bf   : >> { %6226 = vst [vmem:[#allocation79_spill] sm:$0xff] %v4738_v37 }
 0x5c2   : >> { %v4740_v25 = vpop.xlane.xlu1 %1602 }
 0x5c3   : >> { %6227 = vst [vmem:[#allocation80_spill] sm:$0xff] %v4740_v25 }
 0x5c6   : >> { %v4742_v8 = vpop.xlane.xlu1 %1557 }
 0x5c7   : >> { %6228 = vst [vmem:[#allocation81_spill] sm:$0xff] %v4742_v8 }
 0x5ca   : >> { %v4744_v18 = vpop.xlane.xlu1 %1605 }
 0x5cb   : >> { %6229 = vst [vmem:[#allocation82_spill] sm:$0xff] %v4744_v18 }
 0x5ce   : >> { %v4746_v60 = vpop.xlane.xlu1 %1560 }
 0x5cf   : >> { %6230 = vst [vmem:[#allocation83_spill] sm:$0xff] %v4746_v60 }
 0x5d2   : >> { %v4748_v59 = vpop.xlane.xlu1 %1608 }
 0x5d3   : >> { %6231 = vst [vmem:[#allocation84_spill] sm:$0xff] %v4748_v59 }
 0x5d6   : >> { %v4750_v43 = vpop.xlane.xlu1 %1563 }
 0x5d7   : >> { %6232 = vst [vmem:[#allocation85_spill] sm:$0xff] %v4750_v43 }
 0x5da   : >> { %v4752_v46 = vpop.xlane.xlu1 %1611 }
 0x5db   : >> { %6233 = vst [vmem:[#allocation86_spill] sm:$0xff] %v4752_v46 }
 0x5de   : >> { %v4754_v3 = vpop.xlane.xlu1 %1566 }
 0x5df   : >> { %6234 = vst [vmem:[#allocation87_spill] sm:$0xff] %v4754_v3 }
 0x5e2   : >> { %v4756_v2 = vpop.xlane.xlu1 %1614 }
 0x5e3   : >> { %6235 = vst [vmem:[#allocation88_spill] sm:$0xff] %v4756_v2 }
 0x5e6   : >> { %v4758_v4 = vpop.xlane.xlu1 %1569 }
 0x5e7   : >> { %6236 = vst [vmem:[#allocation89_spill] sm:$0xff] %v4758_v4 }
 0x5ea   : >> { %v4760_v31 = vpop.xlane.xlu1 %1617 }
 0x5eb   : >> { %6237 = vst [vmem:[#allocation90_spill] sm:$0xff] %v4760_v31 }
 0x5ec LB: >>> { %v6238_v23 = vld [vmem:[#allocation76_spill] sm:$0xff]  ;;  %v6239_v63 = vld [vmem:[#allocation74_spill] sm:$0xff]  ;;  %v6241_v60 = vld [vmem:[#allocation83_spill] sm:$0xff]  ;;  %s1625_s24 = sshra.s32 %s3916_s11, 7  ;;  %s1630_s15 = sand.u32 127, %s3916_s11  ;;  %s3916_s11 = sphi %s4762_s11, %s1624_s11  }
 0x5ed   : >>> { %v6240_v30 = vld [vmem:[#allocation72_spill] sm:$0xff]  ;;  %v6242_v9 = vld [vmem:[#allocation70_spill] sm:$0xff]  ;;  %v6249_v3 = vld [vmem:[#allocation87_spill] sm:$0xff]  ;;  %s1627_s20 = sadd.s32 %s3986_s0, %s1625_s24  ;;  %p1633_p4 = scmp.gt.s32.totalorder %s4536_s13, 0 }
 0x5ee   : >>> { %v6243_v22 = vld [vmem:[#allocation68_spill] sm:$0xff]  ;;  %v6244_v28 = vld [vmem:[#allocation66_spill] sm:$0xff]  ;;  %v6248_v4 = vld [vmem:[#allocation89_spill] sm:$0xff]  ;;  %s3365_s29 = sshll.u32 %s1627_s20, 7 }
 0x5ef   : >>> { %v6245_v42 = vld [vmem:[#allocation64_spill] sm:$0xff]  ;;  %v6246_v27 = vld [vmem:[#allocation62_spill] sm:$0xff]  ;;  %v6250_v43 = vld [vmem:[#allocation85_spill] sm:$0xff]  ;;  %s1631_s14 = sadd.s32 %s3365_s29, %s1630_s15 }
 0x5f0   : >>> { %v6247_v11 = vld [vmem:[#allocation60_spill] sm:$0xff]  ;;  %v6251_v49 = vld [vmem:[#allocation69_spill] sm:$0xff]  ;;  %v6253_v37 = vld [vmem:[#allocation79_spill] sm:$0xff]  ;;  %s1632_s18 = sld [smem:[#allocation4 + %s1631_s14]] }
 0x5f1   : >>> { %v6252_v8 = vld [vmem:[#allocation81_spill] sm:$0xff]  ;;  %v6255_v32 = vld [vmem:[#allocation75_spill] sm:$0xff] }
 0x5f2   : >>> { %v6254_v6 = vld [vmem:[#allocation77_spill] sm:$0xff]  ;;  %v6256_v41 = vld [vmem:[#allocation71_spill] sm:$0xff] }
 0x5f3   : >>> { %v6257_v0 = vld [vmem:[#allocation73_spill] sm:$0xff]  ;;  %v6258_v38 = vld [vmem:[#allocation63_spill] sm:$0xff] }
 0x5f4   : >>> { %v6259_v36 = vld [vmem:[#allocation55_spill] sm:$0xff]  ;;  %v6260_v29 = vld [vmem:[#allocation61_spill] sm:$0xff] }
 0x5f5   : >>> { %v6261_v14 = vld [vmem:[#allocation67_spill] sm:$0xff]  ;;  %v6262_v5 = vld [vmem:[#allocation65_spill] sm:$0xff] }
 0x5f6   : >>> { %p1634_p8 = scmp.gt.s32.totalorder %s1632_s18, 0 }
 0x5f8   : >>> { %p1635_p9 = pnand %p1634_p8, %p1633_p4 }
 0x5fa   : >>> { %1638 = sbr.rel (%p1635_p9) target bundleno = 2420 (0x974), region = 62 }
 0x601   : >>> { %s3366_s12 = sshll.u32 %s3916_s11, 8  ;;  %v3925_v31 = vmov 0.0   ;;  %v6263_v15 = vld [vmem:[#allocation27_spill] sm:$0xff]  ;;  %v6264_v33 = vld [vmem:[#allocation28_spill] sm:$0xff]  ;;  %v6265_v50 = vld [vmem:[#allocation29_spill] sm:$0xff] }
 0x602   : >>> { %s4772_s21 = sshra.s32 %s3366_s12, 7  ;;  %1836 = vmatprep.mubr.f32.mxu0 %v3925_v31  ;;  %v6266_v51 = vld [vmem:[#allocation30_spill] sm:$0xff]  ;;  %v6267_v53 = vld [vmem:[#allocation31_spill] sm:$0xff]  ;;  %v6268_v39 = vld [vmem:[#allocation32_spill] sm:$0xff] }
 0x603   : >>> { %s3367_s5 = sshll.u32 %s4772_s21, 3  ;;  %v6269_v56 = vld [vmem:[#allocation33_spill] sm:$0xff]  ;;  %v6270_v57 = vld [vmem:[#allocation34_spill] sm:$0xff]  ;;  %v6271_v58 = vld [vmem:[#allocation35_spill] sm:$0xff] }
 0x604   : >>> { %s1643_s19 = scalar_lea.vmem %s4146_s7, %s3367_s5 [#allocation5]  ;;  %v6272_v21 = vld [vmem:[#allocation36_spill] sm:$0xff]  ;;  %v6273_v61 = vld [vmem:[#allocation37_spill] sm:$0xff]  ;;  %v6274_v13 = vld [vmem:[#allocation38_spill] sm:$0xff] }
 0x605   : >>> { %v4777_v2 = vld [vmem:[%s1643_s19 + $0x8] sm:$0xff]  ;;  %v4779_v46 = vld [vmem:[%s1643_s19] sm:$0xff]  ;;  %v6275_v55 = vld [vmem:[#allocation39_spill] sm:$0xff]  ;;  %s1646_s19 = scalar_lea.vmem %s4443_s8, %s4772_s21 [#allocation10] }
 0x606   : >>> { %1772 = vmatprep.subr.mxu0 %v4777_v2  ;;  %v6276_v54 = vld [vmem:[#allocation40_spill] sm:$0xff]  ;;  %v6277_v10 = vld [vmem:[#allocation41_spill] sm:$0xff]  ;;  %v6278_v12 = vld [vmem:[#allocation42_spill] sm:$0xff] }
 0x607   : >>> { %1773 = vmatpush1.msra.mxu0 %v4779_v46  ;;  %v6279_v35 = vld [vmem:[#allocation43_spill] sm:$0xff]  ;;  %v6280_v26 = vld [vmem:[#allocation44_spill] sm:$0xff]  ;;  %v6281_v19 = vld [vmem:[#allocation45_spill] sm:$0xff] }
 0x608   : >>> { %3370 = vmatmul.mubr.msk.f32.vlgmr.msra.gmra.mrb[0].mxu0 %vm753_vm9, %v6263_v15  ;;  %v6282_v40 = vld [vmem:[#allocation46_spill] sm:$0xff]  ;;  %v6283_v44 = vld [vmem:[#allocation47_spill] sm:$0xff]  ;;  %v6284_v1 = vld [vmem:[#allocation48_spill] sm:$0xff] }
 0x609   : >>> { %1842 = vmatprep.mubr.f32.mxu0 %v3925_v31  ;;  %v6285_v20 = vld [vmem:[#allocation49_spill] sm:$0xff]  ;;  %v6286_v47 = vld [vmem:[#allocation50_spill] sm:$0xff]  ;;  %v6287_v16 = vld [vmem:[#allocation51_spill] sm:$0xff] }
 0x60a   : >>> { %v6288_v48 = vld [vmem:[#allocation52_spill] sm:$0xff]  ;;  %v6289_v52 = vld [vmem:[#allocation53_spill] sm:$0xff]  ;;  %v6290_v45 = vld [vmem:[#allocation54_spill] sm:$0xff] }
 0x60b   : >>> { %v6291_v17 = vld [vmem:[#allocation56_spill] sm:$0xff]  ;;  %v6292_v62 = vld [vmem:[#allocation57_spill] sm:$0xff]  ;;  %v6293_v34 = vld [vmem:[#allocation58_spill] sm:$0xff] }
 0x60c   : >>> { %3371 = vmatmul.mubr.msk.f32.gmra.mrb[2].mxu0 %vm753_vm9, %v6264_v33  ;;  %v6294_v7 = vld [vmem:[#allocation59_spill] sm:$0xff]  ;;  %v6303_v24 = vld [vmem:[#allocation78_spill] sm:$0xff] }
 0x60d   : >>> { %1848 = vmatprep.mubr.f32.mxu0 %v3925_v31 }
 0x610   : >>> { %3372 = vmatmul.mubr.msk.f32.gmra.mrb[4].mxu0 %vm753_vm9, %v6265_v50 }
 0x611   : >>> { %1854 = vmatprep.mubr.f32.mxu0 %v3925_v31 }
 0x614   : >>> { %3373 = vmatmul.mubr.msk.f32.gmra.mrb[6].mxu0 %vm753_vm9, %v6266_v51 }
 0x615   : >>> { %1860 = vmatprep.mubr.f32.mxu0 %v3925_v31 }
 0x618   : >>> { %3374 = vmatmul.mubr.msk.f32.gmra.mrb[8].mxu0 %vm753_vm9, %v6267_v53 }
 0x619   : >>> { %1866 = vmatprep.mubr.f32.mxu0 %v3925_v31 }
 0x61c   : >>> { %3375 = vmatmul.mubr.msk.f32.gmra.mrb[10].mxu0 %vm753_vm9, %v6268_v39 }
 0x61d   : >>> { %1872 = vmatprep.mubr.f32.mxu0 %v3925_v31 }
 0x620   : >>> { %3376 = vmatmul.mubr.msk.f32.gmra.mrb[12].mxu0 %vm753_vm9, %v6269_v56 }
 0x621   : >>> { %1878 = vmatprep.mubr.f32.mxu0 %v3925_v31 }
 0x624   : >>> { %3377 = vmatmul.mubr.msk.f32.gmra.mrb[14].mxu0 %vm753_vm9, %v6270_v57 }
 0x625   : >>> { %1884 = vmatprep.mubr.f32.mxu0 %v3925_v31 }
 0x628   : >>> { %3378 = vmatmul.mubr.msk.f32.gmra.mrb[16].mxu0 %vm753_vm9, %v6271_v58 }
 0x629   : >>> { %1890 = vmatprep.mubr.f32.mxu0 %v3925_v31 }
 0x62c   : >>> { %3379 = vmatmul.mubr.msk.f32.gmra.mrb[18].mxu0 %vm753_vm9, %v6272_v21 }
 0x62d   : >>> { %1896 = vmatprep.mubr.f32.mxu0 %v3925_v31 }
 0x630   : >>> { %3380 = vmatmul.mubr.msk.f32.gmra.mrb[20].mxu0 %vm753_vm9, %v6273_v61 }
 0x631   : >>> { %1902 = vmatprep.mubr.f32.mxu0 %v3925_v31 }
 0x634   : >>> { %3381 = vmatmul.mubr.msk.f32.gmra.mrb[22].mxu0 %vm753_vm9, %v6274_v13 }
 0x635   : >>> { %1908 = vmatprep.mubr.f32.mxu0 %v3925_v31 }
 0x638   : >>> { %3382 = vmatmul.mubr.msk.f32.gmra.mrb[24].mxu0 %vm753_vm9, %v6275_v55 }
 0x639   : >>> { %1914 = vmatprep.mubr.f32.mxu0 %v3925_v31 }
 0x63c   : >>> { %3383 = vmatmul.mubr.msk.f32.gmra.mrb[26].mxu0 %vm753_vm9, %v6276_v54 }
 0x63d   : >>> { %1920 = vmatprep.mubr.f32.mxu0 %v3925_v31 }
 0x640   : >>> { %3384 = vmatmul.mubr.msk.f32.gmra.mrb[28].mxu0 %vm753_vm9, %v6277_v10  ;;  %v1663_v10 = vmul.f32 %v4777_v2, %v4777_v2 }
 0x641   : >>> { %1926 = vmatprep.mubr.f32.mxu0 %v3925_v31 }
 0x642   : >>> { %v1670_v13 = vrot.slane %v1663_v10, 4 }
 0x644   : >>> { %3385 = vmatmul.mubr.msk.f32.gmra.mrb[30].mxu0 %vm753_vm9, %v6278_v12 }
 0x645   : >>> { %1932 = vmatprep.mubr.f32.mxu0 %v3925_v31 }
 0x648   : >>> { %3386 = vmatmul.mubr.msk.f32.gmra.mrb[32].mxu0 %vm753_vm9, %v6279_v35 }
 0x649   : >>> { %1938 = vmatprep.mubr.f32.mxu0 %v3925_v31 }
 0x64c   : >>> { %3387 = vmatmul.mubr.msk.f32.gmra.mrb[34].mxu0 %vm753_vm9, %v6280_v26 }
 0x64d   : >>> { %1944 = vmatprep.mubr.f32.mxu0 %v3925_v31 }
 0x650   : >>> { %3388 = vmatmul.mubr.msk.f32.gmra.mrb[36].mxu0 %vm753_vm9, %v6281_v19 }
 0x651   : >>> { %1950 = vmatprep.mubr.f32.mxu0 %v3925_v31 }
 0x654   : >>> { %3389 = vmatmul.mubr.msk.f32.gmra.mrb[38].mxu0 %vm753_vm9, %v6282_v40 }
 0x655   : >>> { %1956 = vmatprep.mubr.f32.mxu0 %v3925_v31 }
 0x658   : >>> { %3390 = vmatmul.mubr.msk.f32.gmra.mrb[40].mxu0 %vm753_vm9, %v6283_v44 }
 0x659   : >>> { %1962 = vmatprep.mubr.f32.mxu0 %v3925_v31 }
 0x65c   : >>> { %3391 = vmatmul.mubr.msk.f32.gmra.mrb[42].mxu0 %vm753_vm9, %v6284_v1  ;;  %v1662_v1 = vmul.f32 %v4779_v46, %v4779_v46 }
 0x65d   : >>> { %1968 = vmatprep.mubr.f32.mxu0 %v3925_v31 }
 0x65e   : >>> { %v1664_v12 = vrot.slane %v1662_v1, 4 }
 0x660   : >>> { %3392 = vmatmul.mubr.msk.f32.gmra.mrb[44].mxu0 %vm753_vm9, %v6285_v20  ;;  %v1665_v15 = vadd.f32 %v1664_v12, %v1662_v1 }
 0x661   : >>> { %1974 = vmatprep.mubr.f32.mxu0 %v3925_v31 }
 0x664   : >>> { %3393 = vmatmul.mubr.msk.f32.gmra.mrb[46].mxu0 %vm753_vm9, %v6286_v47 }
 0x665   : >>> { %1980 = vmatprep.mubr.f32.mxu0 %v3925_v31 }
 0x668   : >>> { %3394 = vmatmul.mubr.msk.f32.gmra.mrb[48].mxu0 %vm753_vm9, %v6287_v16  ;;  %v1671_v16 = vadd.f32 %v1670_v13, %v1663_v10 }
 0x669   : >>> { %1986 = vmatprep.mubr.f32.mxu0 %v3925_v31 }
 0x66a   : >>> { %v1672_v19 = vrot.slane %v1671_v16, 2 }
 0x66c   : >>> { %3395 = vmatmul.mubr.msk.f32.gmra.mrb[50].mxu0 %vm753_vm9, %v6288_v48  ;;  %v1673_v21 = vadd.f32 %v1672_v19, %v1671_v16 }
 0x66d   : >>> { %1992 = vmatprep.mubr.f32.mxu0 %v3925_v31 }
 0x66e   : >>> { %v1674_v33 = vrot.slane %v1673_v21, 1 }
 0x670   : >>> { %3396 = vmatmul.mubr.msk.f32.gmra.mrb[52].mxu0 %vm753_vm9, %v6289_v52 }
 0x671   : >>> { %1998 = vmatprep.mubr.f32.mxu0 %v3925_v31 }
 0x674   : >>> { %3397 = vmatmul.mubr.msk.f32.gmra.mrb[54].mxu0 %vm753_vm9, %v6290_v45 }
 0x675   : >>> { %2004 = vmatprep.mubr.f32.mxu0 %v3925_v31 }
 0x678   : >>> { %3398 = vmatmul.mubr.msk.f32.gmra.mrb[56].mxu0 %vm753_vm9, %v6291_v17  ;;  %v1666_v17 = vrot.slane %v1665_v15, 2 }
 0x679   : >>> { %2010 = vmatprep.mubr.f32.mxu0 %v3925_v31 }
 0x67a   : >>> { %v1667_v20 = vadd.f32 %v1666_v17, %v1665_v15 }
 0x67c   : >>> { %3399 = vmatmul.mubr.msk.f32.gmra.mrb[58].mxu0 %vm753_vm9, %v6292_v62  ;;  %v1668_v26 = vrot.slane %v1667_v20, 1 }
 0x67d   : >>> { %2016 = vmatprep.mubr.f32.mxu0 %v3925_v31 }
 0x680   : >>> { %3400 = vmatmul.mubr.msk.f32.gmra.mrb[60].mxu0 %vm753_vm9, %v6293_v34  ;;  %v4884_v34 = vadd.f32 %v1674_v33, %v1673_v21 }
 0x681   : >>> { %2022 = vmatprep.mubr.f32.mxu0 %v3925_v31  ;;  %v4882_v31 = vadd.f32 %v1668_v26, %v1667_v20 }
 0x682   : >>> { %6296 = vst [vmem:[#allocation92_spill] sm:$0xff] %v4884_v34  ;;  %v2030_v2 = vadd.f32 %v4884_v34, %v6259_v36  ;;  %v2032_v13 = vadd.f32 %v4884_v34, %v6260_v29  ;;  %v4900_v33 = vadd.f32 %v4884_v34, %v6258_v38  ;;  %v4908_v10 = vadd.f32 %v4884_v34, %v6262_v5 }
 0x683   : >>> { %6295 = vst [vmem:[#allocation91_spill] sm:$0xff] %v4882_v31  ;;  %v2029_v46 = vadd.f32 %v4882_v31, %v6259_v36  ;;  %v2031_v12 = vadd.f32 %v4882_v31, %v6260_v29  ;;  %v4896_v15 = vadd.f32 %v4882_v31, %v6258_v38  ;;  %v4904_v21 = vadd.f32 %v4882_v31, %v6262_v5 }
 0x684   : >>> { %3401 = vmatmul.mubr.msk.f32.gmra.mrb[62].mxu0 %vm753_vm9, %v6294_v7  ;;  %v4912_v26 = vadd.f32 %v4882_v31, %v6261_v14  ;;  %v4916_v19 = vadd.f32 %v4884_v34, %v6261_v14  ;;  %v4920_v1 = vadd.f32 %v4882_v31, %v6251_v49  ;;  %v4924_v20 = vadd.f32 %v4884_v34, %v6251_v49 }
 0x685   : >>> { %v4928_v16 = vadd.f32 %v4882_v31, %v6256_v41  ;;  %v4932_v17 = vadd.f32 %v4884_v34, %v6256_v41  ;;  %v4936_v5 = vadd.f32 %v4882_v31, %v6257_v0  ;;  %v4940_v7 = vadd.f32 %v4884_v34, %v6257_v0 }
 0x686   : >>> { %v4944_v14 = vadd.f32 %v4882_v31, %v6255_v32  ;;  %v4948_v35 = vadd.f32 %v4884_v34, %v6255_v32  ;;  %v4952_v36 = vadd.f32 %v4882_v31, %v6254_v6  ;;  %v4956_v38 = vadd.f32 %v4884_v34, %v6254_v6 }
 0x687   : >>> { %v4960_v0 = vadd.f32 %v4882_v31, %v6253_v37  ;;  %v4964_v41 = vadd.f32 %v4884_v34, %v6253_v37  ;;  %v4968_v32 = vadd.f32 %v4882_v31, %v6252_v8  ;;  %v4972_v44 = vadd.f32 %v4884_v34, %v6252_v8 }
 0x688   : >>> { %v4976_v45 = vadd.f32 %v4882_v31, %v6241_v60  ;;  %v4984_v37 = vadd.f32 %v4882_v31, %v6250_v43  ;;  %v4988_v48 = vadd.f32 %v4884_v34, %v6250_v43  ;;  %v4996_v8 = vadd.f32 %v4884_v34, %v6249_v3 }
 0x689   : >>> { %v5000_v51 = vadd.f32 %v4882_v31, %v6248_v4  ;;  %v5024_v54 = vadd.f32 %v4884_v34, %v6246_v27  ;;  %v5046_v56 = vadd.f32 %v4882_v31, %v6243_v22  ;;  %v5052_v57 = vadd.f32 %v4884_v34, %v6243_v22 }
 0x68a   : >>> { %v5062_v58 = vadd.f32 %v4884_v34, %v6242_v9  ;;  %v5072_v22 = vadd.f32 %v4884_v34, %v6240_v30 }
 0x68c   : >>> { %6298 = vst [vmem:[#allocation94_spill] sm:$0xff] %v5072_v22 }
 0x6db   : >>> { %v1838_v29 = vpop.f32.mrb[0].mxu0 }
 0x6dc   : >>> { %v2093_v39 = vmul.f32 2.0, %v1838_v29  ;;  %v1840_v40 = vpop.f32.mrb[1].mxu0  ;;  %v4980_v29 = vadd.f32 %v4884_v34, %v6241_v60 }
 0x6dd   : >>> { %v2094_v6 = vmul.f32 2.0, %v1840_v40  ;;  %v4992_v40 = vadd.f32 %v4882_v31, %v6249_v3 }
 0x6de   : >>> { %v2157_v47 = vsub.f32 %v2029_v46, %v2093_v39  ;;  %v5004_v39 = vadd.f32 %v4884_v34, %v6248_v4  ;;  %v5008_v46 = vadd.f32 %v4882_v31, %v6247_v11 }
 0x6df   : >>> { %v2158_v49 = vsub.f32 %v2030_v2, %v2094_v6  ;;  %v1844_v50 = vpop.f32.mrb[2].mxu0  ;;  %v5014_v6 = vadd.f32 %v4884_v34, %v6247_v11  ;;  %v5018_v2 = vadd.f32 %v4882_v31, %v6246_v27  ;;  %v5033_v11 = vadd.f32 %v4884_v34, %v6245_v42 }
 0x6e0   : >>> { %v5010_v43 = vmax.f32 %v2157_v47, 0.0  ;;  %v2095_v52 = vmul.f32 2.0, %v1844_v50  ;;  %v1846_v53 = vpop.f32.mrb[3].mxu0  ;;  %v5028_v47 = vadd.f32 %v4882_v31, %v6245_v42  ;;  %v5042_v27 = vadd.f32 %v4884_v34, %v6244_v28 }
 0x6e1   : >>> { %v5020_v3 = vmax.f32 %v2158_v49, 0.0  ;;  %v2096_v4 = vmul.f32 2.0, %v1846_v53  ;;  %v5037_v49 = vadd.f32 %v4882_v31, %v6244_v28 }
 0x6e2   : >>> { %3596 = vrsqrt.f32 %v5010_v43  ;;  %v2159_v50 = vsub.f32 %v2031_v12, %v2095_v52  ;;  %vm2287_vm15 = vcmp.eq.f32.partialorder %v5010_v43, inf  ;;  %vm2289_vm0 = vcmp.eq.f32.partialorder %v5010_v43, 0.0 }
 0x6e3   : >>> { %v2160_v53 = vsub.f32 %v2032_v13, %v2096_v4  ;;  %v1850_v55 = vpop.f32.mrb[4].mxu0  ;;  %3598 = vrsqrt.f32 %v5020_v3  ;;  %v5056_v4 = vadd.f32 %v4882_v31, %v6242_v9  ;;  %vm2294_vm3 = vcmp.eq.f32.partialorder %v5020_v3, inf }
 0x6e4   : >>> { %v5048_v52 = vmax.f32 %v2159_v50, 0.0  ;;  %v2097_v12 = vmul.f32 2.0, %v1850_v55  ;;  %v1852_v42 = vpop.f32.mrb[5].mxu0  ;;  %v5066_v50 = vadd.f32 %v4882_v31, %v6240_v30  ;;  %vm2296_vm4 = vcmp.eq.f32.partialorder %v5020_v3, 0.0 }
 0x6e5   : >>> { %v5058_v13 = vmax.f32 %v2160_v53, 0.0  ;;  %v2098_v28 = vmul.f32 2.0, %v1852_v42  ;;  %v5076_v53 = vadd.f32 %v4882_v31, %v6239_v63 }
 0x6e6   : >>> { %6297 = vst [vmem:[#allocation93_spill] sm:$0xff] %v5066_v50  ;;  %3600 = vrsqrt.f32 %v5048_v52  ;;  %v2161_v55 = vsub.f32 %v4896_v15, %v2097_v12  ;;  %vm2301_vm5 = vcmp.eq.f32.partialorder %v5048_v52, inf  ;;  %vm2303_vm10 = vcmp.eq.f32.partialorder %v5048_v52, 0.0 }
 0x6e7   : >>> { %6299 = vst [vmem:[#allocation95_spill] sm:$0xff] %v5076_v53  ;;  %v2162_v42 = vsub.f32 %v4900_v33, %v2098_v28  ;;  %v1856_v9 = vpop.f32.mrb[6].mxu0  ;;  %3602 = vrsqrt.f32 %v5058_v13  ;;  %v2297_v28 = vand.u32 2147483648, %v5020_v3  ;;  %v2290_v33 = vand.u32 2147483648, %v5010_v43 }
 0x6e8   : >>> { %v5082_v60 = vmax.f32 %v2161_v55, 0.0  ;;  %v2099_v15 = vmul.f32 2.0, %v1856_v9  ;;  %v1858_v12 = vpop.f32.mrb[7].mxu0  ;;  %v5094_v55 = vadd.f32 %v4884_v34, %v6239_v63  ;;  %v5098_v9 = vadd.f32 %v4882_v31, %v6238_v23 }
 0x6e9   : >>> { %v5086_v30 = vmax.f32 %v2162_v42, 0.0  ;;  %v2100_v61 = vmul.f32 2.0, %v1858_v12  ;;  %vm2308_vm6 = vcmp.eq.f32.partialorder %v5058_v13, inf  ;;  %v2311_v59 = vand.u32 2147483648, %v5058_v13 }
 0x6ea   : >>> { %v2163_v62 = vsub.f32 %v4904_v21, %v2099_v15  ;;  %6300 = vst [vmem:[#allocation96_spill] sm:$0xff] %v5094_v55  ;;  %6301 = vst [vmem:[#allocation97_spill] sm:$0xff] %v5098_v9  ;;  %v2304_v21 = vand.u32 2147483648, %v5048_v52  ;;  %vm2310_vm8 = vcmp.eq.f32.partialorder %v5058_v13, 0.0 }
 0x6eb   : >>> { %3604 = vrsqrt.f32 %v5086_v30  ;;  %v2164_v42 = vsub.f32 %v4908_v10, %v2100_v61  ;;  %v1862_v12 = vpop.f32.mrb[8].mxu0  ;;  %v5112_v61 = vadd.f32 %v4884_v34, %v6238_v23  ;;  %vm2322_vm11 = vcmp.eq.f32.partialorder %v5086_v30, inf }
 0x6ec   : >>> { %v3597_v15 = vpop.eup %3596  ;;  %3606 = vrsqrt.f32 %v5082_v60  ;;  %v5106_v63 = vmax.f32 %v2163_v62, 0.0  ;;  %v2101_v18 = vmul.f32 2.0, %v1862_v12  ;;  %v1864_v25 = vpop.f32.mrb[9].mxu0  ;;  %vm2324_vm12 = vcmp.eq.f32.partialorder %v5086_v30, 0.0 }
 0x6ed   : >>> { %6302 = vst [vmem:[#allocation98_spill] sm:$0xff] %v5112_v61  ;;  %v3599_v10 = vpop.eup %3598  ;;  %v5114_v9 = vmax.f32 %v2164_v42, 0.0  ;;  %v2102_v55 = vmul.f32 2.0, %v1864_v25  ;;  %v2286_v53 = vmul.f32 %v3597_v15, %v5010_v43  ;;  %v5129_v42 = vadd.f32 %v4882_v31, %v6303_v24 }
 0x6ee   : >>> { %3608 = vrsqrt.f32 %v5106_v63  ;;  %v2165_v62 = vsub.f32 %v4912_v26, %v2101_v18  ;;  %v2293_v12 = vmul.f32 %v3599_v10, %v5020_v3 }
 0x6ef   : >>> { %3610 = vrsqrt.f32 %v5114_v9  ;;  %v2166_v23 = vsub.f32 %v4916_v19, %v2102_v55  ;;  %v1868_v34 = vpop.f32.mrb[10].mxu0  ;;  %v2288_v25 = vsel %vm2287_vm15, %v5010_v43, %v2286_v53  ;;  %6304 = vst [vmem:[#allocation99_spill] sm:$0xff] %v5129_v42  ;;  %vm2336_vm13 = vcmp.eq.f32.partialorder %v5114_v9, inf }
 0x6f0   : >>> { %v3601_v15 = vpop.eup %3600  ;;  %v5131_v22 = vmax.f32 %v2165_v62, 0.0  ;;  %v2103_v18 = vmul.f32 2.0, %v1868_v34  ;;  %v1870_v26 = vpop.f32.mrb[11].mxu0  ;;  %v2295_v10 = vsel %vm2294_vm3, %v5020_v3, %v2293_v12  ;;  %v2291_v19 = vsel %vm2289_vm0, %v2290_v33, %v2288_v25 }
 0x6f1   : >>> { %v3603_v55 = vpop.eup %3602  ;;  %v5138_v50 = vmax.f32 %v2166_v23, 0.0  ;;  %v2104_v53 = vmul.f32 2.0, %v1870_v26  ;;  %v2298_v31 = vsel %vm2296_vm4, %v2297_v28, %v2295_v10  ;;  %v2300_v24 = vmul.f32 %v3601_v15, %v5048_v52 }
 0x6f2   : >>> { %3612 = vrsqrt.f32 %v5131_v22  ;;  %v2167_v34 = vsub.f32 %v4920_v1, %v2103_v18  ;;  %v2307_v62 = vmul.f32 %v3603_v55, %v5058_v13  ;;  %v2734_v12 = vsub.f32 2.0, %v2298_v31 }
 0x6f3   : >>> { %3614 = vrsqrt.f32 %v5138_v50  ;;  %v2168_v43 = vsub.f32 %v4924_v20, %v2104_v53  ;;  %v1874_v23 = vpop.f32.mrb[12].mxu0  ;;  %v2302_v3 = vsel %vm2301_vm5, %v5048_v52, %v2300_v24  ;;  %v2733_v28 = vsub.f32 2.0, %v2291_v19 }
 0x6f4   : >>> { %v5153_v33 = vmax.f32 %v2167_v34, 0.0  ;;  %v2105_v25 = vmul.f32 2.0, %v1874_v23  ;;  %v1876_v15 = vpop.f32.mrb[13].mxu0  ;;  %v2309_v31 = vsel %vm2308_vm6, %v5058_v13, %v2307_v62  ;;  %v2798_v1 = vmax.f32 %v2734_v12, 0.0 }
 0x6f5   : >>> { %v3605_v18 = vpop.eup %3604  ;;  %v5158_v26 = vmax.f32 %v2168_v43, 0.0  ;;  %v2106_v10 = vmul.f32 2.0, %v1876_v15  ;;  %v2312_v20 = vsel %vm2310_vm8, %v2311_v59, %v2309_v31  ;;  %v2305_v24 = vsel %vm2303_vm10, %v2304_v21, %v2302_v3 }
 0x6f6   : >>> { %v3607_v19 = vpop.eup %3606  ;;  %3616 = vrsqrt.f32 %v5153_v33  ;;  %v2169_v55 = vsub.f32 %v4928_v16, %v2105_v25  ;;  %v2736_v53 = vsub.f32 2.0, %v2312_v20  ;;  %v2862_v34 = vmul.f32 %v2798_v1, %v2798_v1 }
 0x6f7   : >>> { %3618 = vrsqrt.f32 %v5158_v26  ;;  %v2170_v62 = vsub.f32 %v4932_v17, %v2106_v10  ;;  %v1880_v12 = vpop.f32.mrb[14].mxu0  ;;  %v2735_v43 = vsub.f32 2.0, %v2305_v24  ;;  %v2797_v13 = vmax.f32 %v2733_v28, 0.0 }
 0x6f8   : >>> { %v3609_v59 = vpop.eup %3608  ;;  %v5169_v23 = vmax.f32 %v2169_v55, 0.0  ;;  %v2107_v52 = vmul.f32 2.0, %v1880_v12  ;;  %v1882_v21 = vpop.f32.mrb[15].mxu0  ;;  %v2800_v3 = vmax.f32 %v2736_v53, 0.0  ;;  %v2321_v15 = vmul.f32 %v3605_v18, %v5086_v30 }
 0x6f9   : >>> { %v3611_v31 = vpop.eup %3610  ;;  %v5172_v42 = vmax.f32 %v2170_v62, 0.0  ;;  %v2108_v16 = vmul.f32 2.0, %v1882_v21  ;;  %v2799_v25 = vmax.f32 %v2735_v43, 0.0  ;;  %v2861_v1 = vmul.f32 %v2797_v13, %v2797_v13 }
 0x6fa   : >>> { %vm2315_vm15 = vcmp.eq.f32.partialorder %v5082_v60, inf  ;;  %vm2329_vm0 = vcmp.eq.f32.partialorder %v5106_v63, inf  ;;  %3620 = vrsqrt.f32 %v5169_v23  ;;  %v2171_v17 = vsub.f32 %v4936_v5, %v2107_v52 }
 0x6fb   : >>> { %v2864_v28 = vmul.f32 %v2800_v3, %v2800_v3  ;;  %v2323_v10 = vsel %vm2322_vm11, %v5086_v30, %v2321_v15  ;;  %3622 = vrsqrt.f32 %v5172_v42  ;;  %v2172_v18 = vsub.f32 %v4940_v7, %v2108_v16  ;;  %v1886_v20 = vpop.f32.mrb[16].mxu0 }
 0x6fc   : >>> { %v2863_v24 = vmul.f32 %v2799_v25, %v2799_v25  ;;  %v6305_v55 = vand.u32 2147483648, %v5086_v30  ;;  %vm2317_vm3 = vcmp.eq.f32.partialorder %v5082_v60, 0.0  ;;  %v5188_v62 = vpop.eup %3612  ;;  %v5190_v5 = vmax.f32 %v2171_v17, 0.0  ;;  %v1888_v43 = vpop.f32.mrb[17].mxu0 }
 0x6fd   : >>> { %v2109_v12 = vmul.f32 2.0, %v1886_v20  ;;  %v3419_v13 = vpack.c.bf16 %v2864_v28, %v2862_v34  ;;  %v2335_v52 = vmul.f32 %v3611_v31, %v5114_v9  ;;  %v3615_v21 = vpop.eup %3614  ;;  %v5193_v7 = vmax.f32 %v2172_v18, 0.0 }
 0x6fe   : >>> { %v2326_v53 = vsel %vm2324_vm12, %v6305_v55, %v2323_v10  ;;  %v2110_v3 = vmul.f32 2.0, %v1888_v43  ;;  %v3421_v15 = vpack.c.bf16 %v2863_v24, %v2861_v1  ;;  %vm2338_vm4 = vcmp.eq.f32.partialorder %v5114_v9, 0.0 }
 0x6ff   : >>> { %3624 = vrsqrt.f32 %v5190_v5  ;;  %v2173_v30 = vsub.f32 %v4944_v14, %v2109_v12  ;;  %3420 = vmatprep.subr.bf16.mxu1 %v3419_v13  ;;  %v2337_v16 = vsel %vm2336_vm13, %v5114_v9, %v2335_v52  ;;  %v2339_v34 = vand.u32 2147483648, %v5114_v9  ;;  %v1892_v25 = vpop.f32.mrb[18].mxu0 }
 0x700   : >>> { %3626 = vrsqrt.f32 %v5193_v7  ;;  %v2174_v31 = vsub.f32 %v4948_v35, %v2110_v3  ;;  %3422 = vmatpush1.bf16.msra.mxu1 %v3421_v15  ;;  %v2738_v1 = vsub.f32 2.0, %v2326_v53  ;;  %v2314_v17 = vmul.f32 %v3607_v19, %v5082_v60  ;;  %v5205_v28 = vpop.eup %3616  ;;  %v1894_v18 = vpop.f32.mrb[19].mxu0 }
 0x701   : >>> { %v5207_v10 = vmax.f32 %v2173_v30, 0.0  ;;  %v2111_v14 = vmul.f32 2.0, %v1892_v25  ;;  %v2340_v20 = vsel %vm2338_vm4, %v2339_v34, %v2337_v16  ;;  %v2328_v24 = vmul.f32 %v3609_v59, %v5106_v63  ;;  %v3619_v55 = vpop.eup %3618 }
 0x702   : >>> { %v5212_v12 = vmax.f32 %v2174_v31, 0.0  ;;  %v2112_v35 = vmul.f32 2.0, %v1894_v18  ;;  %v2740_v43 = vsub.f32 2.0, %v2340_v20  ;;  %v2802_v13 = vmax.f32 %v2738_v1, 0.0 }
 0x703   : >>> { %3628 = vrsqrt.f32 %v5207_v10  ;;  %v2175_v19 = vsub.f32 %v4952_v36, %v2111_v14  ;;  %v2316_v53 = vsel %vm2315_vm15, %v5082_v60, %v2314_v17  ;;  %v2330_v9 = vsel %vm2329_vm0, %v5106_v63, %v2328_v24  ;;  %v1898_v52 = vpop.f32.mrb[20].mxu0 }
 0x704   : >>> { %3630 = vrsqrt.f32 %v5212_v12  ;;  %v2176_v59 = vsub.f32 %v4956_v38, %v2112_v35  ;;  %v2804_v3 = vmax.f32 %v2740_v43, 0.0  ;;  %v2866_v15 = vmul.f32 %v2802_v13, %v2802_v13  ;;  %v5224_v30 = vpop.eup %3620  ;;  %v1900_v34 = vpop.f32.mrb[21].mxu0 }
 0x705   : >>> { %v5226_v16 = vmax.f32 %v2175_v19, 0.0  ;;  %v2113_v36 = vmul.f32 2.0, %v1898_v52  ;;  %v6306_v31 = vand.u32 2147483648, %v5082_v60  ;;  %vm2331_vm5 = vcmp.eq.f32.partialorder %v5106_v63, 0.0  ;;  %v5233_v1 = vpop.eup %3622 }
 0x706   : >>> { %v5235_v17 = vmax.f32 %v2176_v59, 0.0  ;;  %v2114_v38 = vmul.f32 2.0, %v1900_v34  ;;  %v2868_v14 = vmul.f32 %v2804_v3, %v2804_v3  ;;  %v2332_v18 = vand.u32 2147483648, %v5106_v63 }
 0x707   : >>> { %v2319_v25 = vsel %vm2317_vm3, %v6306_v31, %v2316_v53  ;;  %3632 = vrsqrt.f32 %v5226_v16  ;;  %v2177_v20 = vsub.f32 %v4960_v0, %v2113_v36  ;;  %v2349_v35 = vmul.f32 %v3615_v21, %v5138_v50  ;;  %v1904_v13 = vpop.f32.mrb[22].mxu0 }
 0x708   : >>> { %v2737_v24 = vsub.f32 2.0, %v2319_v25  ;;  %3634 = vrsqrt.f32 %v5235_v17  ;;  %v2178_v60 = vsub.f32 %v4964_v41, %v2114_v38  ;;  %v3423_v43 = vpack.c.bf16 %v2868_v14, %v2866_v15  ;;  %v1906_v34 = vpop.f32.mrb[23].mxu0 }
 0x709   : >>> { %v2333_v19 = vsel %vm2331_vm5, %v2332_v18, %v2330_v9  ;;  %v5243_v53 = vpop.eup %3624  ;;  %v5245_v59 = vmax.f32 %v2177_v20, 0.0  ;;  %v2115_v52 = vmul.f32 2.0, %v1904_v13  ;;  %v2116_v21 = vmul.f32 2.0, %v1906_v34 }
 0x70a   : >>> { %v2739_v63 = vsub.f32 2.0, %v2333_v19  ;;  %v2801_v3 = vmax.f32 %v2737_v24, 0.0  ;;  %v5247_v31 = vpop.eup %3626  ;;  %v5249_v0 = vmax.f32 %v2178_v60, 0.0  ;;  %3424 = vmatprep.subr.bf16.mxu1 %v3423_v43  ;;  %vm2350_vm6 = vcmp.eq.f32.partialorder %v5138_v50, inf }
 0x70b   : >>> { %vm2352_vm8 = vcmp.eq.f32.partialorder %v5138_v50, 0.0  ;;  %3636 = vrsqrt.f32 %v5245_v59  ;;  %v2179_v41 = vsub.f32 %v4968_v32, %v2115_v52  ;;  %v2180_v36 = vsub.f32 %v4972_v44, %v2116_v21  ;;  %v1910_v25 = vpop.f32.mrb[24].mxu0 }
 0x70c   : >>> { %v2803_v9 = vmax.f32 %v2739_v63, 0.0  ;;  %v2865_v15 = vmul.f32 %v2801_v3, %v2801_v3  ;;  %3638 = vrsqrt.f32 %v5249_v0  ;;  %v2351_v38 = vsel %vm2350_vm6, %v5138_v50, %v2349_v35  ;;  %v1912_v43 = vpop.f32.mrb[25].mxu0 }
 0x70d   : >>> { %v2353_v14 = vand.u32 2147483648, %v5138_v50  ;;  %v5259_v18 = vpop.eup %3628  ;;  %v5261_v20 = vmax.f32 %v2179_v41, 0.0  ;;  %v2117_v60 = vmul.f32 2.0, %v1910_v25  ;;  %v2363_v32 = vmul.f32 %v3619_v55, %v5158_v26 }
 0x70e   : >>> { %v2867_v24 = vmul.f32 %v2803_v9, %v2803_v9  ;;  %v5264_v13 = vpop.eup %3630  ;;  %v5266_v19 = vmax.f32 %v2180_v36, 0.0  ;;  %v2118_v52 = vmul.f32 2.0, %v1912_v43  ;;  %vm2364_vm10 = vcmp.eq.f32.partialorder %v5158_v26, inf }
 0x70f   : >>> { %v2354_v44 = vsel %vm2352_vm8, %v2353_v14, %v2351_v38  ;;  %3640 = vrsqrt.f32 %v5261_v20  ;;  %v2181_v63 = vsub.f32 %v4976_v45, %v2117_v60  ;;  %v2365_v3 = vsel %vm2364_vm10, %v5158_v26, %v2363_v32  ;;  %v1916_v21 = vpop.f32.mrb[26].mxu0 }
 0x710   : >>> { %v3425_v35 = vpack.c.bf16 %v2867_v24, %v2865_v15  ;;  %3642 = vrsqrt.f32 %v5266_v19  ;;  %v2182_v55 = vsub.f32 %v4980_v29, %v2118_v52  ;;  %vm2366_vm11 = vcmp.eq.f32.partialorder %v5158_v26, 0.0  ;;  %v1918_v36 = vpop.f32.mrb[27].mxu0 }
 0x711   : >>> { %v2367_v34 = vand.u32 2147483648, %v5158_v26  ;;  %v5278_v50 = vpop.eup %3632  ;;  %v5280_v41 = vmax.f32 %v2181_v63, 0.0  ;;  %v2742_v9 = vsub.f32 2.0, %v2354_v44  ;;  %v2119_v15 = vmul.f32 2.0, %v1916_v21 }
 0x712   : >>> { %3426 = vmatpush1.bf16.msra.mxu1 %v3425_v35  ;;  %v2342_v45 = vmul.f32 %v5188_v62, %v5131_v22  ;;  %v5284_v25 = vpop.eup %3634  ;;  %v5286_v38 = vmax.f32 %v2182_v55, 0.0  ;;  %vm2343_vm12 = vcmp.eq.f32.partialorder %v5131_v22, inf  ;;  %vm2345_vm13 = vcmp.eq.f32.partialorder %v5131_v22, 0.0 }
 0x713   : >>> { %v2368_v29 = vsel %vm2366_vm11, %v2367_v34, %v2365_v3  ;;  %3644 = vrsqrt.f32 %v5280_v41  ;;  %v2806_v14 = vmax.f32 %v2742_v9, 0.0  ;;  %v2183_v24 = vsub.f32 %v4984_v37, %v2119_v15  ;;  %v1922_v32 = vpop.f32.mrb[28].mxu0 }
 0x714   : >>> { %v2744_v26 = vsub.f32 2.0, %v2368_v29  ;;  %3646 = vrsqrt.f32 %v5286_v38  ;;  %v2344_v62 = vsel %vm2343_vm12, %v5131_v22, %v2342_v45  ;;  %v2346_v60 = vand.u32 2147483648, %v5131_v22  ;;  %v1924_v3 = vpop.f32.mrb[29].mxu0 }
 0x715   : >>> { %v2356_v43 = vmul.f32 %v5205_v28, %v5153_v33  ;;  %v5297_v52 = vpop.eup %3636  ;;  %v2870_v35 = vmul.f32 %v2806_v14, %v2806_v14  ;;  %v5299_v63 = vmax.f32 %v2183_v24, 0.0  ;;  %vm2357_vm15 = vcmp.eq.f32.partialorder %v5153_v33, inf }
 0x716   : >>> { %v2808_v44 = vmax.f32 %v2744_v26, 0.0  ;;  %v5302_v37 = vpop.eup %3638  ;;  %v2347_v55 = vsel %vm2345_vm13, %v2346_v60, %v2344_v62  ;;  %vm2359_vm0 = vcmp.eq.f32.partialorder %v5153_v33, 0.0  ;;  %v2360_v28 = vand.u32 2147483648, %v5153_v33 }
 0x717   : >>> { %v2358_v34 = vsel %vm2357_vm15, %v5153_v33, %v2356_v43  ;;  %3648 = vrsqrt.f32 %v5299_v63  ;;  %v2741_v9 = vsub.f32 2.0, %v2347_v55  ;;  %v2120_v15 = vmul.f32 2.0, %v1918_v36  ;;  %v1928_v24 = vpop.f32.mrb[30].mxu0 }
 0x718   : >>> { %v2872_v21 = vmul.f32 %v2808_v44, %v2808_v44  ;;  %v2361_v45 = vsel %vm2359_vm0, %v2360_v28, %v2358_v34  ;;  %v2121_v29 = vmul.f32 2.0, %v1922_v32  ;;  %v2122_v26 = vmul.f32 2.0, %v1924_v3  ;;  %v1930_v33 = vpop.f32.mrb[31].mxu0 }
 0x719   : >>> { %v2377_v14 = vmul.f32 %v5233_v1, %v5172_v42  ;;  %v5312_v22 = vpop.eup %3640  ;;  %v2743_v60 = vsub.f32 2.0, %v2361_v45  ;;  %v2805_v43 = vmax.f32 %v2741_v9, 0.0  ;;  %v2184_v61 = vsub.f32 %v4988_v48, %v2120_v15 }
 0x71a   : >>> { %v3427_v62 = vpack.c.bf16 %v2872_v21, %v2870_v35  ;;  %v5315_v44 = vpop.eup %3642  ;;  %v2185_v55 = vsub.f32 %v4992_v40, %v2121_v29  ;;  %v2186_v36 = vsub.f32 %v4996_v8, %v2122_v26  ;;  %vm2378_vm3 = vcmp.eq.f32.partialorder %v5172_v42, inf }
 0x71b   : >>> { %vm2380_vm4 = vcmp.eq.f32.partialorder %v5172_v42, 0.0  ;;  %v2807_v1 = vmax.f32 %v2743_v60, 0.0  ;;  %v2869_v32 = vmul.f32 %v2805_v43, %v2805_v43  ;;  %v5321_v3 = vmax.f32 %v2184_v61, 0.0  ;;  %v1934_v40 = vpop.f32.mrb[32].mxu0 }
 0x71c   : >>> { %3428 = vmatprep.subr.bf16.mxu1 %v3427_v62  ;;  %v2379_v35 = vsel %vm2378_vm3, %v5172_v42, %v2377_v14  ;;  %v5324_v34 = vmax.f32 %v2185_v55, 0.0  ;;  %v5326_v48 = vmax.f32 %v2186_v36, 0.0  ;;  %v2381_v28 = vand.u32 2147483648, %v5172_v42  ;;  %v1936_v61 = vpop.f32.mrb[33].mxu0 }
 0x71d   : >>> { %v2391_v8 = vmul.f32 %v5247_v31, %v5193_v7  ;;  %v5331_v21 = vpop.eup %3644  ;;  %v2871_v9 = vmul.f32 %v2807_v1, %v2807_v1  ;;  %3650 = vrsqrt.f32 %v5321_v3  ;;  %vm2392_vm5 = vcmp.eq.f32.partialorder %v5193_v7, inf }
 0x71e   : >>> { %vm2394_vm6 = vcmp.eq.f32.partialorder %v5193_v7, 0.0  ;;  %v5336_v15 = vpop.eup %3646  ;;  %3652 = vrsqrt.f32 %v5324_v34  ;;  %v2382_v45 = vsel %vm2380_vm4, %v2381_v28, %v2379_v35  ;;  %v2395_v29 = vand.u32 2147483648, %v5193_v7 }
 0x71f   : >>> { %v2393_v31 = vsel %vm2392_vm5, %v5193_v7, %v2391_v8  ;;  %v3429_v26 = vpack.c.bf16 %v2871_v9, %v2869_v32  ;;  %3654 = vrsqrt.f32 %v5326_v48  ;;  %v2746_v14 = vsub.f32 2.0, %v2382_v45  ;;  %v1940_v55 = vpop.f32.mrb[34].mxu0 }
 0x720   : >>> { %v2123_v62 = vmul.f32 2.0, %v1928_v24  ;;  %v2396_v60 = vsel %vm2394_vm6, %v2395_v29, %v2393_v31  ;;  %v2370_v43 = vmul.f32 %v5224_v30, %v5169_v23  ;;  %vm2371_vm8 = vcmp.eq.f32.partialorder %v5169_v23, inf  ;;  %v5352_v35 = vpop.f32.mrb[35].mxu0 }
 0x721   : >>> { %vm2373_vm10 = vcmp.eq.f32.partialorder %v5169_v23, 0.0  ;;  %v5348_v42 = vpop.eup %3648  ;;  %3430 = vmatpush1.bf16.msra.mxu1 %v3429_v26  ;;  %v2748_v36 = vsub.f32 2.0, %v2396_v60  ;;  %v2810_v1 = vmax.f32 %v2746_v14, 0.0  ;;  %v2374_v32 = vand.u32 2147483648, %v5169_v23 }
 0x722   : >>> { %v2187_v7 = vsub.f32 %v5000_v51, %v2123_v62  ;;  %v2372_v24 = vsel %vm2371_vm8, %v5169_v23, %v2370_v43  ;;  %v2384_v30 = vmul.f32 %v5243_v53, %v5190_v5  ;;  %vm2385_vm11 = vcmp.eq.f32.partialorder %v5190_v5, inf }
 0x723   : >>> { %vm2387_vm12 = vcmp.eq.f32.partialorder %v5190_v5, 0.0  ;;  %v2812_v28 = vmax.f32 %v2748_v36, 0.0  ;;  %v2874_v8 = vmul.f32 %v2810_v1, %v2810_v1  ;;  %v2375_v51 = vsel %vm2373_vm10, %v2374_v32, %v2372_v24  ;;  %v5365_v14 = vpop.f32.mrb[36].mxu0 }
 0x724   : >>> { %v5359_v9 = vmax.f32 %v2187_v7, 0.0  ;;  %v2386_v45 = vsel %vm2385_vm11, %v5190_v5, %v2384_v30  ;;  %v2388_v31 = vand.u32 2147483648, %v5190_v5  ;;  %v2745_v29 = vsub.f32 2.0, %v2375_v51  ;;  %v5368_v43 = vpop.f32.mrb[37].mxu0 }
 0x725   : >>> { %v2124_v26 = vmul.f32 2.0, %v1930_v33  ;;  %v2876_v53 = vmul.f32 %v2812_v28, %v2812_v28  ;;  %v2125_v62 = vmul.f32 2.0, %v1934_v40  ;;  %v2126_v60 = vmul.f32 2.0, %v1936_v61 }
 0x726   : >>> { %3656 = vrsqrt.f32 %v5359_v9  ;;  %v2389_v36 = vsel %vm2387_vm12, %v2388_v31, %v2386_v45  ;;  %v2809_v1 = vmax.f32 %v2745_v29, 0.0  ;;  %v2405_v7 = vmul.f32 %v5264_v13, %v5212_v12 }
 0x727   : >>> { %v2188_v23 = vsub.f32 %v5004_v39, %v2124_v26  ;;  %v5373_v32 = vpop.eup %3650  ;;  %v3431_v5 = vpack.c.bf16 %v2876_v53, %v2874_v8  ;;  %v2747_v33 = vsub.f32 2.0, %v2389_v36  ;;  %v2189_v24 = vsub.f32 %v5008_v46, %v2125_v62  ;;  %v5383_v39 = vpop.f32.mrb[38].mxu0 }
 0x728   : >>> { %v2190_v30 = vsub.f32 %v5014_v6, %v2126_v60  ;;  %v5377_v28 = vpop.eup %3652  ;;  %v2873_v40 = vmul.f32 %v2809_v1, %v2809_v1  ;;  %vm2406_vm13 = vcmp.eq.f32.partialorder %v5212_v12, inf  ;;  %vm2408_vm15 = vcmp.eq.f32.partialorder %v5212_v12, 0.0  ;;  %v5392_v45 = vpop.f32.mrb[39].mxu0 }
 0x729   : >>> { %v5379_v61 = vmax.f32 %v2188_v23, 0.0  ;;  %v5385_v13 = vpop.eup %3654  ;;  %3432 = vmatprep.subr.bf16.mxu1 %v3431_v5  ;;  %v2811_v8 = vmax.f32 %v2747_v33, 0.0  ;;  %v5387_v51 = vmax.f32 %v2189_v24, 0.0  ;;  %v2407_v6 = vsel %vm2406_vm13, %v5212_v12, %v2405_v7 }
 0x72a   : >>> { %v5389_v46 = vmax.f32 %v2190_v30, 0.0  ;;  %v2409_v31 = vand.u32 2147483648, %v5212_v12  ;;  %v2419_v29 = vmul.f32 %v5284_v25, %v5235_v17  ;;  %vm2420_vm0 = vcmp.eq.f32.partialorder %v5235_v17, inf }
 0x72b   : >>> { %3658 = vrsqrt.f32 %v5379_v61  ;;  %v2875_v26 = vmul.f32 %v2811_v8, %v2811_v8  ;;  %vm2422_vm3 = vcmp.eq.f32.partialorder %v5235_v17, 0.0  ;;  %v2423_v53 = vand.u32 2147483648, %v5235_v17  ;;  %v5406_v1 = vpop.f32.mrb[40].mxu0 }
 0x72c   : >>> { %3660 = vrsqrt.f32 %v5387_v51  ;;  %v2410_v62 = vsel %vm2408_vm15, %v2409_v31, %v2407_v6  ;;  %v2421_v60 = vsel %vm2420_vm0, %v5235_v17, %v2419_v29  ;;  %v2127_v36 = vmul.f32 2.0, %v1940_v55  ;;  %v5410_v33 = vpop.f32.mrb[41].mxu0 }
 0x72d   : >>> { %3662 = vrsqrt.f32 %v5389_v46  ;;  %v3433_v25 = vpack.c.bf16 %v2875_v26, %v2873_v40  ;;  %v2424_v23 = vsel %vm2422_vm3, %v2423_v53, %v2421_v60  ;;  %v2750_v7 = vsub.f32 2.0, %v2410_v62 }
 0x72e   : >>> { %v2398_v5 = vmul.f32 %v5259_v18, %v5207_v10  ;;  %v2752_v24 = vsub.f32 2.0, %v2424_v23  ;;  %v2191_v30 = vsub.f32 %v5018_v2, %v2127_v36  ;;  %vm2399_vm4 = vcmp.eq.f32.partialorder %v5207_v10, inf }
 0x72f   : >>> { %vm2401_vm5 = vcmp.eq.f32.partialorder %v5207_v10, 0.0  ;;  %3434 = vmatpush1.bf16.msra.mxu1 %v3433_v25  ;;  %v2814_v17 = vmax.f32 %v2750_v7, 0.0  ;;  %v2402_v40 = vand.u32 2147483648, %v5207_v10  ;;  %v2412_v18 = vmul.f32 %v5278_v50, %v5226_v16  ;;  %v5425_v2 = vpop.f32.mrb[42].mxu0 }
 0x730   : >>> { %v5415_v12 = vpop.eup %3656  ;;  %v2400_v55 = vsel %vm2399_vm4, %v5207_v10, %v2398_v5  ;;  %v2816_v8 = vmax.f32 %v2752_v24, 0.0  ;;  %v5421_v6 = vmax.f32 %v2191_v30, 0.0  ;;  %vm2413_vm6 = vcmp.eq.f32.partialorder %v5226_v16, inf  ;;  %v5429_v62 = vpop.f32.mrb[43].mxu0 }
 0x731   : >>> { %vm2415_vm8 = vcmp.eq.f32.partialorder %v5226_v16, 0.0  ;;  %v2878_v31 = vmul.f32 %v2814_v17, %v2814_v17  ;;  %v2403_v29 = vsel %vm2401_vm5, %v2402_v40, %v2400_v55  ;;  %v2414_v26 = vsel %vm2413_vm6, %v5226_v16, %v2412_v18 }
 0x732   : >>> { %v2416_v53 = vand.u32 2147483648, %v5226_v16  ;;  %v2880_v10 = vmul.f32 %v2816_v8, %v2816_v8  ;;  %3664 = vrsqrt.f32 %v5421_v6  ;;  %v2749_v50 = vsub.f32 2.0, %v2403_v29 }
 0x733   : >>> { %v2128_v60 = vmul.f32 2.0, %v5352_v35  ;;  %v2129_v25 = vmul.f32 2.0, %v5365_v14  ;;  %v2130_v23 = vmul.f32 2.0, %v5368_v43  ;;  %v2433_v7 = vmul.f32 %v5302_v37, %v5249_v0  ;;  %v5440_v55 = vpop.f32.mrb[44].mxu0 }
 0x734   : >>> { %v2417_v36 = vsel %vm2415_vm8, %v2416_v53, %v2414_v26  ;;  %v3435_v24 = vpack.c.bf16 %v2880_v10, %v2878_v31  ;;  %v2813_v30 = vmax.f32 %v2749_v50, 0.0  ;;  %vm2434_vm10 = vcmp.eq.f32.partialorder %v5249_v0, inf  ;;  %v5448_v37 = vpop.f32.mrb[45].mxu0 }
 0x735   : >>> { %v5437_v5 = vpop.eup %3658  ;;  %v2751_v16 = vsub.f32 2.0, %v2417_v36  ;;  %v2192_v17 = vsub.f32 %v5024_v54, %v2128_v60  ;;  %v2193_v35 = vsub.f32 %v5028_v47, %v2129_v25  ;;  %v2194_v14 = vsub.f32 %v5033_v11, %v2130_v23 }
 0x736   : >>> { %v5442_v40 = vpop.eup %3660  ;;  %vm2436_vm11 = vcmp.eq.f32.partialorder %v5249_v0, 0.0  ;;  %3436 = vmatprep.subr.bf16.mxu1 %v3435_v24  ;;  %v2877_v8 = vmul.f32 %v2813_v30, %v2813_v30  ;;  %v2435_v31 = vsel %vm2434_vm10, %v5249_v0, %v2433_v7  ;;  %v2437_v11 = vand.u32 2147483648, %v5249_v0 }
 0x737   : >>> { %v5450_v43 = vpop.eup %3662  ;;  %v2815_v18 = vmax.f32 %v2751_v16, 0.0  ;;  %v5452_v54 = vmax.f32 %v2192_v17, 0.0  ;;  %v5455_v29 = vmax.f32 %v2193_v35, 0.0  ;;  %v5457_v47 = vmax.f32 %v2194_v14, 0.0  ;;  %v5465_v10 = vpop.f32.mrb[46].mxu0 }
 0x738   : >>> { %v2447_v26 = vmul.f32 %v5315_v44, %v5266_v19  ;;  %vm2448_vm12 = vcmp.eq.f32.partialorder %v5266_v19, inf  ;;  %vm2450_vm13 = vcmp.eq.f32.partialorder %v5266_v19, 0.0  ;;  %v2438_v50 = vsel %vm2436_vm11, %v2437_v11, %v2435_v31  ;;  %v5472_v25 = vpop.f32.mrb[47].mxu0 }
 0x739   : >>> { %v2879_v53 = vmul.f32 %v2815_v18, %v2815_v18  ;;  %3666 = vrsqrt.f32 %v5452_v54  ;;  %v2451_v36 = vand.u32 2147483648, %v5266_v19  ;;  %v2754_v23 = vsub.f32 2.0, %v2438_v50 }
 0x73a   : >>> { %3668 = vrsqrt.f32 %v5455_v29  ;;  %v2449_v60 = vsel %vm2448_vm12, %v5266_v19, %v2447_v26  ;;  %v2131_v7 = vmul.f32 2.0, %v5383_v39  ;;  %v2426_v16 = vmul.f32 %v5297_v52, %v5245_v59 }
 0x73b   : >>> { %v3437_v44 = vpack.c.bf16 %v2879_v53, %v2877_v8  ;;  %3670 = vrsqrt.f32 %v5457_v47  ;;  %v2452_v24 = vsel %vm2450_vm13, %v2451_v36, %v2449_v60  ;;  %vm2427_vm15 = vcmp.eq.f32.partialorder %v5245_v59, inf  ;;  %v5484_v14 = vpop.f32.mrb[48].mxu0 }
 0x73c   : >>> { %vm2429_vm0 = vcmp.eq.f32.partialorder %v5245_v59, 0.0  ;;  %v5480_v0 = vpop.eup %3664  ;;  %v2756_v19 = vsub.f32 2.0, %v2452_v24  ;;  %v2818_v30 = vmax.f32 %v2754_v23, 0.0  ;;  %v2195_v17 = vsub.f32 %v5037_v49, %v2131_v7  ;;  %v5491_v18 = vpop.f32.mrb[49].mxu0 }
 0x73d   : >>> { %3438 = vmatpush1.bf16.msra.mxu1 %v3437_v44  ;;  %v2430_v35 = vand.u32 2147483648, %v5245_v59  ;;  %v2428_v39 = vsel %vm2427_vm15, %v5245_v59, %v2426_v16  ;;  %v2440_v52 = vmul.f32 %v5312_v22, %v5261_v20  ;;  %vm2441_vm3 = vcmp.eq.f32.partialorder %v5261_v20, inf }
 0x73e   : >>> { %vm2443_vm4 = vcmp.eq.f32.partialorder %v5261_v20, 0.0  ;;  %v2820_v8 = vmax.f32 %v2756_v19, 0.0  ;;  %v2882_v31 = vmul.f32 %v2818_v30, %v2818_v30  ;;  %v5493_v11 = vmax.f32 %v2195_v17, 0.0 }
 0x73f   : >>> { %v2431_v49 = vsel %vm2429_vm0, %v2430_v35, %v2428_v39  ;;  %v2442_v26 = vsel %vm2441_vm3, %v5261_v20, %v2440_v52  ;;  %v2444_v53 = vand.u32 2147483648, %v5261_v20  ;;  %v2132_v22 = vmul.f32 2.0, %v5392_v45  ;;  %v5503_v23 = vpop.f32.mrb[50].mxu0 }
 0x740   : >>> { %v2753_v50 = vsub.f32 2.0, %v2431_v49  ;;  %v2884_v60 = vmul.f32 %v2820_v8, %v2820_v8  ;;  %3672 = vrsqrt.f32 %v5493_v11  ;;  %v2133_v36 = vmul.f32 2.0, %v5406_v1  ;;  %v5508_v20 = vpop.f32.mrb[51].mxu0 }
 0x741   : >>> { %v2134_v44 = vmul.f32 2.0, %v5410_v33  ;;  %v2445_v7 = vsel %vm2443_vm4, %v2444_v53, %v2442_v26  ;;  %v2196_v59 = vsub.f32 %v5042_v27, %v2132_v22  ;;  %v2461_v16 = vmul.f32 %v5336_v15, %v5286_v38 }
 0x742   : >>> { %v2817_v24 = vmax.f32 %v2753_v50, 0.0  ;;  %v3439_v45 = vpack.c.bf16 %v2884_v60, %v2882_v31  ;;  %v2755_v30 = vsub.f32 2.0, %v2445_v7  ;;  %v2197_v17 = vsub.f32 %v5046_v56, %v2133_v36 }
 0x743   : >>> { %v5510_v19 = vpop.eup %3666  ;;  %v2198_v1 = vsub.f32 %v5052_v57, %v2134_v44  ;;  %v5516_v39 = vmax.f32 %v2196_v59, 0.0  ;;  %vm2462_vm5 = vcmp.eq.f32.partialorder %v5286_v38, inf  ;;  %vm2464_vm6 = vcmp.eq.f32.partialorder %v5286_v38, 0.0  ;;  %v5527_v57 = vpop.f32.mrb[52].mxu0 }
 0x744   : >>> { %v5514_v33 = vpop.eup %3668  ;;  %v2881_v35 = vmul.f32 %v2817_v24, %v2817_v24  ;;  %3440 = vmatprep.subr.bf16.mxu1 %v3439_v45  ;;  %v2819_v15 = vmax.f32 %v2755_v30, 0.0  ;;  %v5522_v52 = vmax.f32 %v2197_v17, 0.0  ;;  %v2463_v56 = vsel %vm2462_vm5, %v5286_v38, %v2461_v16  ;;  %v5534_v26 = vpop.f32.mrb[53].mxu0 }
 0x745   : >>> { %v5520_v27 = vpop.eup %3670  ;;  %v5524_v8 = vmax.f32 %v2198_v1, 0.0  ;;  %3674 = vrsqrt.f32 %v5516_v39  ;;  %v2465_v31 = vand.u32 2147483648, %v5286_v38  ;;  %v2475_v49 = vmul.f32 %v5373_v32, %v5321_v3 }
 0x746   : >>> { %vm2476_vm8 = vcmp.eq.f32.partialorder %v5321_v3, inf  ;;  %v2883_v53 = vmul.f32 %v2819_v15, %v2819_v15  ;;  %3676 = vrsqrt.f32 %v5522_v52  ;;  %vm2478_vm10 = vcmp.eq.f32.partialorder %v5321_v3, 0.0 }
 0x747   : >>> { %v2479_v50 = vand.u32 2147483648, %v5321_v3  ;;  %3678 = vrsqrt.f32 %v5524_v8  ;;  %v2466_v22 = vsel %vm2464_vm6, %v2465_v31, %v2463_v56  ;;  %v2477_v60 = vsel %vm2476_vm8, %v5321_v3, %v2475_v49  ;;  %v5546_v59 = vpop.f32.mrb[54].mxu0 }
 0x748   : >>> { %v2135_v32 = vmul.f32 2.0, %v5425_v2  ;;  %v3441_v36 = vpack.c.bf16 %v2883_v53, %v2881_v35  ;;  %v2758_v7 = vsub.f32 2.0, %v2466_v22  ;;  %v2454_v24 = vmul.f32 %v5331_v21, %v5280_v41  ;;  %v5551_v38 = vpop.f32.mrb[55].mxu0 }
 0x749   : >>> { %v2480_v44 = vsel %vm2478_vm10, %v2479_v50, %v2477_v60  ;;  %vm2455_vm11 = vcmp.eq.f32.partialorder %v5280_v41, inf  ;;  %vm2457_vm12 = vcmp.eq.f32.partialorder %v5280_v41, 0.0  ;;  %v2458_v17 = vand.u32 2147483648, %v5280_v41 }
 0x74a   : >>> { %v2760_v16 = vsub.f32 2.0, %v2480_v44  ;;  %v2199_v45 = vsub.f32 %v5056_v4, %v2135_v32  ;;  %v5553_v3 = vpop.eup %3672  ;;  %3442 = vmatpush1.bf16.msra.mxu1 %v3441_v36  ;;  %v2822_v2 = vmax.f32 %v2758_v7, 0.0  ;;  %v2456_v30 = vsel %vm2455_vm11, %v5280_v41, %v2454_v24 }
 0x74b   : >>> { %v2468_v21 = vmul.f32 %v5348_v42, %v5299_v63  ;;  %vm2469_vm13 = vcmp.eq.f32.partialorder %v5299_v63, inf  ;;  %vm2471_vm15 = vcmp.eq.f32.partialorder %v5299_v63, 0.0  ;;  %v2459_v15 = vsel %vm2457_vm12, %v2458_v17, %v2456_v30  ;;  %v5565_v49 = vpop.f32.mrb[56].mxu0  ;;  %v6308_v30 = vld [vmem:[#allocation94_spill] sm:$0xff] }
 0x74c   : >>> { %v2824_v1 = vmax.f32 %v2760_v16, 0.0  ;;  %v5559_v35 = vmax.f32 %v2199_v45, 0.0  ;;  %v2886_v4 = vmul.f32 %v2822_v2, %v2822_v2  ;;  %v2472_v31 = vand.u32 2147483648, %v5299_v63  ;;  %v5569_v50 = vpop.f32.mrb[57].mxu0 }
 0x74d   : >>> { %v2470_v56 = vsel %vm2469_vm13, %v5299_v63, %v2468_v21  ;;  %v2757_v41 = vsub.f32 2.0, %v2459_v15  ;;  %v2136_v42 = vmul.f32 2.0, %v5429_v62  ;;  %v2137_v60 = vmul.f32 2.0, %v5440_v55  ;;  %v6307_v62 = vld [vmem:[#allocation93_spill] sm:$0xff] }
 0x74e   : >>> { %v2888_v53 = vmul.f32 %v2824_v1, %v2824_v1  ;;  %3680 = vrsqrt.f32 %v5559_v35  ;;  %v2473_v22 = vsel %vm2471_vm15, %v2472_v31, %v2470_v56  ;;  %v2138_v32 = vmul.f32 2.0, %v5448_v37 }
 0x74f   : >>> { %v2489_v36 = vmul.f32 %v5385_v13, %v5326_v48  ;;  %v5575_v44 = vpop.eup %3674  ;;  %v2759_v7 = vsub.f32 2.0, %v2473_v22  ;;  %v2821_v24 = vmax.f32 %v2757_v41, 0.0  ;;  %v2200_v16 = vsub.f32 %v5062_v58, %v2136_v42  ;;  %v5584_v55 = vpop.f32.mrb[58].mxu0 }
 0x750   : >>> { %v3443_v63 = vpack.c.bf16 %v2888_v53, %v2886_v4  ;;  %v5578_v45 = vpop.eup %3676  ;;  %v2201_v2 = vsub.f32 %v6307_v62, %v2137_v60  ;;  %v2202_v17 = vsub.f32 %v6308_v30, %v2138_v32  ;;  %vm2490_vm0 = vcmp.eq.f32.partialorder %v5326_v48, inf  ;;  %v5591_v4 = vpop.f32.mrb[59].mxu0 }
 0x751   : >>> { %vm2492_vm3 = vcmp.eq.f32.partialorder %v5326_v48, 0.0  ;;  %v5586_v13 = vpop.eup %3678  ;;  %v2823_v37 = vmax.f32 %v2759_v7, 0.0  ;;  %v2885_v21 = vmul.f32 %v2821_v24, %v2821_v24  ;;  %v5588_v1 = vmax.f32 %v2200_v16, 0.0 }
 0x752   : >>> { %3444 = vmatprep.subr.bf16.mxu1 %v3443_v63  ;;  %v2491_v58 = vsel %vm2490_vm0, %v5326_v48, %v2489_v36  ;;  %v5593_v15 = vmax.f32 %v2201_v2, 0.0  ;;  %v5595_v56 = vmax.f32 %v2202_v17, 0.0  ;;  %v2493_v31 = vand.u32 2147483648, %v5326_v48  ;;  %v6309_v2 = vld [vmem:[#allocation95_spill] sm:$0xff] }
 0x753   : >>> { %v2503_v53 = vmul.f32 %v5437_v5, %v5379_v61  ;;  %v2887_v41 = vmul.f32 %v2823_v37, %v2823_v37  ;;  %3682 = vrsqrt.f32 %v5588_v1  ;;  %vm2504_vm4 = vcmp.eq.f32.partialorder %v5379_v61, inf  ;;  %v5608_v32 = vpop.f32.mrb[60].mxu0 }
 0x754   : >>> { %vm2506_vm5 = vcmp.eq.f32.partialorder %v5379_v61, 0.0  ;;  %3684 = vrsqrt.f32 %v5593_v15  ;;  %v2494_v42 = vsel %vm2492_vm3, %v2493_v31, %v2491_v58  ;;  %v2507_v60 = vand.u32 2147483648, %v5379_v61  ;;  %v5612_v7 = vpop.f32.mrb[61].mxu0 }
 0x755   : >>> { %v2505_v22 = vsel %vm2504_vm4, %v5379_v61, %v2503_v53  ;;  %v3445_v36 = vpack.c.bf16 %v2887_v41, %v2885_v21  ;;  %3686 = vrsqrt.f32 %v5595_v56  ;;  %v2762_v5 = vsub.f32 2.0, %v2494_v42 }
 0x756   : >>> { %v2139_v63 = vmul.f32 2.0, %v5465_v10  ;;  %v2508_v24 = vsel %vm2506_vm5, %v2507_v60, %v2505_v22  ;;  %v2482_v16 = vmul.f32 %v5377_v28, %v5324_v34  ;;  %vm2483_vm6 = vcmp.eq.f32.partialorder %v5324_v34, inf }
 0x757   : >>> { %vm2485_vm8 = vcmp.eq.f32.partialorder %v5324_v34, 0.0  ;;  %3446 = vmatpush1.bf16.msra.mxu1 %v3445_v36  ;;  %v2764_v61 = vsub.f32 2.0, %v2508_v24  ;;  %v2826_v62 = vmax.f32 %v2762_v5, 0.0  ;;  %v2486_v17 = vand.u32 2147483648, %v5324_v34  ;;  %v5627_v28 = vpop.f32.mrb[62].mxu0 }
 0x758   : >>> { %v5618_v48 = vpop.eup %3680  ;;  %v2203_v30 = vsub.f32 %v6309_v2, %v2139_v63  ;;  %v2484_v10 = vsel %vm2483_vm6, %v5324_v34, %v2482_v16  ;;  %v2496_v37 = vmul.f32 %v5415_v12, %v5359_v9  ;;  %vm2497_vm10 = vcmp.eq.f32.partialorder %v5359_v9, inf  ;;  %v5631_v41 = vpop.f32.mrb[63].mxu0  ;;  %v6310_v16 = vld [vmem:[#allocation96_spill] sm:$0xff] }
 0x759   : >>> { %vm2499_vm11 = vcmp.eq.f32.partialorder %v5359_v9, 0.0  ;;  %v2828_v21 = vmax.f32 %v2764_v61, 0.0  ;;  %v2890_v58 = vmul.f32 %v2826_v62, %v2826_v62  ;;  %v2487_v53 = vsel %vm2485_vm8, %v2486_v17, %v2484_v10  ;;  %v6311_v17 = vld [vmem:[#allocation97_spill] sm:$0xff]  ;;  %v6312_v10 = vld [vmem:[#allocation98_spill] sm:$0xff] }
 0x75a   : >>> { %v5629_v31 = vmax.f32 %v2203_v30, 0.0  ;;  %v2498_v42 = vsel %vm2497_vm10, %v5359_v9, %v2496_v37  ;;  %v2500_v34 = vand.u32 2147483648, %v5359_v9  ;;  %v2761_v22 = vsub.f32 2.0, %v2487_v53 }
 0x75b   : >>> { %v2140_v12 = vmul.f32 2.0, %v5472_v25  ;;  %v2892_v60 = vmul.f32 %v2828_v21, %v2828_v21  ;;  %v2141_v36 = vmul.f32 2.0, %v5484_v14  ;;  %v2142_v5 = vmul.f32 2.0, %v5491_v18 }
 0x75c   : >>> { %3688 = vrsqrt.f32 %v5629_v31  ;;  %v2501_v63 = vsel %vm2499_vm11, %v2500_v34, %v2498_v42  ;;  %v2825_v24 = vmax.f32 %v2761_v22, 0.0  ;;  %v2517_v62 = vmul.f32 %v5450_v43, %v5389_v46 }
 0x75d   : >>> { %v2204_v61 = vsub.f32 %v6310_v16, %v2140_v12  ;;  %v5642_v2 = vpop.eup %3682  ;;  %v3447_v9 = vpack.c.bf16 %v2892_v60, %v2890_v58  ;;  %v2763_v30 = vsub.f32 2.0, %v2501_v63  ;;  %v2205_v25 = vsub.f32 %v6311_v17, %v2141_v36 }
 0x75e   : >>> { %v2206_v37 = vsub.f32 %v6312_v10, %v2142_v5  ;;  %v5646_v21 = vpop.eup %3684  ;;  %v2889_v14 = vmul.f32 %v2825_v24, %v2825_v24  ;;  %vm2518_vm12 = vcmp.eq.f32.partialorder %v5389_v46, inf  ;;  %vm2520_vm13 = vcmp.eq.f32.partialorder %v5389_v46, 0.0 }
 0x75f   : >>> { %v5648_v53 = vmax.f32 %v2204_v61, 0.0  ;;  %v5652_v18 = vpop.eup %3686  ;;  %3448 = vmatprep.subr.bf16.mxu1 %v3447_v9  ;;  %v2827_v43 = vmax.f32 %v2763_v30, 0.0  ;;  %v5654_v42 = vmax.f32 %v2205_v25, 0.0  ;;  %v2519_v34 = vsel %vm2518_vm12, %v5389_v46, %v2517_v62  ;;  %v6313_v30 = vld [vmem:[#allocation99_spill] sm:$0xff] }
 0x760   : >>> { %v5656_v58 = vmax.f32 %v2206_v37, 0.0  ;;  %v2521_v22 = vand.u32 2147483648, %v5389_v46  ;;  %v2531_v12 = vmul.f32 %v5510_v19, %v5452_v54  ;;  %vm2532_vm15 = vcmp.eq.f32.partialorder %v5452_v54, inf }
 0x761   : >>> { %3690 = vrsqrt.f32 %v5648_v53  ;;  %v2891_v60 = vmul.f32 %v2827_v43, %v2827_v43  ;;  %vm2534_vm0 = vcmp.eq.f32.partialorder %v5452_v54, 0.0  ;;  %v2535_v36 = vand.u32 2147483648, %v5452_v54 }
 0x762   : >>> { %3692 = vrsqrt.f32 %v5654_v42  ;;  %v2522_v5 = vsel %vm2520_vm13, %v2521_v22, %v2519_v34  ;;  %v2533_v63 = vsel %vm2532_vm15, %v5452_v54, %v2531_v12  ;;  %v2143_v24 = vmul.f32 2.0, %v5503_v23 }
 0x763   : >>> { %3694 = vrsqrt.f32 %v5656_v58  ;;  %v3449_v16 = vpack.c.bf16 %v2891_v60, %v2889_v14  ;;  %v2536_v19 = vsel %vm2534_vm0, %v2535_v36, %v2533_v63  ;;  %v2766_v61 = vsub.f32 2.0, %v2522_v5  ;;  %v6314_v60 = vld [vmem:[#allocation78_spill] sm:$0xff]  ;;  %v6315_v36 = vld [vmem:[#allocation92_spill] sm:$0xff] }
 0x764   : >>> { %v2510_v62 = vmul.f32 %v5442_v40, %v5387_v51  ;;  %v2768_v9 = vsub.f32 2.0, %v2536_v19  ;;  %v2207_v17 = vsub.f32 %v6313_v30, %v2143_v24  ;;  %vm2511_vm3 = vcmp.eq.f32.partialorder %v5387_v51, inf  ;;  %v6316_v24 = vld [vmem:[#allocation80_spill] sm:$0xff] }
 0x765   : >>> { %vm2513_vm4 = vcmp.eq.f32.partialorder %v5387_v51, 0.0  ;;  %3450 = vmatpush1.bf16.msra.mxu1 %v3449_v16  ;;  %v2830_v46 = vmax.f32 %v2766_v61, 0.0  ;;  %v2514_v23 = vand.u32 2147483648, %v5387_v51  ;;  %v2524_v10 = vmul.f32 %v5480_v0, %v5421_v6  ;;  %v6317_v16 = vld [vmem:[#allocation91_spill] sm:$0xff] }
 0x766   : >>> { %v5677_v25 = vpop.eup %3688  ;;  %v2512_v54 = vsel %vm2511_vm3, %v5387_v51, %v2510_v62  ;;  %v2832_v37 = vmax.f32 %v2768_v9, 0.0  ;;  %v5683_v40 = vmax.f32 %v2207_v17, 0.0  ;;  %vm2525_vm5 = vcmp.eq.f32.partialorder %v5421_v6, inf }
 0x767   : >>> { %vm2527_vm6 = vcmp.eq.f32.partialorder %v5421_v6, 0.0  ;;  %v2894_v14 = vmul.f32 %v2830_v46, %v2830_v46  ;;  %v2515_v43 = vsel %vm2513_vm4, %v2514_v23, %v2512_v54  ;;  %v2526_v34 = vsel %vm2525_vm5, %v5421_v6, %v2524_v10 }
 0x768   : >>> { %v2528_v22 = vand.u32 2147483648, %v5421_v6  ;;  %v2896_v12 = vmul.f32 %v2832_v37, %v2832_v37  ;;  %3696 = vrsqrt.f32 %v5683_v40  ;;  %v2765_v51 = vsub.f32 2.0, %v2515_v43 }
 0x769   : >>> { %v2080_v0 = vadd.f32 %v6315_v36, %v6314_v60  ;;  %v2144_v63 = vmul.f32 2.0, %v5508_v20  ;;  %v2081_v19 = vadd.f32 %v6317_v16, %v6316_v24  ;;  %v2145_v61 = vmul.f32 2.0, %v5527_v57 }
 0x76a   : >>> { %v2529_v5 = vsel %vm2527_vm6, %v2528_v22, %v2526_v34  ;;  %v3451_v9 = vpack.c.bf16 %v2896_v12, %v2894_v14  ;;  %v2829_v6 = vmax.f32 %v2765_v51, 0.0  ;;  %v2082_v17 = vadd.f32 %v6315_v36, %v6316_v24 }
 0x76b   : >>> { %v5696_v62 = vpop.eup %3690  ;;  %v2767_v30 = vsub.f32 2.0, %v2529_v5  ;;  %v2208_v54 = vsub.f32 %v2080_v0, %v2144_v63  ;;  %v2209_v23 = vsub.f32 %v2081_v19, %v2145_v61  ;;  %v2146_v10 = vmul.f32 2.0, %v5534_v26  ;;  %v6318_v61 = vld [vmem:[#allocation82_spill] sm:$0xff] }
 0x76c   : >>> { %v5700_v46 = vpop.eup %3692  ;;  %v2545_v20 = vmul.f32 %v5520_v27, %v5457_v47  ;;  %3452 = vmatprep.subr.bf16.mxu1 %v3451_v9  ;;  %v2893_v43 = vmul.f32 %v2829_v6, %v2829_v6  ;;  %vm2546_vm8 = vcmp.eq.f32.partialorder %v5457_v47, inf  ;;  %vm2548_vm10 = vcmp.eq.f32.partialorder %v5457_v47, 0.0 }
 0x76d   : >>> { %v5705_v37 = vpop.eup %3694  ;;  %v2831_v57 = vmax.f32 %v2767_v30, 0.0  ;;  %v5709_v14 = vmax.f32 %v2208_v54, 0.0  ;;  %v5711_v34 = vmax.f32 %v2209_v23, 0.0  ;;  %v2210_v22 = vsub.f32 %v2082_v17, %v2146_v10 }
 0x76e   : >>> { %v2547_v12 = vsel %vm2546_vm8, %v5457_v47, %v2545_v20  ;;  %v2549_v51 = vand.u32 2147483648, %v5457_v47  ;;  %v2559_v27 = vmul.f32 %v5575_v44, %v5516_v39  ;;  %vm2560_vm11 = vcmp.eq.f32.partialorder %v5516_v39, inf }
 0x76f   : >>> { %v2895_v26 = vmul.f32 %v2831_v57, %v2831_v57  ;;  %3698 = vrsqrt.f32 %v5709_v14  ;;  %v5719_v60 = vmax.f32 %v2210_v22, 0.0  ;;  %vm2562_vm12 = vcmp.eq.f32.partialorder %v5516_v39, 0.0 }
 0x770   : >>> { %v2563_v0 = vand.u32 2147483648, %v5516_v39  ;;  %3700 = vrsqrt.f32 %v5711_v34  ;;  %v2550_v63 = vsel %vm2548_vm10, %v2549_v51, %v2547_v12  ;;  %v2561_v19 = vsel %vm2560_vm11, %v5516_v39, %v2559_v27 }
 0x771   : >>> { %v3453_v5 = vpack.c.bf16 %v2895_v26, %v2893_v43  ;;  %3702 = vrsqrt.f32 %v5719_v60  ;;  %v2770_v44 = vsub.f32 2.0, %v2550_v63  ;;  %v2083_v9 = vadd.f32 %v6317_v16, %v6318_v61 }
 0x772   : >>> { %v2564_v47 = vsel %vm2562_vm12, %v2563_v0, %v2561_v19  ;;  %v5728_v30 = vpop.eup %3696  ;;  %v2147_v17 = vmul.f32 2.0, %v5546_v59  ;;  %v2538_v54 = vmul.f32 %v5514_v33, %v5455_v29  ;;  %vm2539_vm13 = vcmp.eq.f32.partialorder %v5455_v29, inf }
 0x773   : >>> { %3454 = vmatpush1.bf16.msra.mxu1 %v3453_v5  ;;  %v2772_v6 = vsub.f32 2.0, %v2564_v47  ;;  %v2834_v23 = vmax.f32 %v2770_v44, 0.0  ;;  %vm2541_vm15 = vcmp.eq.f32.partialorder %v5455_v29, 0.0  ;;  %v2542_v39 = vand.u32 2147483648, %v5455_v29 }
 0x774   : >>> { %v2552_v10 = vmul.f32 %v5553_v3, %v5493_v11  ;;  %v2211_v57 = vsub.f32 %v2083_v9, %v2147_v17  ;;  %v2540_v43 = vsel %vm2539_vm13, %v5455_v29, %v2538_v54  ;;  %vm2553_vm0 = vcmp.eq.f32.partialorder %v5493_v11, inf  ;;  %v6319_v29 = vld [vmem:[#allocation84_spill] sm:$0xff] }
 0x775   : >>> { %v2836_v20 = vmax.f32 %v2772_v6, 0.0  ;;  %v2898_v59 = vmul.f32 %v2834_v23, %v2834_v23  ;;  %v2543_v22 = vsel %vm2541_vm15, %v2542_v39, %v2540_v43  ;;  %vm2555_vm3 = vcmp.eq.f32.partialorder %v5493_v11, 0.0 }
 0x776   : >>> { %v2554_v33 = vsel %vm2553_vm0, %v5493_v11, %v2552_v10  ;;  %v5742_v26 = vmax.f32 %v2211_v57, 0.0  ;;  %v2556_v51 = vand.u32 2147483648, %v5493_v11  ;;  %v2769_v27 = vsub.f32 2.0, %v2543_v22 }
 0x777   : >>> { %v2900_v12 = vmul.f32 %v2836_v20, %v2836_v20  ;;  %v2084_v3 = vadd.f32 %v6315_v36, %v6318_v61  ;;  %v2148_v0 = vmul.f32 2.0, %v5551_v38  ;;  %v2085_v5 = vadd.f32 %v6317_v16, %v6319_v29 }
 0x778   : >>> { %v2149_v63 = vmul.f32 2.0, %v5565_v49  ;;  %3704 = vrsqrt.f32 %v5742_v26  ;;  %v2557_v47 = vsel %vm2555_vm3, %v2556_v51, %v2554_v33  ;;  %v2833_v44 = vmax.f32 %v2769_v27, 0.0 }
 0x779   : >>> { %v3455_v19 = vpack.c.bf16 %v2900_v12, %v2898_v59  ;;  %v5752_v9 = vpop.eup %3698  ;;  %v2771_v6 = vsub.f32 2.0, %v2557_v47  ;;  %v2212_v11 = vsub.f32 %v2084_v3, %v2148_v0  ;;  %v2086_v54 = vadd.f32 %v6315_v36, %v6319_v29 }
 0x77a   : >>> { %v2213_v17 = vsub.f32 %v2085_v5, %v2149_v63  ;;  %v5756_v23 = vpop.eup %3700  ;;  %v2897_v38 = vmul.f32 %v2833_v44, %v2833_v44  ;;  %v2150_v39 = vmul.f32 2.0, %v5569_v50  ;;  %v2573_v49 = vmul.f32 %v5586_v13, %v5524_v8  ;;  %v6320_v5 = vld [vmem:[#allocation86_spill] sm:$0xff] }
 0x77b   : >>> { %3456 = vmatprep.subr.bf16.mxu1 %v3455_v19  ;;  %vm2574_vm4 = vcmp.eq.f32.partialorder %v5524_v8, inf  ;;  %v5762_v10 = vpop.eup %3702  ;;  %v2835_v20 = vmax.f32 %v2771_v6, 0.0  ;;  %v5764_v57 = vmax.f32 %v2212_v11, 0.0  ;;  %vm2576_vm5 = vcmp.eq.f32.partialorder %v5524_v8, 0.0 }
 0x77c   : >>> { %v5766_v43 = vmax.f32 %v2213_v17, 0.0  ;;  %v2214_v59 = vsub.f32 %v2086_v54, %v2150_v39  ;;  %v2575_v22 = vsel %vm2574_vm4, %v5524_v8, %v2573_v49  ;;  %v2577_v33 = vand.u32 2147483648, %v5524_v8 }
 0x77d   : >>> { %v2587_v50 = vmul.f32 %v5642_v2, %v5588_v1  ;;  %v2899_v13 = vmul.f32 %v2835_v20, %v2835_v20  ;;  %3706 = vrsqrt.f32 %v5764_v57  ;;  %vm2588_vm6 = vcmp.eq.f32.partialorder %v5588_v1, inf }
 0x77e   : >>> { %vm2590_vm8 = vcmp.eq.f32.partialorder %v5588_v1, 0.0  ;;  %3708 = vrsqrt.f32 %v5766_v43  ;;  %v5777_v12 = vmax.f32 %v2214_v59, 0.0  ;;  %v2578_v51 = vsel %vm2576_vm5, %v2577_v33, %v2575_v22 }
 0x77f   : >>> { %v2589_v27 = vsel %vm2588_vm6, %v5588_v1, %v2587_v50  ;;  %v3457_v3 = vpack.c.bf16 %v2899_v13, %v2897_v38  ;;  %v2591_v8 = vand.u32 2147483648, %v5588_v1  ;;  %v2774_v0 = vsub.f32 2.0, %v2578_v51 }
 0x780   : >>> { %v2087_v2 = vadd.f32 %v6317_v16, %v6320_v5  ;;  %3710 = vrsqrt.f32 %v5777_v12  ;;  %v2151_v63 = vmul.f32 2.0, %v5584_v55  ;;  %v2566_v19 = vmul.f32 %v5578_v45, %v5522_v52 }
 0x781   : >>> { %vm2567_vm10 = vcmp.eq.f32.partialorder %v5522_v52, inf  ;;  %3458 = vmatpush1.bf16.msra.mxu1 %v3457_v3  ;;  %v2592_v47 = vsel %vm2590_vm8, %v2591_v8, %v2589_v27  ;;  %v2838_v44 = vmax.f32 %v2774_v0, 0.0  ;;  %vm2569_vm11 = vcmp.eq.f32.partialorder %v5522_v52, 0.0 }
 0x782   : >>> { %v2570_v1 = vand.u32 2147483648, %v5522_v52  ;;  %v5790_v6 = vpop.eup %3704  ;;  %v2776_v11 = vsub.f32 2.0, %v2592_v47  ;;  %v2215_v17 = vsub.f32 %v2087_v2, %v2151_v63  ;;  %v2568_v54 = vsel %vm2567_vm10, %v5522_v52, %v2566_v19 }
 0x783   : >>> { %v2580_v55 = vmul.f32 %v5618_v48, %v5559_v35  ;;  %v2902_v38 = vmul.f32 %v2838_v44, %v2838_v44  ;;  %vm2581_vm12 = vcmp.eq.f32.partialorder %v5559_v35, inf  ;;  %vm2583_vm13 = vcmp.eq.f32.partialorder %v5559_v35, 0.0  ;;  %v6321_v48 = vld [vmem:[#allocation88_spill] sm:$0xff] }
 0x784   : >>> { %v2571_v45 = vsel %vm2569_vm11, %v2570_v1, %v2568_v54  ;;  %v2840_v39 = vmax.f32 %v2776_v11, 0.0  ;;  %v5797_v49 = vmax.f32 %v2215_v17, 0.0  ;;  %v2584_v59 = vand.u32 2147483648, %v5559_v35 }
 0x785   : >>> { %v2582_v20 = vsel %vm2581_vm12, %v5559_v35, %v2580_v55  ;;  %v2773_v22 = vsub.f32 2.0, %v2571_v45  ;;  %v2088_v52 = vadd.f32 %v6315_v36, %v6320_v5  ;;  %v2152_v33 = vmul.f32 2.0, %v5591_v4 }
 0x786   : >>> { %v2089_v50 = vadd.f32 %v6317_v16, %v6321_v48  ;;  %v2904_v13 = vmul.f32 %v2840_v39, %v2840_v39  ;;  %3712 = vrsqrt.f32 %v5797_v49  ;;  %v2585_v51 = vsel %vm2583_vm13, %v2584_v59, %v2582_v20 }
 0x787   : >>> { %v2153_v27 = vmul.f32 2.0, %v5608_v32  ;;  %v5808_v3 = vpop.eup %3706  ;;  %v2775_v8 = vsub.f32 2.0, %v2585_v51  ;;  %v2837_v0 = vmax.f32 %v2773_v22, 0.0  ;;  %v2216_v35 = vsub.f32 %v2088_v52, %v2152_v33  ;;  %v6322_v33 = vld [vmem:[#allocation90_spill] sm:$0xff] }
 0x788   : >>> { %v2090_v2 = vadd.f32 %v6315_v36, %v6321_v48  ;;  %v5812_v63 = vpop.eup %3708  ;;  %v3459_v4 = vpack.c.bf16 %v2904_v13, %v2902_v38  ;;  %v2154_v47 = vmul.f32 2.0, %v5612_v7  ;;  %v2601_v44 = vmul.f32 %v5652_v18, %v5595_v56 }
 0x789   : >>> { %v2217_v19 = vsub.f32 %v2089_v50, %v2153_v27  ;;  %v2839_v1 = vmax.f32 %v2775_v8, 0.0  ;;  %v2901_v11 = vmul.f32 %v2837_v0, %v2837_v0  ;;  %v5817_v32 = vmax.f32 %v2216_v35, 0.0 }
 0x78a   : >>> { %vm2602_vm15 = vcmp.eq.f32.partialorder %v5595_v56, inf  ;;  %v5820_v17 = vpop.eup %3710  ;;  %3460 = vmatprep.subr.bf16.mxu1 %v3459_v4  ;;  %v2218_v55 = vsub.f32 %v2090_v2, %v2154_v47  ;;  %vm2604_vm0 = vcmp.eq.f32.partialorder %v5595_v56, 0.0  ;;  %v2605_v18 = vand.u32 2147483648, %v5595_v56 }
 0x78b   : >>> { %v5822_v54 = vmax.f32 %v2217_v19, 0.0  ;;  %v2603_v38 = vsel %vm2602_vm15, %v5595_v56, %v2601_v44  ;;  %v2903_v7 = vmul.f32 %v2839_v1, %v2839_v1  ;;  %3714 = vrsqrt.f32 %v5817_v32 }
 0x78c   : >>> { %v2615_v45 = vmul.f32 %v5696_v62, %v5648_v53  ;;  %v5831_v39 = vmax.f32 %v2218_v55, 0.0  ;;  %vm2616_vm3 = vcmp.eq.f32.partialorder %v5648_v53, inf  ;;  %vm2618_vm4 = vcmp.eq.f32.partialorder %v5648_v53, 0.0 }
 0x78d   : >>> { %3716 = vrsqrt.f32 %v5822_v54  ;;  %v3461_v20 = vpack.c.bf16 %v2903_v7, %v2901_v11  ;;  %v2606_v59 = vsel %vm2604_vm0, %v2605_v18, %v2603_v38  ;;  %v2619_v52 = vand.u32 2147483648, %v5648_v53 }
 0x78e   : >>> { %v2617_v22 = vsel %vm2616_vm3, %v5648_v53, %v2615_v45  ;;  %3718 = vrsqrt.f32 %v5831_v39  ;;  %v2778_v56 = vsub.f32 2.0, %v2606_v59  ;;  %v2091_v62 = vadd.f32 %v6317_v16, %v6322_v33 }
 0x78f   : >>> { %v2155_v50 = vmul.f32 2.0, %v5627_v28  ;;  %3462 = vmatpush1.bf16.msra.mxu1 %v3461_v20  ;;  %v2620_v13 = vsel %vm2618_vm4, %v2619_v52, %v2617_v22  ;;  %v2594_v51 = vmul.f32 %v5646_v21, %v5593_v15  ;;  %vm2595_vm5 = vcmp.eq.f32.partialorder %v5593_v15, inf }
 0x790   : >>> { %vm2597_vm6 = vcmp.eq.f32.partialorder %v5593_v15, 0.0  ;;  %v5845_v27 = vpop.eup %3712  ;;  %v2780_v53 = vsub.f32 2.0, %v2620_v13  ;;  %v2842_v8 = vmax.f32 %v2778_v56, 0.0  ;;  %v2598_v35 = vand.u32 2147483648, %v5593_v15 }
 0x791   : >>> { %v2219_v0 = vsub.f32 %v2091_v62, %v2155_v50  ;;  %v2596_v16 = vsel %vm2595_vm5, %v5593_v15, %v2594_v51  ;;  %v2608_v28 = vmul.f32 %v5677_v25, %v5629_v31  ;;  %vm2609_vm8 = vcmp.eq.f32.partialorder %v5629_v31, inf }
 0x792   : >>> { %vm2611_vm10 = vcmp.eq.f32.partialorder %v5629_v31, 0.0  ;;  %v2844_v21 = vmax.f32 %v2780_v53, 0.0  ;;  %v2906_v2 = vmul.f32 %v2842_v8, %v2842_v8  ;;  %v2599_v19 = vsel %vm2597_vm6, %v2598_v35, %v2596_v16 }
 0x793   : >>> { %v5853_v4 = vmax.f32 %v2219_v0, 0.0  ;;  %v2610_v47 = vsel %vm2609_vm8, %v5629_v31, %v2608_v28  ;;  %v2612_v44 = vand.u32 2147483648, %v5629_v31  ;;  %v2777_v1 = vsub.f32 2.0, %v2599_v19 }
 0x794   : >>> { %v2092_v15 = vadd.f32 %v6315_v36, %v6322_v33  ;;  %v2908_v11 = vmul.f32 %v2844_v21, %v2844_v21  ;;  %v2156_v25 = vmul.f32 2.0, %v5631_v41  ;;  %v2629_v55 = vmul.f32 %v5705_v37, %v5656_v58 }
 0x795   : >>> { %3720 = vrsqrt.f32 %v5853_v4  ;;  %v5863_v38 = vpop.eup %3714  ;;  %v2613_v7 = vsel %vm2611_vm10, %v2612_v44, %v2610_v47  ;;  %v2841_v18 = vmax.f32 %v2777_v1, 0.0  ;;  %vm2630_vm11 = vcmp.eq.f32.partialorder %v5656_v58, inf }
 0x796   : >>> { %vm2632_vm12 = vcmp.eq.f32.partialorder %v5656_v58, 0.0  ;;  %v3463_v45 = vpack.c.bf16 %v2908_v11, %v2906_v2  ;;  %v2779_v36 = vsub.f32 2.0, %v2613_v7  ;;  %v2220_v20 = vsub.f32 %v2092_v15, %v2156_v25 }
 0x797   : >>> { %v5867_v31 = vpop.eup %3716  ;;  %v2631_v59 = vsel %vm2630_vm11, %v5656_v58, %v2629_v55  ;;  %v2905_v22 = vmul.f32 %v2841_v18, %v2841_v18  ;;  %v2633_v41 = vand.u32 2147483648, %v5656_v58  ;;  %v2643_v37 = vmul.f32 %v5752_v9, %v5709_v14 }
 0x798   : >>> { %vm2644_vm13 = vcmp.eq.f32.partialorder %v5709_v14, inf  ;;  %v5874_v52 = vpop.eup %3718  ;;  %3464 = vmatprep.subr.bf16.mxu1 %v3463_v45  ;;  %v2843_v56 = vmax.f32 %v2779_v36, 0.0  ;;  %v5876_v62 = vmax.f32 %v2220_v20, 0.0  ;;  %vm2646_vm15 = vcmp.eq.f32.partialorder %v5709_v14, 0.0 }
 0x799   : >>> { %v2647_v50 = vand.u32 2147483648, %v5709_v14  ;;  %v2634_v13 = vsel %vm2632_vm12, %v2633_v41, %v2631_v59  ;;  %v2645_v51 = vsel %vm2644_vm13, %v5709_v14, %v2643_v37  ;;  %v2622_v9 = vmul.f32 %v5700_v46, %v5654_v42 }
 0x79a   : >>> { %vm2623_vm0 = vcmp.eq.f32.partialorder %v5654_v42, inf  ;;  %v2907_v53 = vmul.f32 %v2843_v56, %v2843_v56  ;;  %3722 = vrsqrt.f32 %v5876_v62  ;;  %v2782_v0 = vsub.f32 2.0, %v2634_v13 }
 0x79b   : >>> { %v2648_v8 = vsel %vm2646_vm15, %v2647_v50, %v2645_v51  ;;  %v2624_v16 = vsel %vm2623_vm0, %v5654_v42, %v2622_v9  ;;  %vm2625_vm3 = vcmp.eq.f32.partialorder %v5654_v42, 0.0  ;;  %v2626_v58 = vand.u32 2147483648, %v5654_v42 }
 0x79c   : >>> { %v2784_v35 = vsub.f32 2.0, %v2648_v8  ;;  %v3465_v28 = vpack.c.bf16 %v2907_v53, %v2905_v22  ;;  %v2846_v21 = vmax.f32 %v2782_v0, 0.0  ;;  %v2636_v14 = vmul.f32 %v5728_v30, %v5683_v40 }
 0x79d   : >>> { %vm2637_vm4 = vcmp.eq.f32.partialorder %v5683_v40, inf  ;;  %v2627_v2 = vsel %vm2625_vm3, %v2626_v58, %v2624_v16  ;;  %vm2639_vm5 = vcmp.eq.f32.partialorder %v5683_v40, 0.0  ;;  %v2640_v19 = vand.u32 2147483648, %v5683_v40 }
 0x79e   : >>> { %v2848_v46 = vmax.f32 %v2784_v35, 0.0  ;;  %3466 = vmatpush1.bf16.msra.mxu1 %v3465_v28  ;;  %v2910_v44 = vmul.f32 %v2846_v21, %v2846_v21  ;;  %v2638_v1 = vsel %vm2637_vm4, %v5683_v40, %v2636_v14  ;;  %v2781_v42 = vsub.f32 2.0, %v2627_v2 }
 0x79f   : >>> { %v5895_v47 = vpop.eup %3720  ;;  %v2657_v15 = vmul.f32 %v5762_v10, %v5719_v60  ;;  %v2641_v30 = vsel %vm2639_vm5, %v2640_v19, %v2638_v1  ;;  %vm2658_vm6 = vcmp.eq.f32.partialorder %v5719_v60, inf  ;;  %vm2660_vm8 = vcmp.eq.f32.partialorder %v5719_v60, 0.0 }
 0x7a0   : >>> { %v2912_v11 = vmul.f32 %v2848_v46, %v2848_v46  ;;  %v2783_v25 = vsub.f32 2.0, %v2641_v30  ;;  %v2845_v55 = vmax.f32 %v2781_v42, 0.0  ;;  %v2661_v18 = vand.u32 2147483648, %v5719_v60 }
 0x7a1   : >>> { %v2659_v7 = vsel %vm2658_vm6, %v5719_v60, %v2657_v15  ;;  %v2671_v40 = vmul.f32 %v5808_v3, %v5764_v57  ;;  %vm2672_vm10 = vcmp.eq.f32.partialorder %v5764_v57, inf  ;;  %vm2674_vm11 = vcmp.eq.f32.partialorder %v5764_v57, 0.0 }
 0x7a2   : >>> { %v3467_v45 = vpack.c.bf16 %v2912_v11, %v2910_v44  ;;  %v2847_v10 = vmax.f32 %v2783_v25, 0.0  ;;  %v2909_v36 = vmul.f32 %v2845_v55, %v2845_v55  ;;  %v2662_v20 = vsel %vm2660_vm8, %v2661_v18, %v2659_v7 }
 0x7a3   : >>> { %v2675_v59 = vand.u32 2147483648, %v5764_v57  ;;  %v2673_v22 = vsel %vm2672_vm10, %v5764_v57, %v2671_v40  ;;  %v2786_v41 = vsub.f32 2.0, %v2662_v20  ;;  %v2650_v60 = vmul.f32 %v5756_v23, %v5711_v34 }
 0x7a4   : >>> { %3468 = vmatprep.subr.bf16.mxu1 %v3467_v45  ;;  %vm2651_vm12 = vcmp.eq.f32.partialorder %v5711_v34, inf  ;;  %v5913_v37 = vpop.eup %3722  ;;  %v2911_v3 = vmul.f32 %v2847_v10, %v2847_v10  ;;  %vm2653_vm13 = vcmp.eq.f32.partialorder %v5711_v34, 0.0  ;;  %v2654_v50 = vand.u32 2147483648, %v5711_v34 }
 0x7a5   : >>> { %v2676_v56 = vsel %vm2674_vm11, %v2675_v59, %v2673_v22  ;;  %v2850_v51 = vmax.f32 %v2786_v41, 0.0  ;;  %v2652_v9 = vsel %vm2651_vm12, %v5711_v34, %v2650_v60  ;;  %v2664_v57 = vmul.f32 %v5790_v6, %v5742_v26 }
 0x7a6   : >>> { %v2788_v13 = vsub.f32 2.0, %v2676_v56  ;;  %v3469_v53 = vpack.c.bf16 %v2911_v3, %v2909_v36  ;;  %v2655_v8 = vsel %vm2653_vm13, %v2654_v50, %v2652_v9  ;;  %vm2665_vm15 = vcmp.eq.f32.partialorder %v5742_v26, inf }
 0x7a7   : >>> { %vm2667_vm0 = vcmp.eq.f32.partialorder %v5742_v26, 0.0  ;;  %v2914_v0 = vmul.f32 %v2850_v51, %v2850_v51  ;;  %v2666_v35 = vsel %vm2665_vm15, %v5742_v26, %v2664_v57  ;;  %v2668_v16 = vand.u32 2147483648, %v5742_v26 }
 0x7a8   : >>> { %v2852_v23 = vmax.f32 %v2788_v13, 0.0  ;;  %3470 = vmatpush1.bf16.msra.mxu1 %v3469_v53  ;;  %v2785_v58 = vsub.f32 2.0, %v2655_v8  ;;  %v2685_v34 = vmul.f32 %v5820_v17, %v5777_v12  ;;  %vm2686_vm3 = vcmp.eq.f32.partialorder %v5777_v12, inf }
 0x7a9   : >>> { %vm2688_vm4 = vcmp.eq.f32.partialorder %v5777_v12, 0.0  ;;  %v2669_v28 = vsel %vm2667_vm0, %v2668_v16, %v2666_v35  ;;  %v2689_v21 = vand.u32 2147483648, %v5777_v12  ;;  %v2699_v14 = vmul.f32 %v5863_v38, %v5817_v32 }
 0x7aa   : >>> { %v2916_v6 = vmul.f32 %v2852_v23, %v2852_v23  ;;  %v2787_v46 = vsub.f32 2.0, %v2669_v28  ;;  %v2849_v2 = vmax.f32 %v2785_v58, 0.0  ;;  %v2687_v26 = vsel %vm2686_vm3, %v5777_v12, %v2685_v34 }
 0x7ab   : >>> { %vm2700_vm5 = vcmp.eq.f32.partialorder %v5817_v32, inf  ;;  %v2690_v44 = vsel %vm2688_vm4, %v2689_v21, %v2687_v26  ;;  %vm2702_vm6 = vcmp.eq.f32.partialorder %v5817_v32, 0.0  ;;  %v2703_v15 = vand.u32 2147483648, %v5817_v32  ;;  %v1647_v21 = vld [vmem:[%s1646_s19] sm:$0x3] }
 0x7ac   : >>> { %v3471_v19 = vpack.c.bf16 %v2916_v6, %v2914_v0  ;;  %v2701_v17 = vsel %vm2700_vm5, %v5817_v32, %v2699_v14  ;;  %v2851_v1 = vmax.f32 %v2787_v46, 0.0  ;;  %v2913_v42 = vmul.f32 %v2849_v2, %v2849_v2 }
 0x7ad   : >>> { %v2790_v11 = vsub.f32 2.0, %v2690_v44  ;;  %v2678_v38 = vmul.f32 %v5812_v63, %v5766_v43  ;;  %vm2679_vm8 = vcmp.eq.f32.partialorder %v5766_v43, inf  ;;  %vm2681_vm10 = vcmp.eq.f32.partialorder %v5766_v43, 0.0 }
 0x7ae   : >>> { %3472 = vmatprep.subr.bf16.mxu1 %v3471_v19  ;;  %v2682_v12 = vand.u32 2147483648, %v5766_v43  ;;  %v2915_v30 = vmul.f32 %v2851_v1, %v2851_v1  ;;  %v2704_v25 = vsel %vm2702_vm6, %v2703_v15, %v2701_v17  ;;  %v2692_v7 = vmul.f32 %v5845_v27, %v5797_v49 }
 0x7af   : >>> { %v2854_v55 = vmax.f32 %v2790_v11, 0.0  ;;  %v2792_v18 = vsub.f32 2.0, %v2704_v25  ;;  %v2680_v32 = vsel %vm2679_vm8, %v5766_v43, %v2678_v38  ;;  %vm2693_vm11 = vcmp.eq.f32.partialorder %v5797_v49, inf }
 0x7b0   : >>> { %vm2695_vm12 = vcmp.eq.f32.partialorder %v5797_v49, 0.0  ;;  %v3473_v63 = vpack.c.bf16 %v2915_v30, %v2913_v42  ;;  %v2683_v40 = vsel %vm2681_vm10, %v2682_v12, %v2680_v32  ;;  %v2694_v10 = vsel %vm2693_vm11, %v5797_v49, %v2692_v7  ;;  %v6324_v42 = vld [vmem:[#allocation19_spill] sm:$0xff]  ;;  %v6325_v12 = vld [vmem:[#allocation17_spill] sm:$0xff]  ;;  %v6326_v30 = vld [vmem:[#allocation18_spill] sm:$0xff] }
 0x7b1   : >>> { %v2918_v45 = vmul.f32 %v2854_v55, %v2854_v55  ;;  %v2856_v36 = vmax.f32 %v2792_v18, 0.0  ;;  %v2696_v20 = vand.u32 2147483648, %v5797_v49  ;;  %v2789_v59 = vsub.f32 2.0, %v2683_v40  ;;  %v2996_v32 = vld [vmem:[#allocation2] sm:$0x7] }
 0x7b2   : >>> { %v2713_v22 = vmul.f32 %v5874_v52, %v5831_v39  ;;  %3474 = vmatpush1.bf16.msra.mxu1 %v3473_v63  ;;  %vm2714_vm13 = vcmp.eq.f32.partialorder %v5831_v39, inf  ;;  %vm2716_vm15 = vcmp.eq.f32.partialorder %v5831_v39, 0.0  ;;  %v2717_v43 = vand.u32 2147483648, %v5831_v39 }
 0x7b3   : >>> { %v2727_v27 = vmul.f32 %v5913_v37, %v5876_v62  ;;  %v2920_v41 = vmul.f32 %v2856_v36, %v2856_v36  ;;  %v2697_v60 = vsel %vm2695_vm12, %v2696_v20, %v2694_v10  ;;  %v2853_v3 = vmax.f32 %v2789_v59, 0.0 }
 0x7b4   : >>> { %v2715_v56 = vsel %vm2714_vm13, %v5831_v39, %v2713_v22  ;;  %v2791_v49 = vsub.f32 2.0, %v2697_v60  ;;  %vm2728_vm0 = vcmp.eq.f32.partialorder %v5876_v62, inf  ;;  %vm2730_vm3 = vcmp.eq.f32.partialorder %v5876_v62, 0.0 }
 0x7b5   : >>> { %v2718_v50 = vsel %vm2716_vm15, %v2717_v43, %v2715_v56  ;;  %v3475_v52 = vpack.c.bf16 %v2920_v41, %v2918_v45  ;;  %v2917_v13 = vmul.f32 %v2853_v3, %v2853_v3  ;;  %v2729_v51 = vsel %vm2728_vm0, %v5876_v62, %v2727_v27 }
 0x7b6   : >>> { %v2731_v9 = vand.u32 2147483648, %v5876_v62  ;;  %v2855_v37 = vmax.f32 %v2791_v49, 0.0  ;;  %v2794_v57 = vsub.f32 2.0, %v2718_v50  ;;  %v2706_v53 = vmul.f32 %v5867_v31, %v5822_v54 }
 0x7b7   : >>> { %vm2707_vm4 = vcmp.eq.f32.partialorder %v5822_v54, inf  ;;  %3476 = vmatprep.subr.bf16.mxu1 %v3475_v52  ;;  %vm2709_vm5 = vcmp.eq.f32.partialorder %v5822_v54, 0.0  ;;  %v2710_v8 = vand.u32 2147483648, %v5822_v54  ;;  %v2720_v23 = vmul.f32 %v5895_v47, %v5853_v4 }
 0x7b8   : >>> { %v2732_v39 = vsel %vm2730_vm3, %v2731_v9, %v2729_v51  ;;  %v2919_v0 = vmul.f32 %v2855_v37, %v2855_v37  ;;  %v2858_v62 = vmax.f32 %v2794_v57, 0.0  ;;  %v2708_v16 = vsel %vm2707_vm4, %v5822_v54, %v2706_v53 }
 0x7b9   : >>> { %v2796_v35 = vsub.f32 2.0, %v2732_v39  ;;  %v2711_v58 = vsel %vm2709_vm5, %v2710_v8, %v2708_v16  ;;  %vm2721_vm6 = vcmp.eq.f32.partialorder %v5853_v4, inf  ;;  %v2724_v31 = vand.u32 2147483648, %v5853_v4 }
 0x7ba   : >>> { %v3477_v34 = vpack.c.bf16 %v2919_v0, %v2917_v13  ;;  %v2722_v28 = vsel %vm2721_vm6, %v5853_v4, %v2720_v23  ;;  %vm2723_vm8 = vcmp.eq.f32.partialorder %v5853_v4, 0.0  ;;  %v2793_v47 = vsub.f32 2.0, %v2711_v58 }
 0x7bb   : >>> { %v2860_v6 = vmax.f32 %v2796_v35, 0.0  ;;  %v2725_v14 = vsel %vm2723_vm8, %v2724_v31, %v2722_v28  ;;  %v2922_v46 = vmul.f32 %v2858_v62, %v2858_v62  ;;  %v3926_v19 = vmov 1.0  }
 0x7bc   : >>> { %3478 = vmatpush1.bf16.msra.mxu1 %v3477_v34  ;;  %v2795_v26 = vsub.f32 2.0, %v2725_v14  ;;  %3402 = vmatprep.mubr.msk.f32.mxu1 %vm4532_vm14, %v3926_v19  ;;  %v2857_v44 = vmax.f32 %v2793_v47, 0.0  ;;  %v1655_v15 = vrot.slane %v1647_v21, %v6324_v42  ;;  %v1651_v25 = vrot.slane %v1647_v21, %v6326_v30 }
 0x7bd   : >>> { %v2924_v2 = vmul.f32 %v2860_v6, %v2860_v6 }
 0x7be   : >>> { %v2859_v1 = vmax.f32 %v2795_v26, 0.0  ;;  %v2921_v11 = vmul.f32 %v2857_v44, %v2857_v44  ;;  %vm1657_vm10 = vcmp.eq.s32.totalorder %v1655_v15, %v6325_v12  ;;  %vm1656_vm11 = vcmp.eq.s32.totalorder %v1651_v25, %v6325_v12 }
 0x7bf   : >>> { %v3479_v17 = vpack.c.bf16 %v2924_v2, %v2922_v46 }
 0x7c0   : >>> { %v2923_v38 = vmul.f32 %v2859_v1, %v2859_v1 }
 0x7c1   : >>> { %3480 = vmatprep.subr.bf16.mxu1 %v3479_v17 }
 0x7c2   : >>> { %v3481_v4 = vpack.c.bf16 %v2923_v38, %v2921_v11 }
 0x7c4   : >>> { %3482 = vmatpush1.bf16.msra.mxu1 %v3481_v4 }
 0x7c5   : >>> { %3404 = vmatprep.subr.msk.mxu1 %vm1657_vm10, %v3926_v19 }
 0x7c7   : >>> { %3403 = vmatmul.mubr.msk.f32.vlgmr.msra.gmra.mrb[0].mxu1 %vm4527_vm2, %v3926_v19 }
 0x7cd   : >>> { %3405 = vmatpush1.xpose.msk.msra.mxu1 %vm1656_vm11, %v3926_v19 }
 0x89a   : >>> { %v2991_v7 = vpop.f32.mrb[0].mxu1 }
 0x89b   : >>> { %v2993_v18 = vpop.f32.mrb[1].mxu1 }
 0x89c   : >>> { %3061 = vmatprep.mubr.f32.mxu1 %v2993_v18 }
 0x89d   : >>> { %3062 = vmatmul.mubr.f32.vlgmr.msra.gmra.mrb[2].mxu1 %v2991_v7 }
 0x970   : >>> { %v3063_v63 = vpop.f32.mrb[2].mxu1 }
 0x971   : >>> { %v3067_v45 = vadd.f32 %v3063_v63, %v2996_v32  ;;  %v3065_v40 = vpop.f32.mrb[3].mxu1 }
 0x973   : >>> { %3068 = vst.msk [vmem:[#allocation2] sm:$0x7] %vm1358_vm1, %v3067_v45 }
 0x974 PF: >>> { %s1624_s11 = sadd.s32 1, %s3916_s11  }
 0x975   : >>> { %p1621_p12 = scmp.ge.s32.totalorder %s1624_s11, 4  }
 0x976   : >> { %s1395_s6 = sadd.s32 (%p1621_p12), 1, %s3912_s6  }
 0x977   : >> { %1623 = sbr.rel (!%p1621_p12) target bundleno = 1516 (0x5ec), region = 123  ;;  %p1392_p1 = scmp.ge.s32.totalorder (%p1621_p12), %s1395_s6, 4  }
 0x97e   : > { %1394 = sbr.rel (!%p1392_p1) target bundleno = 1056 (0x420), region = 134  ;;  %v6328_v10 = vld [vmem:[#allocation24_spill] sm:$0xff] (%p1392_p1)  ;;  %v6329_v36 = vld [vmem:[#allocation21_spill] sm:$0xff] (%p1392_p1)  ;;  %v6331_v29 = vld [vmem:[#allocation18_spill] sm:$0xff] (%p1392_p1)  ;;  %v3149_v21 = vstv (%p1392_p1), %s1193_s2  ;;  %v3152_v14 = vstv (%p1392_p1), %s1371_s17  ;;  %s3406_s2 = sshll.u32 (%p1392_p1), %s3986_s0, 4 }
 0x97f   : > { %3069 = vxpose.xlu0.b32.start.end [1/1] (short) (narrow) (%p1392_p1), %v6328_v10, 8  ;;  %v3126_v20 = vmax.f32 (%p1392_p1), %v6329_v36, 0.0  ;;  %v6330_v60 = vld [vmem:[#allocation20_spill] sm:$0xff] (%p1392_p1)  ;;  %v6332_v13 = vld [vmem:[#allocation23_spill] sm:$0xff] (%p1392_p1)  ;;  %v6333_v28 = vld [vmem:[#allocation22_spill] sm:$0xff] (%p1392_p1)  ;;  %s6334_s16 = scalar_lea.vmem (%p1392_p1), [#allocation11], %s4142_s23  ;;  %s6011_s20 = scalar_lea.hbm (%p1392_p1), %s6061_s4, %s3406_s2 }
 0x980   : > { %v3108_v56 = vld [vmem:[#allocation2] sm:$0x7] (%p1392_p1)  ;;  %vm3155_vm2 = vcmp.eq.s32.totalorder (%p1392_p1), %v6333_v28, 2  ;;  %vm3160_vm14 = vcmp.eq.s32.totalorder (%p1392_p1), %v6333_v28, 3  ;;  %s3179_s17 = sshll.u32 (%p1392_p1), %s6334_s16, 4  ;;  %s6335_s29 = smov (%p1392_p1), %s6334_s16  ;;  %s6013_s17 = int_to_ptr.vmem [resolvable:$true] %s3179_s17 }
 0x981   : > { %3724 = vrsqrt.f32 (%p1392_p1), %v3126_v20  ;;  %vm3129_vm12 = vcmp.eq.f32.partialorder (%p1392_p1), %v3126_v20, inf  ;;  %v3132_v22 = vand.u32 (%p1392_p1), 2147483648, %v3126_v20  ;;  %vm3131_vm13 = vcmp.eq.f32.partialorder (%p1392_p1), %v3126_v20, 0.0  ;;  %s3167_s14 = scalar_lea.sflag (%p1392_p1), [#allocation7], %s4142_s23  ;;  %s3828_s18 = scalar_lea.vmem (%p1392_p1), %s6013_s17, 16 }
 0x982   : > { %p3829_p6 = scmp.ne.s32.totalorder (%p1392_p1), %s6013_s17, %s3828_s18  ;;  %p6336_p11 = scmp.ne.s32.totalorder (%p1392_p1), %s6148_s9, 0 }
 0x983   : > { %s3927_s0 = smov (%p1392_p1), [#allocation11]  }
 0x984   : > { %p3830_p13 = pnand (%p1392_p1), %p3829_p6, %p6336_p11  ;;  %s3832_s12 = sshll.u32 (%p1392_p1), %s3927_s0, 4  ;;  %s3833_s12 = int_to_ptr.vmem [resolvable:$false] %s3832_s12 }
 0x985   : > { %s3834_s21 = scalar_lea.vmem %s3833_s12, 32  ;;  %p3835_p3 = scmp.lt.s32.totalorder %s6013_s17, %s3833_s12 }
 0x986   : > { %p3831_p10 = pneg %p3830_p13  ;;  %p3836_p5 = scmp.lt.s32.totalorder %s3834_s21, %s3828_s18 }
 0x988   : > { %p3837_p7 = por %p3836_p5, %p3835_p3 }
 0x98a   : > { %p3838_p0 = pnand %p3837_p7, %p3831_p10 }
 0x98b   : > { %v3725_v59 = vpop.eup %3724 }
 0x98c   : > { %v3128_v43 = vmul.f32 %v3725_v59, %v3126_v20 }
 0x98e   : > { %v3130_v27 = vsel %vm3129_vm12, %v3126_v20, %v3128_v43 }
 0x98f   : > { %v3133_v41 = vsel %vm3131_vm13, %v3132_v22, %v3130_v27 }
 0x990   : > { %v3134_v3 = vmul.f32 %v6330_v60, %v3133_v41 }
 0x992   : > { %v3135_v24 = vsel %vm1180_vm7, %v3134_v3, 0.0  ;;  %vm3151_vm7 = vcmp.eq.s32.totalorder %v6333_v28, 1 }
 0x993   : > { %3136 = vadd.xlane.f32.xlu1 %v3135_v24  ;;  %v3153_v46 = vsel %vm3151_vm7, %v3152_v14, 0.0 }
 0x9ff   : > { %v3085_v61 = vpop.trf.xlu0 }
 0xa00   : > { %v3104_v5 = vrot.slane %v3085_v61, %v6331_v29 }
 0xa02   : > { %v3105_v48 = vmul.f32 %v3104_v5, %v6328_v10 }
 0xa04   : > { %v3106_v33 = vmax.f32 %v3105_v48, 1.0  ;;  %vm3107_vm9 = vcmp.gt.f32.partialorder %v3105_v48, 0.0 }
 0xa06   : > { %3726 = vrcp.f32 %v3106_v33 }
 0xa10   : > { %v3727_v49 = vpop.eup %3726 }
 0xa11   : > { %v3110_v50 = vmul.f32 %v3727_v49, %v3108_v56 }
 0xa13   : > { %v3111_v52 = vsel %vm3107_vm9, %v3110_v50, 0.0 }
 0xa14   : > { %v3112_v51 = vmul.f32 %v6332_v13, %v3111_v52 }
 0xa16   : > { %v3113_v9 = vsel %vm1358_vm1, %v3112_v51, 0.0  ;;  %vm3148_vm1 = vcmp.eq.s32.totalorder %v6333_v28, 0 }
 0xa17   : > { %3114 = vadd.xlane.f32.xlu0 %v3113_v9  ;;  %v3150_v47 = vsel %vm3148_vm1, %v3149_v21, 0.0 }
 0xa18   : > { %v3154_v2 = vadd.f32 %v3153_v46, %v3150_v47 }
 0xa20   : > { %v3137_v37 = vpop.xlane.xlu1 %3136 }
 0xa21   : > { %v3138_v57 = vrot.slane %v3137_v37, 4 }
 0xa23   : > { %v3139_v53 = vadd.f32 %v3138_v57, %v3137_v37 }
 0xa25   : > { %v3140_v39 = vrot.slane %v3139_v53, 2 }
 0xa27   : > { %v3141_v35 = vadd.f32 %v3140_v39, %v3139_v53 }
 0xa29   : > { %v3142_v58 = vrot.slane %v3141_v35, 1 }
 0xa2b   : > { %v3143_v6 = vadd.f32 %v3142_v58, %v3141_v35 }
 0xaa4   : > { %v3115_v8 = vpop.xlane.xlu0 %3114 }
 0xaa5   : > { %v3116_v23 = vrot.slane %v3115_v8, 4 }
 0xaa7   : > { %v3117_v0 = vadd.f32 %v3116_v23, %v3115_v8 }
 0xaa9   : > { %v3118_v62 = vrot.slane %v3117_v0, 2 }
 0xaab   : > { %v3119_v16 = vadd.f32 %v3118_v62, %v3117_v0 }
 0xaad   : > { %v3120_v31 = vrot.slane %v3119_v16, 1 }
 0xaaf   : > { %v3121_v34 = vadd.f32 %v3120_v31, %v3119_v16 }
 0xab1   : > { %3493 = vpush %v3121_v34 }
 0xab2   : > { %3495 = vpush %v3143_v6 }
 0xae2   : > { %s3494_s7 = spop %3493 }
 0xae3   : > { %s3125_s8 = smul.f32 0.16666667, %s3494_s7  ;;  %s3496_s6 = spop %3495 }
 0xae4   : > { %s3147_s13 = smul.f32 0.33333334, %s3496_s6 }
 0xae5   : > { %s3156_s11 = smul.f32 0.001, %s3125_s8 }
 0xae6   : > { %s3161_s22 = smul.f32 0.001, %s3147_s13 }
 0xae7   : > { %v3157_v26 = vstv %s3156_s11 }
 0xae8   : > { %v3158_v19 = vsel %vm3155_vm2, %v3157_v26, 0.0  ;;  %v3162_v54 = vstv %s3161_s22 }
 0xae9   : > { %v3159_v44 = vadd.f32 %v3158_v19, %v3154_v2  ;;  %v3163_v17 = vsel %vm3160_vm14, %v3162_v54, 0.0 }
 0xaeb   : > { %v3164_v1 = vadd.f32 %v3163_v17, %v3159_v44 }
 0xaed   : > { %3165 = vst [vmem:[%s6335_s29] sm:$0x1] %v3164_v1 }
 0xaee   : > { %3841 = shalt.err (!%p3838_p0)
}
 0xaef   : > { %s3842_s23 = scalar_lea.hbm %s6011_s20, 16  ;;  %s3846_s7 = scalar_lea.hbm %s6061_s4, 32 }
 0xaf0   : > { %p3843_p2 = scmp.ne.s32.totalorder %s6011_s20, %s3842_s23  ;;  %p3847_p9 = scmp.lt.u32.totalorder %s6011_s20, %s6061_s4 }
 0xaf1   : > { %p3848_p12 = scmp.lt.u32.totalorder %s3846_s7, %s3842_s23  ;;  %p3850_p6 = scmp.lt.u32.totalorder %s3842_s23, %s6011_s20 }
 0xaf2   : > { %p3844_p4 = pnand %p3843_p2, %p6336_p11 }
 0xaf3   : > { %p3849_p1 = por %p3848_p12, %p3847_p9 }
 0xaf4   : > { %p3845_p8 = pneg %p3844_p4 }
 0xaf5   : > { %p3851_p13 = por %p3850_p6, %p3849_p1 }
 0xaf7   : > { %p3852_p10 = pnand %p3851_p13, %p3845_p8 }
 0xaf9   : > { %3855 = shalt.err (!%p3852_p10)
}
 0xafa   : > { %3503 = dma.vmem_to_hbm [thread:$0]  (%p6336_p11), %s6013_s17, 16, %s6011_s20, %s3167_s14  }
 0xafb PF: > { %s3191_s13 = sand.u32 1, %s3896_s25   ;;  %p6337_p3 = scmp.ne.s32.totalorder %s6149_s10, 0 }
 0xafc   : > { %p6338_p5 = scmp.ge.s32.totalorder %s3908_s28, 2  ;;  %s3192_s11 = scalar_lea.sflag [#allocation7], %s3191_s13 }
 0xafe   : > { %p3516_p7 = pnand %p6338_p5, %p6337_p3 }
 0xb00   : > { %3891 = dma.done.wait (!%p3516_p7), %s3192_s11, 16  }
 0xb01   : > { %3893 = vsyncadd (!%p3516_p7), %s3192_s11, 4294967280  ;;  %s6339_s22 = sld [smem:[#allocation16_spill]]  ;;  %p24_p0 = scmp.ge.s32.totalorder %s3990_s30, 4  }
 0xb02   : > { %s6340_s25 = smov %s3900_s26  ;;  %s6341_s26 = smov %s3904_s27 }
 0xb03   : > { %s6343_s28 = smov %s3990_s30  ;;  %26 = sbr.rel (!%p24_p0) target bundleno = 19 (0x13), region = 145 }
 0xb07   : > { %s6342_s27 = smov %s6339_s22 }
 0xb0a   :  { %3196 = vsyncpa [#allocation6], 1 }
 0xb0b   :  { %3198 = vsyncpa [#allocation6 + $0x1], 1 }
 0xb0c   :  { %3199 = vsyncpa [#allocation9], 1 }
 0xb0d   :  { %3201 = vsyncpa [#allocation9 + $0x1], 1 }
 0xb0e   :  { %3202 = vsyncpa [#allocation7], 1 }
 0xb0f   :  { %3204 = vsyncpa [#allocation7 + $0x1], 1 }

</bundles_post_ra>
